<compile_context>
chip_gen: v5e
topology: v5e:2x2
jax: 0.10.0
libtpu: 0.0.40
codegen_flags: <defaults>
</compile_context>

<pallas_src>
import jax
import jax.numpy as jnp
from jax.experimental import pallas as pl
from jax.experimental.pallas import tpu as pltpu

LANE = 128                    # channels padded to a multiple of the TPU lane width
DTYPE = jnp.bfloat16          # HBM storage / MXU operand dtype (epilogue stays f32)
_BN_EPS = 1e-5
_TM_MAX = 512                 # M tile for the flattened 1x1 GEMM kernels


def _rup(n, m):
    return ((n + m - 1) // m) * m


def _parallel():
    return pltpu.CompilerParams(dimension_semantics=("parallel",))


# --------------------------------- epilogue -----------------------------------

def _mish(y):
    """mish(y) = y * tanh(softplus(y)), with 1 exp + 1 approx reciprocal.

    With t = exp(y):  tanh(log(1+t)) = ((1+t)^2 - 1) / ((1+t)^2 + 1)
                                     = t*(t+2) / (t*(t+2) + 2).
    y is clamped before exp so t*t stays finite in f32 (the ratio saturates at 1).
    """
    t = jnp.exp(jnp.minimum(y, 20.0))
    num = t * (t + 2.0)
    return y * num * pl.reciprocal(num + 2.0, approx=True)


# ------------------------------- Pallas kernels --------------------------------

def _conv1x1_kernel(x_ref, w_ref, b_ref, o_ref):
    y = jnp.dot(x_ref[...], w_ref[...], preferred_element_type=jnp.float32)
    o_ref[...] = _mish(y + b_ref[...]).astype(o_ref.dtype)


def _split_kernel(x_ref, w0_ref, b0_ref, w1_ref, b1_ref, o0_ref, o1_ref):
    # split_conv0 and split_conv1 (both 1x1) from a single read of x.
    x = x_ref[...]
    y0 = jnp.dot(x, w0_ref[...], preferred_element_type=jnp.float32) + b0_ref[...]
    y1 = jnp.dot(x, w1_ref[...], preferred_element_type=jnp.float32) + b1_ref[...]
    o0_ref[...] = _mish(y0).astype(o0_ref.dtype)
    o1_ref[...] = _mish(y1).astype(o1_ref.dtype)


def _concat_conv_kernel(x1_ref, x0_ref, w1_ref, w0_ref, b_ref, o_ref):
    # cat([x1, x0], C) @ W  ==  x1 @ W[:C1] + x0 @ W[C1:]  (no concat tensor).
    y = jnp.dot(x1_ref[...], w1_ref[...], preferred_element_type=jnp.float32)
    y = y + jnp.dot(x0_ref[...], w0_ref[...], preferred_element_type=jnp.float32)
    o_ref[...] = _mish(y + b_ref[...]).astype(o_ref.dtype)


def _conv3x3_s2_kernel(ph_ref, w_ref, b_ref, o_ref):
    # ph_ref: (4, Hq, Wq, Cin) -- 2x2 polyphase decomposition of one padded image.
    # Tap (kh, kw) reads phase (kh%2)*2 + (kw%2) at offset (kh//2, kw//2).
    _, ho, wo, cout = o_ref.shape
    cin = ph_ref.shape[3]
    acc = jnp.zeros((ho * wo, cout), jnp.float32)
    for kh in range(3):
        for kw in range(3):
            p_idx = (kh % 2) * 2 + (kw % 2)
            dh, dw = kh // 2, kw // 2
            ph = ph_ref[p_idx].astype(jnp.float32)            # aligned slab load
            win = ph[dh:dh + ho, dw:dw + wo, :].reshape(ho * wo, cin)
            acc = acc + jnp.dot(win.astype(DTYPE), w_ref[kh * 3 + kw],
                                preferred_element_type=jnp.float32)
    y = _mish(acc + b_ref[...])
    o_ref[0] = y.reshape(ho, wo, cout).astype(o_ref.dtype)


def _resblock_kernel(x_ref, w1_ref, b1_ref, w2_ref, b2_ref, o_ref, hpad_ref):
    # Whole Resblock: y = x + mish(bn(conv3x3(mish(bn(conv1x1(x)))))).
    # The 1x1 intermediate is zero-padded spatially into a VMEM scratch so the
    # 3x3 is 9 shifted matmuls without ever leaving VMEM.
    _, h, w, c = x_ref.shape
    ch = w1_ref.shape[1]
    x2d = x_ref[0].astype(jnp.float32).reshape(h * w, c)
    hid = jnp.dot(x2d.astype(DTYPE), w1_ref[...],
                  preferred_element_type=jnp.float32)
    hid = _mish(hid + b1_ref[...])
    hpad_ref[...] = jnp.zeros_like(hpad_ref)
    hpad_ref[1:h + 1, 1:w + 1, :] = hid.reshape(h, w, ch)
    acc = jnp.zeros((h * w, c), jnp.float32)
    for kh in range(3):
        for kw in range(3):
            win = hpad_ref[kh:kh + h, kw:kw + w, :].reshape(h * w, ch)
            acc = acc + jnp.dot(win.astype(DTYPE), w2_ref[kh * 3 + kw],
                                preferred_element_type=jnp.float32)
    y = x2d + _mish(acc + b2_ref[...])
    o_ref[0] = y.reshape(h, w, c).astype(o_ref.dtype)


# ------------------------------ kernel wrappers --------------------------------

def conv1x1(x, p):
    """Fused 1x1 conv + folded BN + Mish on a flattened (M, Cin) activation."""
    m, cin = x.shape
    cout = p["w"].shape[1]
    tm = min(_TM_MAX, m)
    cost = pl.CostEstimate(flops=2 * m * cin * cout, transcendentals=m * cout,
                           bytes_accessed=2 * (m * cin + cin * cout + m * cout))
    return pl.pallas_call(
        _conv1x1_kernel,
        out_shape=jax.ShapeDtypeStruct((m, cout), DTYPE),
        grid=(pl.cdiv(m, tm),),
        in_specs=[pl.BlockSpec((tm, cin), lambda i: (i, 0)),
                  pl.BlockSpec((cin, cout), lambda i: (0, 0)),
                  pl.BlockSpec((1, cout), lambda i: (0, 0))],
        out_specs=pl.BlockSpec((tm, cout), lambda i: (i, 0)),
        compiler_params=_parallel(),
        cost_estimate=cost,
    )(x, p["w"], p["b"])


def split_dual(x, p0, p1):
    """split_conv0 and split_conv1 from one read of x (dual-output kernel)."""
    m, cin = x.shape
    c0, c1 = p0["w"].shape[1], p1["w"].shape[1]
    tm = min(_TM_MAX, m)
    cost = pl.CostEstimate(
        flops=2 * m * cin * (c0 + c1), transcendentals=m * (c0 + c1),
        bytes_accessed=2 * (m * cin + cin * (c0 + c1) + m * (c0 + c1)))
    return pl.pallas_call(
        _split_kernel,
        out_shape=(jax.ShapeDtypeStruct((m, c0), DTYPE),
                   jax.ShapeDtypeStruct((m, c1), DTYPE)),
        grid=(pl.cdiv(m, tm),),
        in_specs=[pl.BlockSpec((tm, cin), lambda i: (i, 0)),
                  pl.BlockSpec((cin, c0), lambda i: (0, 0)),
                  pl.BlockSpec((1, c0), lambda i: (0, 0)),
                  pl.BlockSpec((cin, c1), lambda i: (0, 0)),
                  pl.BlockSpec((1, c1), lambda i: (0, 0))],
        out_specs=(pl.BlockSpec((tm, c0), lambda i: (i, 0)),
                   pl.BlockSpec((tm, c1), lambda i: (i, 0))),
        compiler_params=_parallel(),
        cost_estimate=cost,
    )(x, p0["w"], p0["b"], p1["w"], p1["b"])


def concat_conv(x1, x0, p):
    """torch.cat([x1, x0], C) + 1x1 conv as two matmuls into one accumulator."""
    m, c1 = x1.shape
    c0 = x0.shape[1]
    cout = p["w1"].shape[1]
    tm = min(_TM_MAX, m)
    cost = pl.CostEstimate(
        flops=2 * m * (c0 + c1) * cout, transcendentals=m * cout,
        bytes_accessed=2 * (m * (c0 + c1) + (c0 + c1) * cout + m * cout))
    return pl.pallas_call(
        _concat_conv_kernel,
        out_shape=jax.ShapeDtypeStruct((m, cout), DTYPE),
        grid=(pl.cdiv(m, tm),),
        in_specs=[pl.BlockSpec((tm, c1), lambda i: (i, 0)),
                  pl.BlockSpec((tm, c0), lambda i: (i, 0)),
                  pl.BlockSpec((c1, cout), lambda i: (0, 0)),
                  pl.BlockSpec((c0, cout), lambda i: (0, 0)),
                  pl.BlockSpec((1, cout), lambda i: (0, 0))],
        out_specs=pl.BlockSpec((tm, cout), lambda i: (i, 0)),
        compiler_params=_parallel(),
        cost_estimate=cost,
    )(x1, x0, p["w1"], p["w0"], p["b"])


def conv3x3_s2(x, p):
    """BasicConv 3x3 / stride 2 / pad 1 (the CSP downsample), NHWC in/out."""
    n, h, w, cin = x.shape
    ho, wo = (h - 1) // 2 + 1, (w - 1) // 2 + 1
    hq, wq = ho + 1, wo + 1
    cout = p["w"].shape[2]
    xp = jnp.pad(x, ((0, 0), (1, 1), (1, 1), (0, 0)))
    # 2x2 polyphase decomposition (total bytes ~= input, not a 9x im2col blow-up).
    phases = []
    for a in (0, 1):
        for b in (0, 1):
            ph = xp[:, a::2, b::2, :][:, :hq, :wq, :]
            ph = jnp.pad(ph, ((0, 0), (0, hq - ph.shape[1]),
                              (0, wq - ph.shape[2]), (0, 0)))
            phases.append(ph)
    phases = jnp.stack(phases, axis=1).reshape(n * 4, hq, wq, cin)
    cost = pl.CostEstimate(
        flops=2 * 9 * n * ho * wo * cin * cout, transcendentals=n * ho * wo * cout,
        bytes_accessed=2 * (n * 4 * hq * wq * cin + 9 * cin * cout + n * ho * wo * cout))
    return pl.pallas_call(
        _conv3x3_s2_kernel,
        out_shape=jax.ShapeDtypeStruct((n, ho, wo, cout), DTYPE),
        grid=(n,),
        in_specs=[pl.BlockSpec((4, hq, wq, cin), lambda i: (i, 0, 0, 0)),
                  pl.BlockSpec((9, cin, cout), lambda i: (0, 0, 0)),
                  pl.BlockSpec((1, cout), lambda i: (0, 0))],
        out_specs=pl.BlockSpec((1, ho, wo, cout), lambda i: (i, 0, 0, 0)),
        compiler_params=_parallel(),
        cost_estimate=cost,
    )(phases, p["w"], p["b"])


def resblock_fused(x, blk):
    """One CSPDarknet Resblock (1x1 -> 3x3 + skip) as a single pallas_call."""
    n, h, w, c = x.shape
    ch = blk["c1"]["w"].shape[1]
    cost = pl.CostEstimate(
        flops=2 * n * h * w * (c * ch + 9 * ch * c),
        transcendentals=n * h * w * (ch + c),
        bytes_accessed=2 * (2 * n * h * w * c + c * ch + 9 * ch * c))
    return pl.pallas_call(
        _resblock_kernel,
        out_shape=jax.ShapeDtypeStruct((n, h, w, c), DTYPE),
        grid=(n,),
        in_specs=[pl.BlockSpec((1, h, w, c), lambda i: (i, 0, 0, 0)),
                  pl.BlockSpec((c, ch), lambda i: (0, 0)),
                  pl.BlockSpec((1, ch), lambda i: (0, 0)),
                  pl.BlockSpec((9, ch, c), lambda i: (0, 0, 0)),
                  pl.BlockSpec((1, c), lambda i: (0, 0))],
        out_specs=pl.BlockSpec((1, h, w, c), lambda i: (i, 0, 0, 0)),
        scratch_shapes=[pltpu.VMEM((h + 2, w + 2, ch), jnp.float32)],
        compiler_params=_parallel(),
        cost_estimate=cost,
    )(x, blk["c1"]["w"], blk["c1"]["b"], blk["c2"]["w"], blk["c2"]["b"])


# ------------------------------ parameter folding ------------------------------

def prepare_params(raw):
    """Fold inference-mode BatchNorm into the conv weights/bias, zero-pad all
    channel dims to multiples of LANE, cast matmul operands to bf16."""
    # TODO(synk): BatchNorm uses running statistics (inference mode); training-
    # mode batch statistics are not reproduced.
    def fold(p):
        w = p["w"].astype(jnp.float32)
        scale = p["gamma"] / jnp.sqrt(p["var"] + _BN_EPS)
        bias = (p["beta"] - p["mean"] * scale).astype(jnp.float32)
        return w * scale, bias                      # scale folded into the weights

    def conv(p):
        wf, bias = fold(p)
        k, _, cin, cout = wf.shape
        cin_p, cout_p = _rup(cin, LANE), _rup(cout, LANE)
        wf = jnp.pad(wf.reshape(k * k, cin, cout),
                     ((0, 0), (0, cin_p - cin), (0, cout_p - cout)))
        b = jnp.pad(bias, (0, cout_p - cout)).reshape(1, cout_p)
        return dict(w=(wf[0] if k == 1 else wf).astype(DTYPE), b=b)

    def concat(p):
        wf, bias = fold(p)
        _, _, cin, cout = wf.shape
        half = cin // 2                              # cat([x1, x0]): x1 channels first
        cout_p = _rup(cout, LANE)
        w1 = jnp.pad(wf[0, 0, :half, :],
                     ((0, _rup(half, LANE) - half), (0, cout_p - cout)))
        w0 = jnp.pad(wf[0, 0, half:, :],
                     ((0, _rup(cin - half, LANE) - (cin - half)), (0, cout_p - cout)))
        b = jnp.pad(bias, (0, cout_p - cout)).reshape(1, cout_p)
        return dict(w1=w1.astype(DTYPE), w0=w0.astype(DTYPE), b=b)

    return dict(
        downsample=conv(raw["downsample"]),
        split0=conv(raw["split0"]),
        split1=conv(raw["split1"]),
        resblocks=[dict(c1=conv(blk["c1"]), c2=conv(blk["c2"]))
                   for blk in raw["resblocks"]],
        blocks_out=conv(raw["blocks_out"]),
        concat=concat(raw["concat"]),
    )


# ---------------------------------- forward ------------------------------------

def resblock_body_forward(x_nchw, params, out_channels):
    """Resblock_body forward.  x_nchw: (N, Cin, H, W) f32 -> (N, Cout, H/2, W/2)."""
    x = jnp.transpose(x_nchw, (0, 2, 3, 1))                        # NCHW -> NHWC
    n, h, w, cin = x.shape
    x = jnp.pad(x, ((0, 0), (0, 0), (0, 0),
                    (0, _rup(cin, LANE) - cin))).astype(DTYPE)

    x = conv3x3_s2(x, params["downsample"])                        # (N, Ho, Wo, Cp)
    n, ho, wo, cp = x.shape
    m = n * ho * wo
    xf = x.reshape(m, cp)                                          # free: C stays minor

    x0, x1 = split_dual(xf, params["split0"], params["split1"])
    ch = x1.shape[1]
    x1 = x1.reshape(n, ho, wo, ch)
    for blk in params["resblocks"]:                                # x + conv3x3(conv1x1(x))
        x1 = resblock_fused(x1, blk)
    x1 = conv1x1(x1.reshape(m, ch), params["blocks_out"])

    y = concat_conv(x1, x0, params["concat"])                      # (M, Cout_pad)
    y = y.reshape(n, ho, wo, -1)[..., :out_channels].astype(jnp.float32)
    return jnp.transpose(y, (0, 3, 1, 2))                          # NHWC -> NCHW


# ------------------------------- parameter init --------------------------------

def init_basic_conv(key, cin, cout, k):
    k1, k2, k3, k4, k5 = jax.random.split(key, 5)
    fan = cin * k * k
    return dict(
        w=jax.random.normal(k1, (k, k, cin, cout), jnp.float32) / jnp.sqrt(fan),
        gamma=1.0 + 0.1 * jax.random.normal(k2, (cout,), jnp.float32),
        beta=0.1 * jax.random.normal(k3, (cout,), jnp.float32),
        mean=0.1 * jax.random.normal(k4, (cout,), jnp.float32),
        var=1.0 + 0.1 * jnp.abs(jax.random.normal(k5, (cout,), jnp.float32)),
    )


def init_resblock_body(key, in_c, out_c, num_blocks, first=False):
    keys = jax.random.split(key, 5 + 2 * max(num_blocks, 1))
    if first:
        hid = out_c // 2
        resblocks = [dict(c1=init_basic_conv(keys[5], out_c, hid, 1),
                          c2=init_basic_conv(keys[6], hid, out_c, 3))]
        return dict(
            downsample=init_basic_conv(keys[0], in_c, out_c, 3),
            split0=init_basic_conv(keys[1], out_c, out_c, 1),
            split1=init_basic_conv(keys[2], out_c, out_c, 1),
            resblocks=resblocks,
            blocks_out=init_basic_conv(keys[3], out_c, out_c, 1),
            concat=init_basic_conv(keys[4], out_c * 2, out_c, 1),
        )
    half = out_c // 2
    resblocks = [dict(c1=init_basic_conv(keys[5 + 2 * i], half, half, 1),
                      c2=init_basic_conv(keys[6 + 2 * i], half, half, 3))
                 for i in range(num_blocks)]
    return dict(
        downsample=init_basic_conv(keys[0], in_c, out_c, 3),
        split0=init_basic_conv(keys[1], out_c, half, 1),
        split1=init_basic_conv(keys[2], out_c, half, 1),
        resblocks=resblocks,
        blocks_out=init_basic_conv(keys[3], half, half, 1),
        concat=init_basic_conv(keys[4], out_c, out_c, 1),
    )


# ------------------------------------ main --------------------------------------

if __name__ == "__main__":
    key = jax.random.PRNGKey(0)
    kx, kp = jax.random.split(key)

    N, IN_C, OUT_C, H, W, NUM_BLOCKS = 2, 4, 8, 16, 16, 2
    x = jax.random.normal(kx, (N, IN_C, H, W), jnp.float32)        # NCHW input
    raw_params = init_resblock_body(kp, IN_C, OUT_C, NUM_BLOCKS, first=False)
    params = prepare_params(raw_params)

    fwd = jax.jit(resblock_body_forward, static_argnums=2)
    out = fwd(x, params, OUT_C)
    out = jax.block_until_ready(out)

    assert out.shape == (N, OUT_C, H // 2, W // 2), out.shape
    assert jnp.all(jnp.isfinite(out))
    print("KERNEL_OK")
</pallas_src>

<mosaic_0001>
module attributes {stable_mosaic.version = 11 : i64} {
  func.func @_conv3x3_s2_kernel(%arg0: i32, %arg1: memref<4x9x9x128xbf16, #tpu.memory_space<vmem>>, %arg2: memref<9x128x128xbf16, #tpu.memory_space<vmem>>, %arg3: memref<1x128xf32, #tpu.memory_space<vmem>>, %arg4: memref<1x8x8x128xbf16, #tpu.memory_space<vmem>>) attributes {dimension_semantics = [#tpu.dimension_semantics<parallel>], iteration_bounds = array<i64: 2>, scalar_prefetch = 0 : i64, scratch_operands = 0 : i64, tpu.core_type = #tpu.core_type<tc>, window_params = [{transform_indices = @transform_0, window_bounds = array<i64: 4, 9, 9, 128>}, {pipeline_mode = #tpu.pipeline_mode<synchronous>, transform_indices = @transform_1, window_bounds = array<i64: 9, 128, 128>}, {pipeline_mode = #tpu.pipeline_mode<synchronous>, transform_indices = @transform_2, window_bounds = array<i64: 1, 128>}, {transform_indices = @transform_3, window_bounds = array<i64: 1, 8, 8, 128>}]} {
    %cst = arith.constant 0.000000e+00 : f32
    %0 = vector.broadcast %cst : f32 to vector<64x128xf32>
    %c0 = arith.constant 0 : index
    %c0_0 = arith.constant 0 : index
    %c0_1 = arith.constant 0 : index
    %c0_2 = arith.constant 0 : index
    %1 = vector.load %arg1[%c0, %c0_0, %c0_1, %c0_2] : memref<4x9x9x128xbf16, #tpu.memory_space<vmem>>, vector<1x9x9x128xbf16>
    %2 = vector.shape_cast %1 : vector<1x9x9x128xbf16> to vector<9x9x128xbf16>
    %3 = arith.extf %2 : vector<9x9x128xbf16> to vector<9x9x128xf32>
    %4 = vector.extract_strided_slice %3 {offsets = [0, 0, 0], sizes = [8, 8, 128], strides = [1, 1, 1]} : vector<9x9x128xf32> to vector<8x8x128xf32>
    %5 = vector.shape_cast %4 : vector<8x8x128xf32> to vector<64x128xf32>
    %6 = arith.truncf %5 : vector<64x128xf32> to vector<64x128xbf16>
    %c0_3 = arith.constant 0 : index
    %c0_4 = arith.constant 0 : index
    %c0_5 = arith.constant 0 : index
    %7 = vector.load %arg2[%c0_3, %c0_4, %c0_5] : memref<9x128x128xbf16, #tpu.memory_space<vmem>>, vector<1x128x128xbf16>
    %8 = vector.shape_cast %7 : vector<1x128x128xbf16> to vector<128x128xbf16>
    %cst_6 = arith.constant dense<0.000000e+00> : vector<64x128xf32>
    %9 = tpu.matmul %6, %8, %cst_6 {dimension_numbers = #tpu.dot_dimension_numbers<[1], [0], [0], [1], [0, 0, 1, 1], [], []>} : vector<64x128xbf16>, vector<128x128xbf16>, vector<64x128xf32> -> vector<64x128xf32>
    %10 = arith.addf %0, %9 : vector<64x128xf32>
    %c1 = arith.constant 1 : index
    %c0_7 = arith.constant 0 : index
    %c0_8 = arith.constant 0 : index
    %c0_9 = arith.constant 0 : index
    %11 = vector.load %arg1[%c1, %c0_7, %c0_8, %c0_9] : memref<4x9x9x128xbf16, #tpu.memory_space<vmem>>, vector<1x9x9x128xbf16>
    %12 = vector.shape_cast %11 : vector<1x9x9x128xbf16> to vector<9x9x128xbf16>
    %13 = arith.extf %12 : vector<9x9x128xbf16> to vector<9x9x128xf32>
    %14 = vector.extract_strided_slice %13 {offsets = [0, 0, 0], sizes = [8, 8, 128], strides = [1, 1, 1]} : vector<9x9x128xf32> to vector<8x8x128xf32>
    %15 = vector.shape_cast %14 : vector<8x8x128xf32> to vector<64x128xf32>
    %16 = arith.truncf %15 : vector<64x128xf32> to vector<64x128xbf16>
    %c1_10 = arith.constant 1 : index
    %c0_11 = arith.constant 0 : index
    %c0_12 = arith.constant 0 : index
    %17 = vector.load %arg2[%c1_10, %c0_11, %c0_12] : memref<9x128x128xbf16, #tpu.memory_space<vmem>>, vector<1x128x128xbf16>
    %18 = vector.shape_cast %17 : vector<1x128x128xbf16> to vector<128x128xbf16>
    %cst_13 = arith.constant dense<0.000000e+00> : vector<64x128xf32>
    %19 = tpu.matmul %16, %18, %cst_13 {dimension_numbers = #tpu.dot_dimension_numbers<[1], [0], [0], [1], [0, 0, 1, 1], [], []>} : vector<64x128xbf16>, vector<128x128xbf16>, vector<64x128xf32> -> vector<64x128xf32>
    %20 = arith.addf %10, %19 : vector<64x128xf32>
    %c0_14 = arith.constant 0 : index
    %c0_15 = arith.constant 0 : index
    %c0_16 = arith.constant 0 : index
    %c0_17 = arith.constant 0 : index
    %21 = vector.load %arg1[%c0_14, %c0_15, %c0_16, %c0_17] : memref<4x9x9x128xbf16, #tpu.memory_space<vmem>>, vector<1x9x9x128xbf16>
    %22 = vector.shape_cast %21 : vector<1x9x9x128xbf16> to vector<9x9x128xbf16>
    %23 = arith.extf %22 : vector<9x9x128xbf16> to vector<9x9x128xf32>
    %24 = vector.extract_strided_slice %23 {offsets = [0, 1, 0], sizes = [8, 8, 128], strides = [1, 1, 1]} : vector<9x9x128xf32> to vector<8x8x128xf32>
    %25 = vector.shape_cast %24 : vector<8x8x128xf32> to vector<64x128xf32>
    %26 = arith.truncf %25 : vector<64x128xf32> to vector<64x128xbf16>
    %c2 = arith.constant 2 : index
    %c0_18 = arith.constant 0 : index
    %c0_19 = arith.constant 0 : index
    %27 = vector.load %arg2[%c2, %c0_18, %c0_19] : memref<9x128x128xbf16, #tpu.memory_space<vmem>>, vector<1x128x128xbf16>
    %28 = vector.shape_cast %27 : vector<1x128x128xbf16> to vector<128x128xbf16>
    %cst_20 = arith.constant dense<0.000000e+00> : vector<64x128xf32>
    %29 = tpu.matmul %26, %28, %cst_20 {dimension_numbers = #tpu.dot_dimension_numbers<[1], [0], [0], [1], [0, 0, 1, 1], [], []>} : vector<64x128xbf16>, vector<128x128xbf16>, vector<64x128xf32> -> vector<64x128xf32>
    %30 = arith.addf %20, %29 : vector<64x128xf32>
    %c2_21 = arith.constant 2 : index
    %c0_22 = arith.constant 0 : index
    %c0_23 = arith.constant 0 : index
    %c0_24 = arith.constant 0 : index
    %31 = vector.load %arg1[%c2_21, %c0_22, %c0_23, %c0_24] : memref<4x9x9x128xbf16, #tpu.memory_space<vmem>>, vector<1x9x9x128xbf16>
    %32 = vector.shape_cast %31 : vector<1x9x9x128xbf16> to vector<9x9x128xbf16>
    %33 = arith.extf %32 : vector<9x9x128xbf16> to vector<9x9x128xf32>
    %34 = vector.extract_strided_slice %33 {offsets = [0, 0, 0], sizes = [8, 8, 128], strides = [1, 1, 1]} : vector<9x9x128xf32> to vector<8x8x128xf32>
    %35 = vector.shape_cast %34 : vector<8x8x128xf32> to vector<64x128xf32>
    %36 = arith.truncf %35 : vector<64x128xf32> to vector<64x128xbf16>
    %c3 = arith.constant 3 : index
    %c0_25 = arith.constant 0 : index
    %c0_26 = arith.constant 0 : index
    %37 = vector.load %arg2[%c3, %c0_25, %c0_26] : memref<9x128x128xbf16, #tpu.memory_space<vmem>>, vector<1x128x128xbf16>
    %38 = vector.shape_cast %37 : vector<1x128x128xbf16> to vector<128x128xbf16>
    %cst_27 = arith.constant dense<0.000000e+00> : vector<64x128xf32>
    %39 = tpu.matmul %36, %38, %cst_27 {dimension_numbers = #tpu.dot_dimension_numbers<[1], [0], [0], [1], [0, 0, 1, 1], [], []>} : vector<64x128xbf16>, vector<128x128xbf16>, vector<64x128xf32> -> vector<64x128xf32>
    %40 = arith.addf %30, %39 : vector<64x128xf32>
    %c3_28 = arith.constant 3 : index
    %c0_29 = arith.constant 0 : index
    %c0_30 = arith.constant 0 : index
    %c0_31 = arith.constant 0 : index
    %41 = vector.load %arg1[%c3_28, %c0_29, %c0_30, %c0_31] : memref<4x9x9x128xbf16, #tpu.memory_space<vmem>>, vector<1x9x9x128xbf16>
    %42 = vector.shape_cast %41 : vector<1x9x9x128xbf16> to vector<9x9x128xbf16>
    %43 = arith.extf %42 : vector<9x9x128xbf16> to vector<9x9x128xf32>
    %44 = vector.extract_strided_slice %43 {offsets = [0, 0, 0], sizes = [8, 8, 128], strides = [1, 1, 1]} : vector<9x9x128xf32> to vector<8x8x128xf32>
    %45 = vector.shape_cast %44 : vector<8x8x128xf32> to vector<64x128xf32>
    %46 = arith.truncf %45 : vector<64x128xf32> to vector<64x128xbf16>
    %c4 = arith.constant 4 : index
    %c0_32 = arith.constant 0 : index
    %c0_33 = arith.constant 0 : index
    %47 = vector.load %arg2[%c4, %c0_32, %c0_33] : memref<9x128x128xbf16, #tpu.memory_space<vmem>>, vector<1x128x128xbf16>
    %48 = vector.shape_cast %47 : vector<1x128x128xbf16> to vector<128x128xbf16>
    %cst_34 = arith.constant dense<0.000000e+00> : vector<64x128xf32>
    %49 = tpu.matmul %46, %48, %cst_34 {dimension_numbers = #tpu.dot_dimension_numbers<[1], [0], [0], [1], [0, 0, 1, 1], [], []>} : vector<64x128xbf16>, vector<128x128xbf16>, vector<64x128xf32> -> vector<64x128xf32>
    %50 = arith.addf %40, %49 : vector<64x128xf32>
    %c2_35 = arith.constant 2 : index
    %c0_36 = arith.constant 0 : index
    %c0_37 = arith.constant 0 : index
    %c0_38 = arith.constant 0 : index
    %51 = vector.load %arg1[%c2_35, %c0_36, %c0_37, %c0_38] : memref<4x9x9x128xbf16, #tpu.memory_space<vmem>>, vector<1x9x9x128xbf16>
    %52 = vector.shape_cast %51 : vector<1x9x9x128xbf16> to vector<9x9x128xbf16>
    %53 = arith.extf %52 : vector<9x9x128xbf16> to vector<9x9x128xf32>
    %54 = vector.extract_strided_slice %53 {offsets = [0, 1, 0], sizes = [8, 8, 128], strides = [1, 1, 1]} : vector<9x9x128xf32> to vector<8x8x128xf32>
    %55 = vector.shape_cast %54 : vector<8x8x128xf32> to vector<64x128xf32>
    %56 = arith.truncf %55 : vector<64x128xf32> to vector<64x128xbf16>
    %c5 = arith.constant 5 : index
    %c0_39 = arith.constant 0 : index
    %c0_40 = arith.constant 0 : index
    %57 = vector.load %arg2[%c5, %c0_39, %c0_40] : memref<9x128x128xbf16, #tpu.memory_space<vmem>>, vector<1x128x128xbf16>
    %58 = vector.shape_cast %57 : vector<1x128x128xbf16> to vector<128x128xbf16>
    %cst_41 = arith.constant dense<0.000000e+00> : vector<64x128xf32>
    %59 = tpu.matmul %56, %58, %cst_41 {dimension_numbers = #tpu.dot_dimension_numbers<[1], [0], [0], [1], [0, 0, 1, 1], [], []>} : vector<64x128xbf16>, vector<128x128xbf16>, vector<64x128xf32> -> vector<64x128xf32>
    %60 = arith.addf %50, %59 : vector<64x128xf32>
    %c0_42 = arith.constant 0 : index
    %c0_43 = arith.constant 0 : index
    %c0_44 = arith.constant 0 : index
    %c0_45 = arith.constant 0 : index
    %61 = vector.load %arg1[%c0_42, %c0_43, %c0_44, %c0_45] : memref<4x9x9x128xbf16, #tpu.memory_space<vmem>>, vector<1x9x9x128xbf16>
    %62 = vector.shape_cast %61 : vector<1x9x9x128xbf16> to vector<9x9x128xbf16>
    %63 = arith.extf %62 : vector<9x9x128xbf16> to vector<9x9x128xf32>
    %64 = vector.extract_strided_slice %63 {offsets = [1, 0, 0], sizes = [8, 8, 128], strides = [1, 1, 1]} : vector<9x9x128xf32> to vector<8x8x128xf32>
    %65 = vector.shape_cast %64 : vector<8x8x128xf32> to vector<64x128xf32>
    %66 = arith.truncf %65 : vector<64x128xf32> to vector<64x128xbf16>
    %c6 = arith.constant 6 : index
    %c0_46 = arith.constant 0 : index
    %c0_47 = arith.constant 0 : index
    %67 = vector.load %arg2[%c6, %c0_46, %c0_47] : memref<9x128x128xbf16, #tpu.memory_space<vmem>>, vector<1x128x128xbf16>
    %68 = vector.shape_cast %67 : vector<1x128x128xbf16> to vector<128x128xbf16>
    %cst_48 = arith.constant dense<0.000000e+00> : vector<64x128xf32>
    %69 = tpu.matmul %66, %68, %cst_48 {dimension_numbers = #tpu.dot_dimension_numbers<[1], [0], [0], [1], [0, 0, 1, 1], [], []>} : vector<64x128xbf16>, vector<128x128xbf16>, vector<64x128xf32> -> vector<64x128xf32>
    %70 = arith.addf %60, %69 : vector<64x128xf32>
    %c1_49 = arith.constant 1 : index
    %c0_50 = arith.constant 0 : index
    %c0_51 = arith.constant 0 : index
    %c0_52 = arith.constant 0 : index
    %71 = vector.load %arg1[%c1_49, %c0_50, %c0_51, %c0_52] : memref<4x9x9x128xbf16, #tpu.memory_space<vmem>>, vector<1x9x9x128xbf16>
    %72 = vector.shape_cast %71 : vector<1x9x9x128xbf16> to vector<9x9x128xbf16>
    %73 = arith.extf %72 : vector<9x9x128xbf16> to vector<9x9x128xf32>
    %74 = vector.extract_strided_slice %73 {offsets = [1, 0, 0], sizes = [8, 8, 128], strides = [1, 1, 1]} : vector<9x9x128xf32> to vector<8x8x128xf32>
    %75 = vector.shape_cast %74 : vector<8x8x128xf32> to vector<64x128xf32>
    %76 = arith.truncf %75 : vector<64x128xf32> to vector<64x128xbf16>
    %c7 = arith.constant 7 : index
    %c0_53 = arith.constant 0 : index
    %c0_54 = arith.constant 0 : index
    %77 = vector.load %arg2[%c7, %c0_53, %c0_54] : memref<9x128x128xbf16, #tpu.memory_space<vmem>>, vector<1x128x128xbf16>
    %78 = vector.shape_cast %77 : vector<1x128x128xbf16> to vector<128x128xbf16>
    %cst_55 = arith.constant dense<0.000000e+00> : vector<64x128xf32>
    %79 = tpu.matmul %76, %78, %cst_55 {dimension_numbers = #tpu.dot_dimension_numbers<[1], [0], [0], [1], [0, 0, 1, 1], [], []>} : vector<64x128xbf16>, vector<128x128xbf16>, vector<64x128xf32> -> vector<64x128xf32>
    %80 = arith.addf %70, %79 : vector<64x128xf32>
    %c0_56 = arith.constant 0 : index
    %c0_57 = arith.constant 0 : index
    %c0_58 = arith.constant 0 : index
    %c0_59 = arith.constant 0 : index
    %81 = vector.load %arg1[%c0_56, %c0_57, %c0_58, %c0_59] : memref<4x9x9x128xbf16, #tpu.memory_space<vmem>>, vector<1x9x9x128xbf16>
    %82 = vector.shape_cast %81 : vector<1x9x9x128xbf16> to vector<9x9x128xbf16>
    %83 = arith.extf %82 : vector<9x9x128xbf16> to vector<9x9x128xf32>
    %84 = vector.extract_strided_slice %83 {offsets = [1, 1, 0], sizes = [8, 8, 128], strides = [1, 1, 1]} : vector<9x9x128xf32> to vector<8x8x128xf32>
    %85 = vector.shape_cast %84 : vector<8x8x128xf32> to vector<64x128xf32>
    %86 = arith.truncf %85 : vector<64x128xf32> to vector<64x128xbf16>
    %c8 = arith.constant 8 : index
    %c0_60 = arith.constant 0 : index
    %c0_61 = arith.constant 0 : index
    %87 = vector.load %arg2[%c8, %c0_60, %c0_61] : memref<9x128x128xbf16, #tpu.memory_space<vmem>>, vector<1x128x128xbf16>
    %88 = vector.shape_cast %87 : vector<1x128x128xbf16> to vector<128x128xbf16>
    %cst_62 = arith.constant dense<0.000000e+00> : vector<64x128xf32>
    %89 = tpu.matmul %86, %88, %cst_62 {dimension_numbers = #tpu.dot_dimension_numbers<[1], [0], [0], [1], [0, 0, 1, 1], [], []>} : vector<64x128xbf16>, vector<128x128xbf16>, vector<64x128xf32> -> vector<64x128xf32>
    %90 = arith.addf %80, %89 : vector<64x128xf32>
    %c0_63 = arith.constant 0 : index
    %c0_64 = arith.constant 0 : index
    %91 = vector.load %arg3[%c0_63, %c0_64] : memref<1x128xf32, #tpu.memory_space<vmem>>, vector<1x128xf32>
    %92 = vector.broadcast %91 : vector<1x128xf32> to vector<64x128xf32>
    %93 = arith.addf %90, %92 : vector<64x128xf32>
    %cst_65 = arith.constant 2.000000e+01 : f32
    %94 = vector.broadcast %cst_65 : f32 to vector<64x128xf32>
    %95 = arith.minimumf %93, %94 : vector<64x128xf32>
    %96 = math.exp %95 : vector<64x128xf32>
    %cst_66 = arith.constant 2.000000e+00 : f32
    %97 = vector.broadcast %cst_66 : f32 to vector<64x128xf32>
    %98 = arith.addf %96, %97 : vector<64x128xf32>
    %99 = arith.mulf %96, %98 : vector<64x128xf32>
    %100 = arith.mulf %93, %99 : vector<64x128xf32>
    %cst_67 = arith.constant 2.000000e+00 : f32
    %101 = vector.broadcast %cst_67 : f32 to vector<64x128xf32>
    %102 = arith.addf %99, %101 : vector<64x128xf32>
    %103 = tpu.reciprocal %102 {approx = true} : vector<64x128xf32> -> vector<64x128xf32>
    %104 = arith.mulf %100, %103 : vector<64x128xf32>
    %105 = vector.shape_cast %104 : vector<64x128xf32> to vector<8x8x128xf32>
    %106 = arith.truncf %105 : vector<8x8x128xf32> to vector<8x8x128xbf16>
    %c0_68 = arith.constant 0 : index
    %c0_69 = arith.constant 0 : index
    %c0_70 = arith.constant 0 : index
    %c0_71 = arith.constant 0 : index
    %107 = vector.load %arg4[%c0_68, %c0_69, %c0_70, %c0_71] : memref<1x8x8x128xbf16, #tpu.memory_space<vmem>>, vector<1x8x8x128xbf16>
    %108 = vector.shape_cast %107 : vector<1x8x8x128xbf16> to vector<8x8x128xbf16>
    %109 = vector.shape_cast %106 : vector<8x8x128xbf16> to vector<1x8x8x128xbf16>
    tpu.vector_store %arg4[%c0_68, %c0_69, %c0_70, %c0_71], %109 {strides = array<i32>} : memref<1x8x8x128xbf16, #tpu.memory_space<vmem>>, vector<1x8x8x128xbf16>,
    return
  }
  func.func @transform_0(%arg0: i32) -> (i32, i32, i32, i32) {
    %c0_i32 = arith.constant 0 : i32
    %c0_i32_0 = arith.constant 0 : i32
    %c0_i32_1 = arith.constant 0 : i32
    %c0_i32_2 = arith.constant 0 : i32
    return %arg0, %c0_i32, %c0_i32_0, %c0_i32_1 : i32, i32, i32, i32
  }
  func.func @transform_1(%arg0: i32) -> (i32, i32, i32) {
    %c0_i32 = arith.constant 0 : i32
    %c0_i32_0 = arith.constant 0 : i32
    %c0_i32_1 = arith.constant 0 : i32
    %c0_i32_2 = arith.constant 0 : i32
    return %c0_i32, %c0_i32_0, %c0_i32_1 : i32, i32, i32
  }
  func.func @transform_2(%arg0: i32) -> (i32, i32) {
    %c0_i32 = arith.constant 0 : i32
    %c0_i32_0 = arith.constant 0 : i32
    %c0_i32_1 = arith.constant 0 : i32
    return %c0_i32, %c0_i32_0 : i32, i32
  }
  func.func @transform_3(%arg0: i32) -> (i32, i32, i32, i32) {
    %c0_i32 = arith.constant 0 : i32
    %c0_i32_0 = arith.constant 0 : i32
    %c0_i32_1 = arith.constant 0 : i32
    %c0_i32_2 = arith.constant 0 : i32
    return %arg0, %c0_i32, %c0_i32_0, %c0_i32_1 : i32, i32, i32, i32
  }
}

module attributes {stable_mosaic.version = 11 : i64} {
  func.func @_split_kernel(%arg0: i32, %arg1: memref<128x128xbf16, #tpu.memory_space<vmem>>, %arg2: memref<128x128xbf16, #tpu.memory_space<vmem>>, %arg3: memref<1x128xf32, #tpu.memory_space<vmem>>, %arg4: memref<128x128xbf16, #tpu.memory_space<vmem>>, %arg5: memref<1x128xf32, #tpu.memory_space<vmem>>, %arg6: memref<128x128xbf16, #tpu.memory_space<vmem>>, %arg7: memref<128x128xbf16, #tpu.memory_space<vmem>>) attributes {dimension_semantics = [#tpu.dimension_semantics<parallel>], iteration_bounds = array<i64: 1>, scalar_prefetch = 0 : i64, scratch_operands = 0 : i64, tpu.core_type = #tpu.core_type<tc>, window_params = [{transform_indices = @transform_0, window_bounds = array<i64: 128, 128>}, {pipeline_mode = #tpu.pipeline_mode<synchronous>, transform_indices = @transform_1, window_bounds = array<i64: 128, 128>}, {pipeline_mode = #tpu.pipeline_mode<synchronous>, transform_indices = @transform_2, window_bounds = array<i64: 1, 128>}, {pipeline_mode = #tpu.pipeline_mode<synchronous>, transform_indices = @transform_3, window_bounds = array<i64: 128, 128>}, {pipeline_mode = #tpu.pipeline_mode<synchronous>, transform_indices = @transform_4, window_bounds = array<i64: 1, 128>}, {transform_indices = @transform_5, window_bounds = array<i64: 128, 128>}, {transform_indices = @transform_6, window_bounds = array<i64: 128, 128>}]} {
    %c0 = arith.constant 0 : index
    %c0_0 = arith.constant 0 : index
    %0 = vector.load %arg1[%c0, %c0_0] : memref<128x128xbf16, #tpu.memory_space<vmem>>, vector<128x128xbf16>
    %c0_1 = arith.constant 0 : index
    %c0_2 = arith.constant 0 : index
    %1 = vector.load %arg2[%c0_1, %c0_2] : memref<128x128xbf16, #tpu.memory_space<vmem>>, vector<128x128xbf16>
    %cst = arith.constant dense<0.000000e+00> : vector<128x128xf32>
    %2 = tpu.matmul %0, %1, %cst {dimension_numbers = #tpu.dot_dimension_numbers<[1], [0], [0], [1], [0, 0, 1, 1], [], []>} : vector<128x128xbf16>, vector<128x128xbf16>, vector<128x128xf32> -> vector<128x128xf32>
    %c0_3 = arith.constant 0 : index
    %c0_4 = arith.constant 0 : index
    %3 = vector.load %arg3[%c0_3, %c0_4] : memref<1x128xf32, #tpu.memory_space<vmem>>, vector<1x128xf32>
    %4 = vector.broadcast %3 : vector<1x128xf32> to vector<128x128xf32>
    %5 = arith.addf %2, %4 : vector<128x128xf32>
    %c0_5 = arith.constant 0 : index
    %c0_6 = arith.constant 0 : index
    %6 = vector.load %arg4[%c0_5, %c0_6] : memref<128x128xbf16, #tpu.memory_space<vmem>>, vector<128x128xbf16>
    %cst_7 = arith.constant dense<0.000000e+00> : vector<128x128xf32>
    %7 = tpu.matmul %0, %6, %cst_7 {dimension_numbers = #tpu.dot_dimension_numbers<[1], [0], [0], [1], [0, 0, 1, 1], [], []>} : vector<128x128xbf16>, vector<128x128xbf16>, vector<128x128xf32> -> vector<128x128xf32>
    %c0_8 = arith.constant 0 : index
    %c0_9 = arith.constant 0 : index
    %8 = vector.load %arg5[%c0_8, %c0_9] : memref<1x128xf32, #tpu.memory_space<vmem>>, vector<1x128xf32>
    %9 = vector.broadcast %8 : vector<1x128xf32> to vector<128x128xf32>
    %10 = arith.addf %7, %9 : vector<128x128xf32>
    %cst_10 = arith.constant 2.000000e+01 : f32
    %11 = vector.broadcast %cst_10 : f32 to vector<128x128xf32>
    %12 = arith.minimumf %5, %11 : vector<128x128xf32>
    %13 = math.exp %12 : vector<128x128xf32>
    %cst_11 = arith.constant 2.000000e+00 : f32
    %14 = vector.broadcast %cst_11 : f32 to vector<128x128xf32>
    %15 = arith.addf %13, %14 : vector<128x128xf32>
    %16 = arith.mulf %13, %15 : vector<128x128xf32>
    %17 = arith.mulf %5, %16 : vector<128x128xf32>
    %cst_12 = arith.constant 2.000000e+00 : f32
    %18 = vector.broadcast %cst_12 : f32 to vector<128x128xf32>
    %19 = arith.addf %16, %18 : vector<128x128xf32>
    %20 = tpu.reciprocal %19 {approx = true} : vector<128x128xf32> -> vector<128x128xf32>
    %21 = arith.mulf %17, %20 : vector<128x128xf32>
    %22 = arith.truncf %21 : vector<128x128xf32> to vector<128x128xbf16>
    %c0_13 = arith.constant 0 : index
    %c0_14 = arith.constant 0 : index
    %23 = vector.load %arg6[%c0_13, %c0_14] : memref<128x128xbf16, #tpu.memory_space<vmem>>, vector<128x128xbf16>
    tpu.vector_store %arg6[%c0_13, %c0_14], %22 {strides = array<i32>} : memref<128x128xbf16, #tpu.memory_space<vmem>>, vector<128x128xbf16>,
    %cst_15 = arith.constant 2.000000e+01 : f32
    %24 = vector.broadcast %cst_15 : f32 to vector<128x128xf32>
    %25 = arith.minimumf %10, %24 : vector<128x128xf32>
    %26 = math.exp %25 : vector<128x128xf32>
    %cst_16 = arith.constant 2.000000e+00 : f32
    %27 = vector.broadcast %cst_16 : f32 to vector<128x128xf32>
    %28 = arith.addf %26, %27 : vector<128x128xf32>
    %29 = arith.mulf %26, %28 : vector<128x128xf32>
    %30 = arith.mulf %10, %29 : vector<128x128xf32>
    %cst_17 = arith.constant 2.000000e+00 : f32
    %31 = vector.broadcast %cst_17 : f32 to vector<128x128xf32>
    %32 = arith.addf %29, %31 : vector<128x128xf32>
    %33 = tpu.reciprocal %32 {approx = true} : vector<128x128xf32> -> vector<128x128xf32>
    %34 = arith.mulf %30, %33 : vector<128x128xf32>
    %35 = arith.truncf %34 : vector<128x128xf32> to vector<128x128xbf16>
    %c0_18 = arith.constant 0 : index
    %c0_19 = arith.constant 0 : index
    %36 = vector.load %arg7[%c0_18, %c0_19] : memref<128x128xbf16, #tpu.memory_space<vmem>>, vector<128x128xbf16>
    tpu.vector_store %arg7[%c0_18, %c0_19], %35 {strides = array<i32>} : memref<128x128xbf16, #tpu.memory_space<vmem>>, vector<128x128xbf16>,
    return
  }
  func.func @transform_0(%arg0: i32) -> (i32, i32) {
    %c0_i32 = arith.constant 0 : i32
    %c0_i32_0 = arith.constant 0 : i32
    return %arg0, %c0_i32 : i32, i32
  }
  func.func @transform_1(%arg0: i32) -> (i32, i32) {
    %c0_i32 = arith.constant 0 : i32
    %c0_i32_0 = arith.constant 0 : i32
    %c0_i32_1 = arith.constant 0 : i32
    return %c0_i32, %c0_i32_0 : i32, i32
  }
  func.func @transform_2(%arg0: i32) -> (i32, i32) {
    %c0_i32 = arith.constant 0 : i32
    %c0_i32_0 = arith.constant 0 : i32
    %c0_i32_1 = arith.constant 0 : i32
    return %c0_i32, %c0_i32_0 : i32, i32
  }
  func.func @transform_3(%arg0: i32) -> (i32, i32) {
    %c0_i32 = arith.constant 0 : i32
    %c0_i32_0 = arith.constant 0 : i32
    %c0_i32_1 = arith.constant 0 : i32
    return %c0_i32, %c0_i32_0 : i32, i32
  }
  func.func @transform_4(%arg0: i32) -> (i32, i32) {
    %c0_i32 = arith.constant 0 : i32
    %c0_i32_0 = arith.constant 0 : i32
    %c0_i32_1 = arith.constant 0 : i32
    return %c0_i32, %c0_i32_0 : i32, i32
  }
  func.func @transform_5(%arg0: i32) -> (i32, i32) {
    %c0_i32 = arith.constant 0 : i32
    %c0_i32_0 = arith.constant 0 : i32
    return %arg0, %c0_i32 : i32, i32
  }
  func.func @transform_6(%arg0: i32) -> (i32, i32) {
    %c0_i32 = arith.constant 0 : i32
    %c0_i32_0 = arith.constant 0 : i32
    return %arg0, %c0_i32 : i32, i32
  }
}

module attributes {stable_mosaic.version = 11 : i64} {
  func.func @_resblock_kernel(%arg0: i32, %arg1: memref<1x8x8x128xbf16, #tpu.memory_space<vmem>>, %arg2: memref<128x128xbf16, #tpu.memory_space<vmem>>, %arg3: memref<1x128xf32, #tpu.memory_space<vmem>>, %arg4: memref<9x128x128xbf16, #tpu.memory_space<vmem>>, %arg5: memref<1x128xf32, #tpu.memory_space<vmem>>, %arg6: memref<1x8x8x128xbf16, #tpu.memory_space<vmem>>, %arg7: memref<10x10x128xf32, #tpu.memory_space<vmem>>) attributes {dimension_semantics = [#tpu.dimension_semantics<parallel>], iteration_bounds = array<i64: 2>, scalar_prefetch = 0 : i64, scratch_operands = 1 : i64, tpu.core_type = #tpu.core_type<tc>, window_params = [{transform_indices = @transform_0, window_bounds = array<i64: 1, 8, 8, 128>}, {pipeline_mode = #tpu.pipeline_mode<synchronous>, transform_indices = @transform_1, window_bounds = array<i64: 128, 128>}, {pipeline_mode = #tpu.pipeline_mode<synchronous>, transform_indices = @transform_2, window_bounds = array<i64: 1, 128>}, {pipeline_mode = #tpu.pipeline_mode<synchronous>, transform_indices = @transform_3, window_bounds = array<i64: 9, 128, 128>}, {pipeline_mode = #tpu.pipeline_mode<synchronous>, transform_indices = @transform_4, window_bounds = array<i64: 1, 128>}, {transform_indices = @transform_5, window_bounds = array<i64: 1, 8, 8, 128>}]} {
    %c0 = arith.constant 0 : index
    %c0_0 = arith.constant 0 : index
    %c0_1 = arith.constant 0 : index
    %c0_2 = arith.constant 0 : index
    %0 = vector.load %arg1[%c0, %c0_0, %c0_1, %c0_2] : memref<1x8x8x128xbf16, #tpu.memory_space<vmem>>, vector<1x8x8x128xbf16>
    %1 = vector.shape_cast %0 : vector<1x8x8x128xbf16> to vector<8x8x128xbf16>
    %2 = arith.extf %1 : vector<8x8x128xbf16> to vector<8x8x128xf32>
    %3 = vector.shape_cast %2 : vector<8x8x128xf32> to vector<64x128xf32>
    %4 = arith.truncf %3 : vector<64x128xf32> to vector<64x128xbf16>
    %c0_3 = arith.constant 0 : index
    %c0_4 = arith.constant 0 : index
    %5 = vector.load %arg2[%c0_3, %c0_4] : memref<128x128xbf16, #tpu.memory_space<vmem>>, vector<128x128xbf16>
    %cst = arith.constant dense<0.000000e+00> : vector<64x128xf32>
    %6 = tpu.matmul %4, %5, %cst {dimension_numbers = #tpu.dot_dimension_numbers<[1], [0], [0], [1], [0, 0, 1, 1], [], []>} : vector<64x128xbf16>, vector<128x128xbf16>, vector<64x128xf32> -> vector<64x128xf32>
    %c0_5 = arith.constant 0 : index
    %c0_6 = arith.constant 0 : index
    %7 = vector.load %arg3[%c0_5, %c0_6] : memref<1x128xf32, #tpu.memory_space<vmem>>, vector<1x128xf32>
    %8 = vector.broadcast %7 : vector<1x128xf32> to vector<64x128xf32>
    %9 = arith.addf %6, %8 : vector<64x128xf32>
    %cst_7 = arith.constant 2.000000e+01 : f32
    %10 = vector.broadcast %cst_7 : f32 to vector<64x128xf32>
    %11 = arith.minimumf %9, %10 : vector<64x128xf32>
    %12 = math.exp %11 : vector<64x128xf32>
    %cst_8 = arith.constant 2.000000e+00 : f32
    %13 = vector.broadcast %cst_8 : f32 to vector<64x128xf32>
    %14 = arith.addf %12, %13 : vector<64x128xf32>
    %15 = arith.mulf %12, %14 : vector<64x128xf32>
    %16 = arith.mulf %9, %15 : vector<64x128xf32>
    %cst_9 = arith.constant 2.000000e+00 : f32
    %17 = vector.broadcast %cst_9 : f32 to vector<64x128xf32>
    %18 = arith.addf %15, %17 : vector<64x128xf32>
    %19 = tpu.reciprocal %18 {approx = true} : vector<64x128xf32> -> vector<64x128xf32>
    %20 = arith.mulf %16, %19 : vector<64x128xf32>
    %cst_10 = arith.constant 0.000000e+00 : f32
    %21 = vector.broadcast %cst_10 : f32 to vector<10x10x128xf32>
    %c0_11 = arith.constant 0 : index
    %c0_12 = arith.constant 0 : index
    %c0_13 = arith.constant 0 : index
    %22 = vector.load %arg7[%c0_11, %c0_12, %c0_13] : memref<10x10x128xf32, #tpu.memory_space<vmem>>, vector<10x10x128xf32>
    tpu.vector_store %arg7[%c0_11, %c0_12, %c0_13], %21 {strides = array<i32>} : memref<10x10x128xf32, #tpu.memory_space<vmem>>, vector<10x10x128xf32>,
    %23 = vector.shape_cast %20 : vector<64x128xf32> to vector<8x8x128xf32>
    %c1 = arith.constant 1 : index
    %c1_14 = arith.constant 1 : index
    %c0_15 = arith.constant 0 : index
    %24 = vector.load %arg7[%c1, %c1_14, %c0_15] : memref<10x10x128xf32, #tpu.memory_space<vmem>>, vector<8x8x128xf32>
    tpu.vector_store %arg7[%c1, %c1_14, %c0_15], %23 {strides = array<i32>} : memref<10x10x128xf32, #tpu.memory_space<vmem>>, vector<8x8x128xf32>,
    %cst_16 = arith.constant 0.000000e+00 : f32
    %25 = vector.broadcast %cst_16 : f32 to vector<64x128xf32>
    %c0_17 = arith.constant 0 : index
    %c0_18 = arith.constant 0 : index
    %c0_19 = arith.constant 0 : index
    %26 = vector.load %arg7[%c0_17, %c0_18, %c0_19] : memref<10x10x128xf32, #tpu.memory_space<vmem>>, vector<8x8x128xf32>
    %27 = vector.shape_cast %26 : vector<8x8x128xf32> to vector<64x128xf32>
    %28 = arith.truncf %27 : vector<64x128xf32> to vector<64x128xbf16>
    %c0_20 = arith.constant 0 : index
    %c0_21 = arith.constant 0 : index
    %c0_22 = arith.constant 0 : index
    %29 = vector.load %arg4[%c0_20, %c0_21, %c0_22] : memref<9x128x128xbf16, #tpu.memory_space<vmem>>, vector<1x128x128xbf16>
    %30 = vector.shape_cast %29 : vector<1x128x128xbf16> to vector<128x128xbf16>
    %cst_23 = arith.constant dense<0.000000e+00> : vector<64x128xf32>
    %31 = tpu.matmul %28, %30, %cst_23 {dimension_numbers = #tpu.dot_dimension_numbers<[1], [0], [0], [1], [0, 0, 1, 1], [], []>} : vector<64x128xbf16>, vector<128x128xbf16>, vector<64x128xf32> -> vector<64x128xf32>
    %32 = arith.addf %25, %31 : vector<64x128xf32>
    %c0_24 = arith.constant 0 : index
    %c1_25 = arith.constant 1 : index
    %c0_26 = arith.constant 0 : index
    %33 = vector.load %arg7[%c0_24, %c1_25, %c0_26] : memref<10x10x128xf32, #tpu.memory_space<vmem>>, vector<8x8x128xf32>
    %34 = vector.shape_cast %33 : vector<8x8x128xf32> to vector<64x128xf32>
    %35 = arith.truncf %34 : vector<64x128xf32> to vector<64x128xbf16>
    %c1_27 = arith.constant 1 : index
    %c0_28 = arith.constant 0 : index
    %c0_29 = arith.constant 0 : index
    %36 = vector.load %arg4[%c1_27, %c0_28, %c0_29] : memref<9x128x128xbf16, #tpu.memory_space<vmem>>, vector<1x128x128xbf16>
    %37 = vector.shape_cast %36 : vector<1x128x128xbf16> to vector<128x128xbf16>
    %cst_30 = arith.constant dense<0.000000e+00> : vector<64x128xf32>
    %38 = tpu.matmul %35, %37, %cst_30 {dimension_numbers = #tpu.dot_dimension_numbers<[1], [0], [0], [1], [0, 0, 1, 1], [], []>} : vector<64x128xbf16>, vector<128x128xbf16>, vector<64x128xf32> -> vector<64x128xf32>
    %39 = arith.addf %32, %38 : vector<64x128xf32>
    %c0_31 = arith.constant 0 : index
    %c2 = arith.constant 2 : index
    %c0_32 = arith.constant 0 : index
    %40 = vector.load %arg7[%c0_31, %c2, %c0_32] : memref<10x10x128xf32, #tpu.memory_space<vmem>>, vector<8x8x128xf32>
    %41 = vector.shape_cast %40 : vector<8x8x128xf32> to vector<64x128xf32>
    %42 = arith.truncf %41 : vector<64x128xf32> to vector<64x128xbf16>
    %c2_33 = arith.constant 2 : index
    %c0_34 = arith.constant 0 : index
    %c0_35 = arith.constant 0 : index
    %43 = vector.load %arg4[%c2_33, %c0_34, %c0_35] : memref<9x128x128xbf16, #tpu.memory_space<vmem>>, vector<1x128x128xbf16>
    %44 = vector.shape_cast %43 : vector<1x128x128xbf16> to vector<128x128xbf16>
    %cst_36 = arith.constant dense<0.000000e+00> : vector<64x128xf32>
    %45 = tpu.matmul %42, %44, %cst_36 {dimension_numbers = #tpu.dot_dimension_numbers<[1], [0], [0], [1], [0, 0, 1, 1], [], []>} : vector<64x128xbf16>, vector<128x128xbf16>, vector<64x128xf32> -> vector<64x128xf32>
    %46 = arith.addf %39, %45 : vector<64x128xf32>
    %c1_37 = arith.constant 1 : index
    %c0_38 = arith.constant 0 : index
    %c0_39 = arith.constant 0 : index
    %47 = vector.load %arg7[%c1_37, %c0_38, %c0_39] : memref<10x10x128xf32, #tpu.memory_space<vmem>>, vector<8x8x128xf32>
    %48 = vector.shape_cast %47 : vector<8x8x128xf32> to vector<64x128xf32>
    %49 = arith.truncf %48 : vector<64x128xf32> to vector<64x128xbf16>
    %c3 = arith.constant 3 : index
    %c0_40 = arith.constant 0 : index
    %c0_41 = arith.constant 0 : index
    %50 = vector.load %arg4[%c3, %c0_40, %c0_41] : memref<9x128x128xbf16, #tpu.memory_space<vmem>>, vector<1x128x128xbf16>
    %51 = vector.shape_cast %50 : vector<1x128x128xbf16> to vector<128x128xbf16>
    %cst_42 = arith.constant dense<0.000000e+00> : vector<64x128xf32>
    %52 = tpu.matmul %49, %51, %cst_42 {dimension_numbers = #tpu.dot_dimension_numbers<[1], [0], [0], [1], [0, 0, 1, 1], [], []>} : vector<64x128xbf16>, vector<128x128xbf16>, vector<64x128xf32> -> vector<64x128xf32>
    %53 = arith.addf %46, %52 : vector<64x128xf32>
    %c1_43 = arith.constant 1 : index
    %c1_44 = arith.constant 1 : index
    %c0_45 = arith.constant 0 : index
    %54 = vector.load %arg7[%c1_43, %c1_44, %c0_45] : memref<10x10x128xf32, #tpu.memory_space<vmem>>, vector<8x8x128xf32>
    %55 = vector.shape_cast %54 : vector<8x8x128xf32> to vector<64x128xf32>
    %56 = arith.truncf %55 : vector<64x128xf32> to vector<64x128xbf16>
    %c4 = arith.constant 4 : index
    %c0_46 = arith.constant 0 : index
    %c0_47 = arith.constant 0 : index
    %57 = vector.load %arg4[%c4, %c0_46, %c0_47] : memref<9x128x128xbf16, #tpu.memory_space<vmem>>, vector<1x128x128xbf16>
    %58 = vector.shape_cast %57 : vector<1x128x128xbf16> to vector<128x128xbf16>
    %cst_48 = arith.constant dense<0.000000e+00> : vector<64x128xf32>
    %59 = tpu.matmul %56, %58, %cst_48 {dimension_numbers = #tpu.dot_dimension_numbers<[1], [0], [0], [1], [0, 0, 1, 1], [], []>} : vector<64x128xbf16>, vector<128x128xbf16>, vector<64x128xf32> -> vector<64x128xf32>
    %60 = arith.addf %53, %59 : vector<64x128xf32>
    %c1_49 = arith.constant 1 : index
    %c2_50 = arith.constant 2 : index
    %c0_51 = arith.constant 0 : index
    %61 = vector.load %arg7[%c1_49, %c2_50, %c0_51] : memref<10x10x128xf32, #tpu.memory_space<vmem>>, vector<8x8x128xf32>
    %62 = vector.shape_cast %61 : vector<8x8x128xf32> to vector<64x128xf32>
    %63 = arith.truncf %62 : vector<64x128xf32> to vector<64x128xbf16>
    %c5 = arith.constant 5 : index
    %c0_52 = arith.constant 0 : index
    %c0_53 = arith.constant 0 : index
    %64 = vector.load %arg4[%c5, %c0_52, %c0_53] : memref<9x128x128xbf16, #tpu.memory_space<vmem>>, vector<1x128x128xbf16>
    %65 = vector.shape_cast %64 : vector<1x128x128xbf16> to vector<128x128xbf16>
    %cst_54 = arith.constant dense<0.000000e+00> : vector<64x128xf32>
    %66 = tpu.matmul %63, %65, %cst_54 {dimension_numbers = #tpu.dot_dimension_numbers<[1], [0], [0], [1], [0, 0, 1, 1], [], []>} : vector<64x128xbf16>, vector<128x128xbf16>, vector<64x128xf32> -> vector<64x128xf32>
    %67 = arith.addf %60, %66 : vector<64x128xf32>
    %c2_55 = arith.constant 2 : index
    %c0_56 = arith.constant 0 : index
    %c0_57 = arith.constant 0 : index
    %68 = vector.load %arg7[%c2_55, %c0_56, %c0_57] : memref<10x10x128xf32, #tpu.memory_space<vmem>>, vector<8x8x128xf32>
    %69 = vector.shape_cast %68 : vector<8x8x128xf32> to vector<64x128xf32>
    %70 = arith.truncf %69 : vector<64x128xf32> to vector<64x128xbf16>
    %c6 = arith.constant 6 : index
    %c0_58 = arith.constant 0 : index
    %c0_59 = arith.constant 0 : index
    %71 = vector.load %arg4[%c6, %c0_58, %c0_59] : memref<9x128x128xbf16, #tpu.memory_space<vmem>>, vector<1x128x128xbf16>
    %72 = vector.shape_cast %71 : vector<1x128x128xbf16> to vector<128x128xbf16>
    %cst_60 = arith.constant dense<0.000000e+00> : vector<64x128xf32>
    %73 = tpu.matmul %70, %72, %cst_60 {dimension_numbers = #tpu.dot_dimension_numbers<[1], [0], [0], [1], [0, 0, 1, 1], [], []>} : vector<64x128xbf16>, vector<128x128xbf16>, vector<64x128xf32> -> vector<64x128xf32>
    %74 = arith.addf %67, %73 : vector<64x128xf32>
    %c2_61 = arith.constant 2 : index
    %c1_62 = arith.constant 1 : index
    %c0_63 = arith.constant 0 : index
    %75 = vector.load %arg7[%c2_61, %c1_62, %c0_63] : memref<10x10x128xf32, #tpu.memory_space<vmem>>, vector<8x8x128xf32>
    %76 = vector.shape_cast %75 : vector<8x8x128xf32> to vector<64x128xf32>
    %77 = arith.truncf %76 : vector<64x128xf32> to vector<64x128xbf16>
    %c7 = arith.constant 7 : index
    %c0_64 = arith.constant 0 : index
    %c0_65 = arith.constant 0 : index
    %78 = vector.load %arg4[%c7, %c0_64, %c0_65] : memref<9x128x128xbf16, #tpu.memory_space<vmem>>, vector<1x128x128xbf16>
    %79 = vector.shape_cast %78 : vector<1x128x128xbf16> to vector<128x128xbf16>
    %cst_66 = arith.constant dense<0.000000e+00> : vector<64x128xf32>
    %80 = tpu.matmul %77, %79, %cst_66 {dimension_numbers = #tpu.dot_dimension_numbers<[1], [0], [0], [1], [0, 0, 1, 1], [], []>} : vector<64x128xbf16>, vector<128x128xbf16>, vector<64x128xf32> -> vector<64x128xf32>
    %81 = arith.addf %74, %80 : vector<64x128xf32>
    %c2_67 = arith.constant 2 : index
    %c2_68 = arith.constant 2 : index
    %c0_69 = arith.constant 0 : index
    %82 = vector.load %arg7[%c2_67, %c2_68, %c0_69] : memref<10x10x128xf32, #tpu.memory_space<vmem>>, vector<8x8x128xf32>
    %83 = vector.shape_cast %82 : vector<8x8x128xf32> to vector<64x128xf32>
    %84 = arith.truncf %83 : vector<64x128xf32> to vector<64x128xbf16>
    %c8 = arith.constant 8 : index
    %c0_70 = arith.constant 0 : index
    %c0_71 = arith.constant 0 : index
    %85 = vector.load %arg4[%c8, %c0_70, %c0_71] : memref<9x128x128xbf16, #tpu.memory_space<vmem>>, vector<1x128x128xbf16>
    %86 = vector.shape_cast %85 : vector<1x128x128xbf16> to vector<128x128xbf16>
    %cst_72 = arith.constant dense<0.000000e+00> : vector<64x128xf32>
    %87 = tpu.matmul %84, %86, %cst_72 {dimension_numbers = #tpu.dot_dimension_numbers<[1], [0], [0], [1], [0, 0, 1, 1], [], []>} : vector<64x128xbf16>, vector<128x128xbf16>, vector<64x128xf32> -> vector<64x128xf32>
    %88 = arith.addf %81, %87 : vector<64x128xf32>
    %c0_73 = arith.constant 0 : index
    %c0_74 = arith.constant 0 : index
    %89 = vector.load %arg5[%c0_73, %c0_74] : memref<1x128xf32, #tpu.memory_space<vmem>>, vector<1x128xf32>
    %90 = vector.broadcast %89 : vector<1x128xf32> to vector<64x128xf32>
    %91 = arith.addf %88, %90 : vector<64x128xf32>
    %cst_75 = arith.constant 2.000000e+01 : f32
    %92 = vector.broadcast %cst_75 : f32 to vector<64x128xf32>
    %93 = arith.minimumf %91, %92 : vector<64x128xf32>
    %94 = math.exp %93 : vector<64x128xf32>
    %cst_76 = arith.constant 2.000000e+00 : f32
    %95 = vector.broadcast %cst_76 : f32 to vector<64x128xf32>
    %96 = arith.addf %94, %95 : vector<64x128xf32>
    %97 = arith.mulf %94, %96 : vector<64x128xf32>
    %98 = arith.mulf %91, %97 : vector<64x128xf32>
    %cst_77 = arith.constant 2.000000e+00 : f32
    %99 = vector.broadcast %cst_77 : f32 to vector<64x128xf32>
    %100 = arith.addf %97, %99 : vector<64x128xf32>
    %101 = tpu.reciprocal %100 {approx = true} : vector<64x128xf32> -> vector<64x128xf32>
    %102 = arith.mulf %98, %101 : vector<64x128xf32>
    %103 = arith.addf %3, %102 : vector<64x128xf32>
    %104 = vector.shape_cast %103 : vector<64x128xf32> to vector<8x8x128xf32>
    %105 = arith.truncf %104 : vector<8x8x128xf32> to vector<8x8x128xbf16>
    %c0_78 = arith.constant 0 : index
    %c0_79 = arith.constant 0 : index
    %c0_80 = arith.constant 0 : index
    %c0_81 = arith.constant 0 : index
    %106 = vector.load %arg6[%c0_78, %c0_79, %c0_80, %c0_81] : memref<1x8x8x128xbf16, #tpu.memory_space<vmem>>, vector<1x8x8x128xbf16>
    %107 = vector.shape_cast %106 : vector<1x8x8x128xbf16> to vector<8x8x128xbf16>
    %108 = vector.shape_cast %105 : vector<8x8x128xbf16> to vector<1x8x8x128xbf16>
    tpu.vector_store %arg6[%c0_78, %c0_79, %c0_80, %c0_81], %108 {strides = array<i32>} : memref<1x8x8x128xbf16, #tpu.memory_space<vmem>>, vector<1x8x8x128xbf16>,
    return
  }
  func.func @transform_0(%arg0: i32) -> (i32, i32, i32, i32) {
    %c0_i32 = arith.constant 0 : i32
    %c0_i32_0 = arith.constant 0 : i32
    %c0_i32_1 = arith.constant 0 : i32
    %c0_i32_2 = arith.constant 0 : i32
    return %arg0, %c0_i32, %c0_i32_0, %c0_i32_1 : i32, i32, i32, i32
  }
  func.func @transform_1(%arg0: i32) -> (i32, i32) {
    %c0_i32 = arith.constant 0 : i32
    %c0_i32_0 = arith.constant 0 : i32
    %c0_i32_1 = arith.constant 0 : i32
    return %c0_i32, %c0_i32_0 : i32, i32
  }
  func.func @transform_2(%arg0: i32) -> (i32, i32) {
    %c0_i32 = arith.constant 0 : i32
    %c0_i32_0 = arith.constant 0 : i32
    %c0_i32_1 = arith.constant 0 : i32
    return %c0_i32, %c0_i32_0 : i32, i32
  }
  func.func @transform_3(%arg0: i32) -> (i32, i32, i32) {
    %c0_i32 = arith.constant 0 : i32
    %c0_i32_0 = arith.constant 0 : i32
    %c0_i32_1 = arith.constant 0 : i32
    %c0_i32_2 = arith.constant 0 : i32
    return %c0_i32, %c0_i32_0, %c0_i32_1 : i32, i32, i32
  }
  func.func @transform_4(%arg0: i32) -> (i32, i32) {
    %c0_i32 = arith.constant 0 : i32
    %c0_i32_0 = arith.constant 0 : i32
    %c0_i32_1 = arith.constant 0 : i32
    return %c0_i32, %c0_i32_0 : i32, i32
  }
  func.func @transform_5(%arg0: i32) -> (i32, i32, i32, i32) {
    %c0_i32 = arith.constant 0 : i32
    %c0_i32_0 = arith.constant 0 : i32
    %c0_i32_1 = arith.constant 0 : i32
    %c0_i32_2 = arith.constant 0 : i32
    return %arg0, %c0_i32, %c0_i32_0, %c0_i32_1 : i32, i32, i32, i32
  }
}

module attributes {stable_mosaic.version = 11 : i64} {
  func.func @_conv1x1_kernel(%arg0: i32, %arg1: memref<128x128xbf16, #tpu.memory_space<vmem>>, %arg2: memref<128x128xbf16, #tpu.memory_space<vmem>>, %arg3: memref<1x128xf32, #tpu.memory_space<vmem>>, %arg4: memref<128x128xbf16, #tpu.memory_space<vmem>>) attributes {dimension_semantics = [#tpu.dimension_semantics<parallel>], iteration_bounds = array<i64: 1>, scalar_prefetch = 0 : i64, scratch_operands = 0 : i64, tpu.core_type = #tpu.core_type<tc>, window_params = [{transform_indices = @transform_0, window_bounds = array<i64: 128, 128>}, {pipeline_mode = #tpu.pipeline_mode<synchronous>, transform_indices = @transform_1, window_bounds = array<i64: 128, 128>}, {pipeline_mode = #tpu.pipeline_mode<synchronous>, transform_indices = @transform_2, window_bounds = array<i64: 1, 128>}, {transform_indices = @transform_3, window_bounds = array<i64: 128, 128>}]} {
    %c0 = arith.constant 0 : index
    %c0_0 = arith.constant 0 : index
    %0 = vector.load %arg1[%c0, %c0_0] : memref<128x128xbf16, #tpu.memory_space<vmem>>, vector<128x128xbf16>
    %c0_1 = arith.constant 0 : index
    %c0_2 = arith.constant 0 : index
    %1 = vector.load %arg2[%c0_1, %c0_2] : memref<128x128xbf16, #tpu.memory_space<vmem>>, vector<128x128xbf16>
    %cst = arith.constant dense<0.000000e+00> : vector<128x128xf32>
    %2 = tpu.matmul %0, %1, %cst {dimension_numbers = #tpu.dot_dimension_numbers<[1], [0], [0], [1], [0, 0, 1, 1], [], []>} : vector<128x128xbf16>, vector<128x128xbf16>, vector<128x128xf32> -> vector<128x128xf32>
    %c0_3 = arith.constant 0 : index
    %c0_4 = arith.constant 0 : index
    %3 = vector.load %arg3[%c0_3, %c0_4] : memref<1x128xf32, #tpu.memory_space<vmem>>, vector<1x128xf32>
    %4 = vector.broadcast %3 : vector<1x128xf32> to vector<128x128xf32>
    %5 = arith.addf %2, %4 : vector<128x128xf32>
    %cst_5 = arith.constant 2.000000e+01 : f32
    %6 = vector.broadcast %cst_5 : f32 to vector<128x128xf32>
    %7 = arith.minimumf %5, %6 : vector<128x128xf32>
    %8 = math.exp %7 : vector<128x128xf32>
    %cst_6 = arith.constant 2.000000e+00 : f32
    %9 = vector.broadcast %cst_6 : f32 to vector<128x128xf32>
    %10 = arith.addf %8, %9 : vector<128x128xf32>
    %11 = arith.mulf %8, %10 : vector<128x128xf32>
    %12 = arith.mulf %5, %11 : vector<128x128xf32>
    %cst_7 = arith.constant 2.000000e+00 : f32
    %13 = vector.broadcast %cst_7 : f32 to vector<128x128xf32>
    %14 = arith.addf %11, %13 : vector<128x128xf32>
    %15 = tpu.reciprocal %14 {approx = true} : vector<128x128xf32> -> vector<128x128xf32>
    %16 = arith.mulf %12, %15 : vector<128x128xf32>
    %17 = arith.truncf %16 : vector<128x128xf32> to vector<128x128xbf16>
    %c0_8 = arith.constant 0 : index
    %c0_9 = arith.constant 0 : index
    %18 = vector.load %arg4[%c0_8, %c0_9] : memref<128x128xbf16, #tpu.memory_space<vmem>>, vector<128x128xbf16>
    tpu.vector_store %arg4[%c0_8, %c0_9], %17 {strides = array<i32>} : memref<128x128xbf16, #tpu.memory_space<vmem>>, vector<128x128xbf16>,
    return
  }
  func.func @transform_0(%arg0: i32) -> (i32, i32) {
    %c0_i32 = arith.constant 0 : i32
    %c0_i32_0 = arith.constant 0 : i32
    return %arg0, %c0_i32 : i32, i32
  }
  func.func @transform_1(%arg0: i32) -> (i32, i32) {
    %c0_i32 = arith.constant 0 : i32
    %c0_i32_0 = arith.constant 0 : i32
    %c0_i32_1 = arith.constant 0 : i32
    return %c0_i32, %c0_i32_0 : i32, i32
  }
  func.func @transform_2(%arg0: i32) -> (i32, i32) {
    %c0_i32 = arith.constant 0 : i32
    %c0_i32_0 = arith.constant 0 : i32
    %c0_i32_1 = arith.constant 0 : i32
    return %c0_i32, %c0_i32_0 : i32, i32
  }
  func.func @transform_3(%arg0: i32) -> (i32, i32) {
    %c0_i32 = arith.constant 0 : i32
    %c0_i32_0 = arith.constant 0 : i32
    return %arg0, %c0_i32 : i32, i32
  }
}

module attributes {stable_mosaic.version = 11 : i64} {
  func.func @_concat_conv_kernel(%arg0: i32, %arg1: memref<128x128xbf16, #tpu.memory_space<vmem>>, %arg2: memref<128x128xbf16, #tpu.memory_space<vmem>>, %arg3: memref<128x128xbf16, #tpu.memory_space<vmem>>, %arg4: memref<128x128xbf16, #tpu.memory_space<vmem>>, %arg5: memref<1x128xf32, #tpu.memory_space<vmem>>, %arg6: memref<128x128xbf16, #tpu.memory_space<vmem>>) attributes {dimension_semantics = [#tpu.dimension_semantics<parallel>], iteration_bounds = array<i64: 1>, scalar_prefetch = 0 : i64, scratch_operands = 0 : i64, tpu.core_type = #tpu.core_type<tc>, window_params = [{transform_indices = @transform_0, window_bounds = array<i64: 128, 128>}, {transform_indices = @transform_1, window_bounds = array<i64: 128, 128>}, {pipeline_mode = #tpu.pipeline_mode<synchronous>, transform_indices = @transform_2, window_bounds = array<i64: 128, 128>}, {pipeline_mode = #tpu.pipeline_mode<synchronous>, transform_indices = @transform_3, window_bounds = array<i64: 128, 128>}, {pipeline_mode = #tpu.pipeline_mode<synchronous>, transform_indices = @transform_4, window_bounds = array<i64: 1, 128>}, {transform_indices = @transform_5, window_bounds = array<i64: 128, 128>}]} {
    %c0 = arith.constant 0 : index
    %c0_0 = arith.constant 0 : index
    %0 = vector.load %arg1[%c0, %c0_0] : memref<128x128xbf16, #tpu.memory_space<vmem>>, vector<128x128xbf16>
    %c0_1 = arith.constant 0 : index
    %c0_2 = arith.constant 0 : index
    %1 = vector.load %arg3[%c0_1, %c0_2] : memref<128x128xbf16, #tpu.memory_space<vmem>>, vector<128x128xbf16>
    %cst = arith.constant dense<0.000000e+00> : vector<128x128xf32>
    %2 = tpu.matmul %0, %1, %cst {dimension_numbers = #tpu.dot_dimension_numbers<[1], [0], [0], [1], [0, 0, 1, 1], [], []>} : vector<128x128xbf16>, vector<128x128xbf16>, vector<128x128xf32> -> vector<128x128xf32>
    %c0_3 = arith.constant 0 : index
    %c0_4 = arith.constant 0 : index
    %3 = vector.load %arg2[%c0_3, %c0_4] : memref<128x128xbf16, #tpu.memory_space<vmem>>, vector<128x128xbf16>
    %c0_5 = arith.constant 0 : index
    %c0_6 = arith.constant 0 : index
    %4 = vector.load %arg4[%c0_5, %c0_6] : memref<128x128xbf16, #tpu.memory_space<vmem>>, vector<128x128xbf16>
    %cst_7 = arith.constant dense<0.000000e+00> : vector<128x128xf32>
    %5 = tpu.matmul %3, %4, %cst_7 {dimension_numbers = #tpu.dot_dimension_numbers<[1], [0], [0], [1], [0, 0, 1, 1], [], []>} : vector<128x128xbf16>, vector<128x128xbf16>, vector<128x128xf32> -> vector<128x128xf32>
    %6 = arith.addf %2, %5 : vector<128x128xf32>
    %c0_8 = arith.constant 0 : index
    %c0_9 = arith.constant 0 : index
    %7 = vector.load %arg5[%c0_8, %c0_9] : memref<1x128xf32, #tpu.memory_space<vmem>>, vector<1x128xf32>
    %8 = vector.broadcast %7 : vector<1x128xf32> to vector<128x128xf32>
    %9 = arith.addf %6, %8 : vector<128x128xf32>
    %cst_10 = arith.constant 2.000000e+01 : f32
    %10 = vector.broadcast %cst_10 : f32 to vector<128x128xf32>
    %11 = arith.minimumf %9, %10 : vector<128x128xf32>
    %12 = math.exp %11 : vector<128x128xf32>
    %cst_11 = arith.constant 2.000000e+00 : f32
    %13 = vector.broadcast %cst_11 : f32 to vector<128x128xf32>
    %14 = arith.addf %12, %13 : vector<128x128xf32>
    %15 = arith.mulf %12, %14 : vector<128x128xf32>
    %16 = arith.mulf %9, %15 : vector<128x128xf32>
    %cst_12 = arith.constant 2.000000e+00 : f32
    %17 = vector.broadcast %cst_12 : f32 to vector<128x128xf32>
    %18 = arith.addf %15, %17 : vector<128x128xf32>
    %19 = tpu.reciprocal %18 {approx = true} : vector<128x128xf32> -> vector<128x128xf32>
    %20 = arith.mulf %16, %19 : vector<128x128xf32>
    %21 = arith.truncf %20 : vector<128x128xf32> to vector<128x128xbf16>
    %c0_13 = arith.constant 0 : index
    %c0_14 = arith.constant 0 : index
    %22 = vector.load %arg6[%c0_13, %c0_14] : memref<128x128xbf16, #tpu.memory_space<vmem>>, vector<128x128xbf16>
    tpu.vector_store %arg6[%c0_13, %c0_14], %21 {strides = array<i32>} : memref<128x128xbf16, #tpu.memory_space<vmem>>, vector<128x128xbf16>,
    return
  }
  func.func @transform_0(%arg0: i32) -> (i32, i32) {
    %c0_i32 = arith.constant 0 : i32
    %c0_i32_0 = arith.constant 0 : i32
    return %arg0, %c0_i32 : i32, i32
  }
  func.func @transform_1(%arg0: i32) -> (i32, i32) {
    %c0_i32 = arith.constant 0 : i32
    %c0_i32_0 = arith.constant 0 : i32
    return %arg0, %c0_i32 : i32, i32
  }
  func.func @transform_2(%arg0: i32) -> (i32, i32) {
    %c0_i32 = arith.constant 0 : i32
    %c0_i32_0 = arith.constant 0 : i32
    %c0_i32_1 = arith.constant 0 : i32
    return %c0_i32, %c0_i32_0 : i32, i32
  }
  func.func @transform_3(%arg0: i32) -> (i32, i32) {
    %c0_i32 = arith.constant 0 : i32
    %c0_i32_0 = arith.constant 0 : i32
    %c0_i32_1 = arith.constant 0 : i32
    return %c0_i32, %c0_i32_0 : i32, i32
  }
  func.func @transform_4(%arg0: i32) -> (i32, i32) {
    %c0_i32 = arith.constant 0 : i32
    %c0_i32_0 = arith.constant 0 : i32
    %c0_i32_1 = arith.constant 0 : i32
    return %c0_i32, %c0_i32_0 : i32, i32
  }
  func.func @transform_5(%arg0: i32) -> (i32, i32) {
    %c0_i32 = arith.constant 0 : i32
    %c0_i32_0 = arith.constant 0 : i32
    return %arg0, %c0_i32 : i32, i32
  }
}

</mosaic_0001>

<bundles_post_ra>
// kernel: resblock_body_forward.7
= control target key start
LH: loop header
LB: loop body
LE: loop exit
PB: predicated region body
PF: predicated region fallthrough
CT: control target
= control target key end

     0   :  { %s1393_s1 = inlined_call_operand.vmem [shape: bf16[128,128], index: 1, kind: input, shape index: {}]   ;;  %s1394_s3 = inlined_call_operand.vmem [shape: bf16[128,128], index: 3, kind: input, shape index: {}]   ;;  %s1395_s2 = inlined_call_operand.vmem [shape: f32[1,128], index: 2, kind: input, shape index: {}]   ;;  %s1396_s0 = inlined_call_operand.vmem [shape: bf16[128,128], index: 0, kind: input, shape index: {}]   ;;  %s1397_s4 = inlined_call_operand.vmem [shape: f32[1,128], index: 4, kind: input, shape index: {}]   ;;  %s1398_s5 = inlined_call_operand.vmem [shape: bf16[128,128], index: 5, kind: output, shape index: {0}]   ;;  %s1399_s6 = inlined_call_operand.vmem [shape: bf16[128,128], index: 6, kind: output, shape index: {1}]  }
   0x1   :  { %v791_v0 = vld [vmem:[%s1393_s1 + $0x38] sm:$0xff]  ;;  %v790_v2 = vld [vmem:[%s1393_s1 + $0x30] sm:$0xff]  ;;  %v789_v4 = vld [vmem:[%s1393_s1 + $0x28] sm:$0xff] }
   0x2   :  { %v799_v1 = vld [vmem:[%s1394_s3 + $0x38] sm:$0xff]  ;;  %154 = vmatpush.bf16.msra.mxu0 %v791_v0  ;;  %894 = vmatpush.bf16.msra.mxu2 %v791_v0  ;;  %v798_v3 = vld [vmem:[%s1394_s3 + $0x30] sm:$0xff]  ;;  %v797_v5 = vld [vmem:[%s1394_s3 + $0x28] sm:$0xff] }
   0x3   :  { %271 = vmatpush.bf16.msra.mxu1 %v799_v1  ;;  %902 = vmatpush.bf16.msra.mxu3 %v799_v1  ;;  %v788_v6 = vld [vmem:[%s1393_s1 + $0x20] sm:$0xff]  ;;  %v787_v8 = vld [vmem:[%s1393_s1 + $0x18] sm:$0xff]  ;;  %v786_v10 = vld [vmem:[%s1393_s1 + $0x10] sm:$0xff] }
   0x4   :  { %v796_v7 = vld [vmem:[%s1394_s3 + $0x20] sm:$0xff]  ;;  %v795_v9 = vld [vmem:[%s1394_s3 + $0x18] sm:$0xff]  ;;  %v794_v11 = vld [vmem:[%s1394_s3 + $0x10] sm:$0xff] }
   0x5   :  { %v785_v12 = vld [vmem:[%s1393_s1 + $0x8] sm:$0xff]  ;;  %v784_v14 = vld [vmem:[%s1393_s1] sm:$0xff]  ;;  %v778_v20 = vld [vmem:[%s1396_s0 + $0x10] sm:$0xff] }
   0x6   :  { %155 = vmatpush.bf16.msra.mxu0 %v790_v2  ;;  %895 = vmatpush.bf16.msra.mxu2 %v790_v2  ;;  %v793_v13 = vld [vmem:[%s1394_s3 + $0x8] sm:$0xff]  ;;  %v792_v15 = vld [vmem:[%s1394_s3] sm:$0xff]  ;;  %v782_v21 = vld [vmem:[%s1396_s0 + $0x30] sm:$0xff] }
   0x7   :  { %272 = vmatpush.bf16.msra.mxu1 %v798_v3  ;;  %903 = vmatpush.bf16.msra.mxu3 %v798_v3  ;;  %v776_v16 = vld [vmem:[%s1396_s0] sm:$0xff]  ;;  %v777_v18 = vld [vmem:[%s1396_s0 + $0x8] sm:$0xff]  ;;  %v779_v22 = vld [vmem:[%s1396_s0 + $0x18] sm:$0xff] }
   0x8   :  { %v780_v17 = vld [vmem:[%s1396_s0 + $0x20] sm:$0xff]  ;;  %v781_v19 = vld [vmem:[%s1396_s0 + $0x28] sm:$0xff]  ;;  %v783_v23 = vld [vmem:[%s1396_s0 + $0x38] sm:$0xff] }
   0x9   :  { %v1150_v24 = vld [vmem:[%s1395_s2] ss:$0 sm:$0xff] }
   0xa   :  { %156 = vmatpush.bf16.msra.mxu0 %v789_v4  ;;  %896 = vmatpush.bf16.msra.mxu2 %v789_v4  ;;  %v1155_v25 = vld [vmem:[%s1397_s4] ss:$0 sm:$0xff] }
   0xb   :  { %273 = vmatpush.bf16.msra.mxu1 %v797_v5  ;;  %904 = vmatpush.bf16.msra.mxu3 %v797_v5 }
   0xe   :  { %157 = vmatpush.bf16.msra.mxu0 %v788_v6  ;;  %897 = vmatpush.bf16.msra.mxu2 %v788_v6 }
   0xf   :  { %274 = vmatpush.bf16.msra.mxu1 %v796_v7  ;;  %905 = vmatpush.bf16.msra.mxu3 %v796_v7 }
  0x12   :  { %158 = vmatpush.bf16.msra.mxu0 %v787_v8  ;;  %898 = vmatpush.bf16.msra.mxu2 %v787_v8 }
  0x13   :  { %275 = vmatpush.bf16.msra.mxu1 %v795_v9  ;;  %906 = vmatpush.bf16.msra.mxu3 %v795_v9 }
  0x16   :  { %159 = vmatpush.bf16.msra.mxu0 %v786_v10  ;;  %899 = vmatpush.bf16.msra.mxu2 %v786_v10 }
  0x17   :  { %276 = vmatpush.bf16.msra.mxu1 %v794_v11  ;;  %907 = vmatpush.bf16.msra.mxu3 %v794_v11 }
  0x1a   :  { %160 = vmatpush.bf16.msra.mxu0 %v785_v12  ;;  %900 = vmatpush.bf16.msra.mxu2 %v785_v12 }
  0x1b   :  { %277 = vmatpush.bf16.msra.mxu1 %v793_v13  ;;  %908 = vmatpush.bf16.msra.mxu3 %v793_v13 }
  0x1e   :  { %161 = vmatpush.bf16.msra.mxu0 %v784_v14  ;;  %901 = vmatpush.bf16.msra.mxu2 %v784_v14 }
  0x1f   :  { %278 = vmatpush.bf16.msra.mxu1 %v792_v15  ;;  %909 = vmatpush.bf16.msra.mxu3 %v792_v15 }
  0x21   :  { %162 = vmatmul.bf16.vlgmr.msra.gmra.mxu0 %v776_v16  ;;  %182 = vmatmul.bf16.vlgmr.msra.gmra.mxu2 %v780_v17 }
  0x22   :  { %279 = vmatmul.bf16.vlgmr.msra.gmra.mxu1 %v776_v16  ;;  %299 = vmatmul.bf16.vlgmr.msra.gmra.mxu3 %v780_v17 }
  0x31   :  { %167 = vmatmul.bf16.gmra.mxu0 %v777_v18  ;;  %187 = vmatmul.bf16.gmra.mxu2 %v781_v19 }
  0x32   :  { %284 = vmatmul.bf16.gmra.mxu1 %v777_v18  ;;  %304 = vmatmul.bf16.gmra.mxu3 %v781_v19 }
  0x41   :  { %172 = vmatmul.bf16.gmra.mxu0 %v778_v20  ;;  %192 = vmatmul.bf16.gmra.mxu2 %v782_v21 }
  0x42   :  { %289 = vmatmul.bf16.gmra.mxu1 %v778_v20  ;;  %309 = vmatmul.bf16.gmra.mxu3 %v782_v21 }
  0x51   :  { %177 = vmatmul.bf16.gmra.mxu0 %v779_v22  ;;  %197 = vmatmul.bf16.gmra.mxu2 %v783_v23 }
  0x52   :  { %294 = vmatmul.bf16.gmra.mxu1 %v779_v22  ;;  %314 = vmatmul.bf16.gmra.mxu3 %v783_v23 }
  0x9e   :  { %v163_v26 = vpop.f32.mrf.mxu0 }
  0x9f   :  { %v1158_v27 = vadd.f32 %v1150_v24, %v163_v26  ;;  %v280_v28 = vpop.f32.mrf.mxu1 }
  0xa0   :  { %v1161_v29 = vadd.f32 %v1155_v25, %v280_v28 }
  0xa1   :  { %v320_v30 = vmin.f32 %v1158_v27, 20.0 }
  0xa2   :  { %v496_v31 = vmin.f32 %v1161_v29, 20.0 }
  0xa3   :  { %v336_v32 = vmul.f32 1.442695, %v320_v30 }
  0xa4   :  { %v512_v33 = vmul.f32 1.442695, %v496_v31  ;;  %v183_v34 = vpop.f32.mrf.mxu2 }
  0xa5   :  { %912 = vpow2.f32 %v336_v32  ;;  %v1166_v35 = vadd.f32 %v1150_v24, %v183_v34  ;;  %v300_v36 = vpop.f32.mrf.mxu3 }
  0xa6   :  { %914 = vpow2.f32 %v512_v33  ;;  %v1169_v37 = vadd.f32 %v1155_v25, %v300_v36  ;;  %v165_v38 = vpop.f32.mrf.mxu0 }
  0xa7   :  { %v328_v39 = vmin.f32 %v1166_v35, 20.0  ;;  %v1173_v40 = vadd.f32 %v1150_v24, %v165_v38  ;;  %v282_v41 = vpop.f32.mrf.mxu1 }
  0xa8   :  { %v504_v42 = vmin.f32 %v1169_v37, 20.0  ;;  %v1177_v43 = vadd.f32 %v1155_v25, %v282_v41 }
  0xa9   :  { %v352_v44 = vmul.f32 1.442695, %v328_v39  ;;  %v321_v45 = vmin.f32 %v1173_v40, 20.0 }
  0xaa   :  { %v528_v46 = vmul.f32 1.442695, %v504_v42  ;;  %v497_v47 = vmin.f32 %v1177_v43, 20.0 }
  0xab   :  { %v913_v48 = vpop.eup %912  ;;  %916 = vpow2.f32 %v352_v44  ;;  %v338_v49 = vmul.f32 1.442695, %v321_v45 }
  0xac   :  { %v915_v50 = vpop.eup %914  ;;  %v368_v51 = vadd.f32 2.0, %v913_v48  ;;  %918 = vpow2.f32 %v528_v46  ;;  %v514_v52 = vmul.f32 1.442695, %v497_v47  ;;  %v185_v53 = vpop.f32.mrf.mxu2 }
  0xad   :  { %v544_v54 = vadd.f32 2.0, %v915_v50  ;;  %920 = vpow2.f32 %v338_v49  ;;  %v1182_v55 = vadd.f32 %v1150_v24, %v185_v53  ;;  %v302_v56 = vpop.f32.mrf.mxu3 }
  0xae   :  { %v384_v57 = vmul.f32 %v913_v48, %v368_v51  ;;  %922 = vpow2.f32 %v514_v52  ;;  %v1185_v58 = vadd.f32 %v1155_v25, %v302_v56  ;;  %v168_v59 = vpop.f32.mrf.mxu0 }
  0xaf   :  { %v560_v60 = vmul.f32 %v915_v50, %v544_v54  ;;  %v329_v61 = vmin.f32 %v1182_v55, 20.0  ;;  %v1189_v62 = vadd.f32 %v1150_v24, %v168_v59  ;;  %v285_v63 = vpop.f32.mrf.mxu1 }
  0xb0   :  { %v416_v0 = vadd.f32 2.0, %v384_v57  ;;  %v505_v1 = vmin.f32 %v1185_v58, 20.0  ;;  %v1193_v2 = vadd.f32 %v1155_v25, %v285_v63  ;;  %v400_v39 = vmul.f32 %v384_v57, %v1158_v27 }
  0xb1   :  { %v917_v3 = vpop.eup %916  ;;  %v592_v4 = vadd.f32 2.0, %v560_v60  ;;  %v354_v5 = vmul.f32 1.442695, %v329_v61  ;;  %v322_v6 = vmin.f32 %v1189_v62, 20.0  ;;  %v576_v41 = vmul.f32 %v560_v60, %v1161_v29 }
  0xb2   :  { %v919_v7 = vpop.eup %918  ;;  %924 = vrcp.f32 %v416_v0  ;;  %v376_v8 = vadd.f32 2.0, %v917_v3  ;;  %v530_v9 = vmul.f32 1.442695, %v505_v1  ;;  %v498_v10 = vmin.f32 %v1193_v2, 20.0 }
  0xb3   :  { %v921_v11 = vpop.eup %920  ;;  %926 = vrcp.f32 %v592_v4  ;;  %v552_v12 = vadd.f32 2.0, %v919_v7  ;;  %v340_v13 = vmul.f32 1.442695, %v322_v6 }
  0xb4   :  { %v923_v14 = vpop.eup %922  ;;  %v392_v15 = vmul.f32 %v917_v3, %v376_v8  ;;  %v369_v16 = vadd.f32 2.0, %v921_v11  ;;  %928 = vpow2.f32 %v354_v5  ;;  %v516_v17 = vmul.f32 1.442695, %v498_v10  ;;  %v188_v18 = vpop.f32.mrf.mxu2 }
  0xb5   :  { %v568_v19 = vmul.f32 %v919_v7, %v552_v12  ;;  %v545_v20 = vadd.f32 2.0, %v923_v14  ;;  %930 = vpow2.f32 %v530_v9  ;;  %v1198_v21 = vadd.f32 %v1150_v24, %v188_v18  ;;  %v305_v22 = vpop.f32.mrf.mxu3 }
  0xb6   :  { %v424_v23 = vadd.f32 2.0, %v392_v15  ;;  %v385_v26 = vmul.f32 %v921_v11, %v369_v16  ;;  %932 = vpow2.f32 %v340_v13  ;;  %v170_v28 = vpop.f32.mrf.mxu0  ;;  %v408_v45 = vmul.f32 %v392_v15, %v1166_v35 }
  0xb7   :  { %v600_v30 = vadd.f32 2.0, %v568_v19  ;;  %v561_v31 = vmul.f32 %v923_v14, %v545_v20  ;;  %934 = vpow2.f32 %v516_v17  ;;  %v330_v34 = vmin.f32 %v1198_v21, 20.0  ;;  %v287_v36 = vpop.f32.mrf.mxu1 }
  0xb8   :  { %v925_v32 = vpop.eup %924  ;;  %936 = vrcp.f32 %v424_v23  ;;  %v417_v33 = vadd.f32 2.0, %v385_v26  ;;  %v1205_v47 = vadd.f32 %v1155_v25, %v305_v22  ;;  %v1208_v50 = vadd.f32 %v1150_v24, %v170_v28 }
  0xb9   :  { %v927_v38 = vpop.eup %926  ;;  %938 = vrcp.f32 %v600_v30  ;;  %v593_v42 = vadd.f32 2.0, %v561_v31  ;;  %v356_v46 = vmul.f32 1.442695, %v330_v34  ;;  %v1211_v27 = vadd.f32 %v1155_v25, %v287_v36 }
  0xba   :  { %v929_v44 = vpop.eup %928  ;;  %940 = vrcp.f32 %v417_v33  ;;  %v584_v51 = vmul.f32 %v568_v19, %v1169_v37  ;;  %v506_v35 = vmin.f32 %v1205_v47, 20.0  ;;  %v448_v56 = vmul.f32 %v925_v32, %v400_v39 }
  0xbb   :  { %v931_v48 = vpop.eup %930  ;;  %942 = vrcp.f32 %v593_v42  ;;  %v377_v49 = vadd.f32 2.0, %v929_v44  ;;  %v401_v57 = vmul.f32 %v385_v26, %v1173_v40  ;;  %v624_v63 = vmul.f32 %v927_v38, %v576_v41 }
  0xbc   :  { %v933_v29 = vpop.eup %932  ;;  %v553_v52 = vadd.f32 2.0, %v931_v48  ;;  %944 = vpow2.f32 %v356_v46  ;;  %v190_v53 = vpop.f32.mrf.mxu2  ;;  %v577_v0 = vmul.f32 %v561_v31, %v1177_v43  ;;  %v323_v6 = vmin.f32 %v1208_v50, 20.0 }
  0xbd   :  { %v935_v54 = vpop.eup %934  ;;  %v393_v59 = vmul.f32 %v929_v44, %v377_v49  ;;  %v370_v60 = vadd.f32 2.0, %v933_v29  ;;  %v499_v7 = vmin.f32 %v1211_v27, 20.0  ;;  %v307_v8 = vpop.f32.mrf.mxu3  ;;  %v532_v12 = vmul.f32 1.442695, %v506_v35 }
  0xbe   :  { %v937_v61 = vpop.eup %936  ;;  %v569_v1 = vmul.f32 %v931_v48, %v553_v52  ;;  %v546_v3 = vadd.f32 2.0, %v935_v54  ;;  %v173_v9 = vpop.f32.mrf.mxu0  ;;  %v1224_v13 = vadd.f32 %v1150_v24, %v190_v53  ;;  %v342_v30 = vmul.f32 1.442695, %v323_v6 }
  0xbf   :  { %v939_v4 = vpop.eup %938  ;;  %v425_v5 = vadd.f32 2.0, %v393_v59  ;;  %v1217_v37 = vmul.f32 %v933_v29, %v370_v60  ;;  %v456_v14 = vmul.f32 %v937_v61, %v408_v45  ;;  %v409_v20 = vmul.f32 %v393_v59, %v1182_v55  ;;  %v290_v22 = vpop.f32.mrf.mxu1 }
  0xc0   :  { %v941_v10 = vpop.eup %940  ;;  %v601_v40 = vadd.f32 2.0, %v569_v1  ;;  %v1221_v11 = vmul.f32 %v935_v54, %v546_v3  ;;  %v632_v18 = vmul.f32 %v939_v4, %v584_v51  ;;  %v518_v32 = vmul.f32 1.442695, %v499_v7 }
  0xc1   :  { %v943_v43 = vpop.eup %942  ;;  %v449_v15 = vmul.f32 %v941_v10, %v401_v57  ;;  %946 = vrcp.f32 %v425_v5  ;;  %v418_v16 = vadd.f32 2.0, %v1217_v37  ;;  %v331_v33 = vmin.f32 %v1224_v13, 20.0 }
  0xc2   :  { %v945_v17 = vpop.eup %944  ;;  %v625_v19 = vmul.f32 %v943_v43, %v577_v0  ;;  %948 = vrcp.f32 %v601_v40  ;;  %v594_v26 = vadd.f32 2.0, %v1221_v11  ;;  %v1236_v55 = vadd.f32 %v1155_v25, %v307_v8 }
  0xc3   :  { %v803_v23 = vpack.c.bf16 %v449_v15, %v448_v56  ;;  %v378_v28 = vadd.f32 2.0, %v945_v17  ;;  %950 = vrcp.f32 %v418_v16  ;;  %v1239_v38 = vadd.f32 %v1150_v24, %v173_v9 }
  0xc4   :  { %v843_v31 = vpack.c.bf16 %v625_v19, %v624_v63  ;;  %v193_v34 = vpop.f32.mrf.mxu2  ;;  %952 = vpow2.f32 %v532_v12  ;;  %v358_v39 = vmul.f32 1.442695, %v331_v33  ;;  %v1245_v41 = vadd.f32 %v1155_v25, %v290_v22 }
  0xc5   :  { %804 = vst [vmem:[%s1398_s5] sm:$0xff] %v803_v23   ;;  %v1233_v36 = vmul.f32 %v945_v17, %v378_v28  ;;  %954 = vpow2.f32 %v342_v30  ;;  %v1248_v42 = vadd.f32 %v1150_v24, %v193_v34  ;;  %v585_v45 = vmul.f32 %v569_v1, %v1185_v58  ;;  %v310_v56 = vpop.f32.mrf.mxu3 }
  0xc6   :  { %844 = vst [vmem:[%s1399_s6] sm:$0xff] %v843_v31   ;;  %956 = vpow2.f32 %v518_v32  ;;  %v507_v48 = vmin.f32 %v1236_v55, 20.0  ;;  %v324_v51 = vmin.f32 %v1239_v38, 20.0  ;;  %v500_v52 = vmin.f32 %v1245_v41, 20.0  ;;  %v175_v57 = vpop.f32.mrf.mxu0 }
  0xc7   :  { %v947_v44 = vpop.eup %946  ;;  %v426_v46 = vadd.f32 2.0, %v1233_v36  ;;  %958 = vpow2.f32 %v358_v39  ;;  %v332_v54 = vmin.f32 %v1248_v42, 20.0  ;;  %v1260_v5 = vadd.f32 %v1155_v25, %v310_v56  ;;  %v292_v7 = vpop.f32.mrf.mxu1 }
  0xc8   :  { %v949_v49 = vpop.eup %948  ;;  %v457_v29 = vmul.f32 %v947_v44, %v409_v20  ;;  %960 = vrcp.f32 %v594_v26  ;;  %v534_v53 = vmul.f32 1.442695, %v507_v48  ;;  %v344_v60 = vmul.f32 1.442695, %v324_v51 }
  0xc9   :  { %v633_v35 = vmul.f32 %v949_v49, %v585_v45  ;;  %v951_v58 = vpop.eup %950  ;;  %962 = vrcp.f32 %v426_v46  ;;  %v520_v61 = vmul.f32 1.442695, %v500_v52  ;;  %v360_v1 = vmul.f32 1.442695, %v332_v54 }
  0xca   :  { %v823_v59 = vpack.c.bf16 %v457_v29, %v456_v14  ;;  %v953_v63 = vpop.eup %952  ;;  %964 = vpow2.f32 %v534_v53  ;;  %v1263_v6 = vadd.f32 %v1150_v24, %v175_v57  ;;  %v508_v43 = vmin.f32 %v1260_v5, 20.0 }
  0xcb   :  { %v863_v0 = vpack.c.bf16 %v633_v35, %v632_v18  ;;  %v955_v3 = vpop.eup %954  ;;  %v554_v4 = vadd.f32 2.0, %v953_v63  ;;  %966 = vpow2.f32 %v344_v60  ;;  %v1270_v18 = vadd.f32 %v1155_v25, %v292_v7 }
  0xcc   :  { %883 = vst [vmem:[%s1398_s5 + $0x20] sm:$0xff] %v823_v59   ;;  %v957_v8 = vpop.eup %956  ;;  %v371_v9 = vadd.f32 2.0, %v955_v3  ;;  %968 = vpow2.f32 %v520_v61  ;;  %v195_v14 = vpop.f32.mrf.mxu2  ;;  %v402_v20 = vmul.f32 %v1217_v37, %v1189_v62  ;;  %v325_v26 = vmin.f32 %v1263_v6, 20.0 }
  0xcd   :  { %890 = vst [vmem:[%s1399_s6 + $0x20] sm:$0xff] %v863_v0   ;;  %v959_v10 = vpop.eup %958  ;;  %v570_v40 = vmul.f32 %v953_v63, %v554_v4  ;;  %v547_v12 = vadd.f32 2.0, %v957_v8  ;;  %970 = vpow2.f32 %v360_v1  ;;  %v578_v30 = vmul.f32 %v1221_v11, %v1193_v2  ;;  %v312_v49 = vpop.f32.mrf.mxu3 }
  0xce   :  { %v961_v15 = vpop.eup %960  ;;  %v387_v16 = vmul.f32 %v955_v3, %v371_v9  ;;  %v379_v17 = vadd.f32 2.0, %v959_v10  ;;  %v1278_v33 = vadd.f32 %v1150_v24, %v195_v14  ;;  %v536_v45 = vmul.f32 1.442695, %v508_v43  ;;  %v178_v63 = vpop.f32.mrf.mxu0 }
  0xcf   :  { %v963_v19 = vpop.eup %962  ;;  %v602_v22 = vadd.f32 2.0, %v570_v40  ;;  %v563_v23 = vmul.f32 %v957_v8, %v547_v12  ;;  %v501_v48 = vmin.f32 %v1270_v18, 20.0  ;;  %v346_v51 = vmul.f32 1.442695, %v325_v26 }
  0xd0   :  { %v965_v28 = vpop.eup %964  ;;  %v419_v31 = vadd.f32 2.0, %v387_v16  ;;  %v395_v32 = vmul.f32 %v959_v10, %v379_v17  ;;  %v450_v52 = vmul.f32 %v951_v58, %v402_v20  ;;  %v410_v35 = vmul.f32 %v1233_v36, %v1198_v21  ;;  %v295_v36 = vpop.f32.mrf.mxu1 }
  0xd1   :  { %v967_v34 = vpop.eup %966  ;;  %972 = vrcp.f32 %v602_v22  ;;  %v595_v39 = vadd.f32 2.0, %v563_v23  ;;  %v555_v44 = vadd.f32 2.0, %v965_v28  ;;  %v626_v54 = vmul.f32 %v961_v15, %v578_v30 }
  0xd2   :  { %v969_v46 = vpop.eup %968  ;;  %974 = vrcp.f32 %v419_v31  ;;  %v427_v62 = vadd.f32 2.0, %v395_v32  ;;  %v372_v37 = vadd.f32 2.0, %v967_v34  ;;  %v458_v59 = vmul.f32 %v963_v19, %v410_v35 }
  0xd3   :  { %v971_v29 = vpop.eup %970  ;;  %976 = vrcp.f32 %v595_v39  ;;  %v571_v2 = vmul.f32 %v965_v28, %v555_v44  ;;  %v548_v11 = vadd.f32 2.0, %v969_v46  ;;  %v586_v60 = vmul.f32 %v570_v40, %v1205_v47 }
  0xd4   :  { %978 = vrcp.f32 %v427_v62  ;;  %v1283_v53 = vmul.f32 %v967_v34, %v372_v37  ;;  %v380_v57 = vadd.f32 2.0, %v971_v29  ;;  %v403_v58 = vmul.f32 %v387_v16, %v1208_v50  ;;  %v198_v43 = vpop.f32.mrf.mxu2 }
  0xd5   :  { %v603_v56 = vadd.f32 2.0, %v571_v2  ;;  %980 = vpow2.f32 %v536_v45  ;;  %v1286_v61 = vmul.f32 %v969_v46, %v548_v11  ;;  %v522_v1 = vmul.f32 1.442695, %v501_v48  ;;  %v315_v30 = vpop.f32.mrf.mxu3 }
  0xd6   :  { %982 = vpow2.f32 %v346_v51  ;;  %v333_v21 = vmin.f32 %v1278_v33, 20.0  ;;  %v579_v4 = vmul.f32 %v563_v23, %v1211_v27  ;;  %v411_v7 = vmul.f32 %v395_v32, %v1224_v13 }
  0xd7   :  { %v973_v0 = vpop.eup %972  ;;  %984 = vrcp.f32 %v603_v56  ;;  %v587_v8 = vmul.f32 %v571_v2, %v1236_v55  ;;  %v420_v47 = vadd.f32 2.0, %v1283_v53  ;;  %v1294_v40 = vmul.f32 %v971_v29, %v380_v57  ;;  %v180_v2 = vpop.f32.mrf.mxu0 }
  0xd8   :  { %v975_v3 = vpop.eup %974  ;;  %v362_v12 = vmul.f32 1.442695, %v333_v21  ;;  %v1297_v50 = vadd.f32 %v1155_v25, %v312_v49  ;;  %v596_v16 = vadd.f32 2.0, %v1286_v61  ;;  %v1301_v27 = vadd.f32 %v1150_v24, %v178_v63 }
  0xd9   :  { %v977_v9 = vpop.eup %976  ;;  %v451_v10 = vmul.f32 %v975_v3, %v403_v58  ;;  %v1304_v13 = vadd.f32 %v1155_v25, %v295_v36  ;;  %986 = vpow2.f32 %v522_v1  ;;  %v634_v45 = vmul.f32 %v973_v0, %v586_v60 }
  0xda   :  { %v979_v14 = vpop.eup %978  ;;  %v627_v15 = vmul.f32 %v977_v9, %v579_v4  ;;  %v509_v20 = vmin.f32 %v1297_v50, 20.0  ;;  %988 = vpow2.f32 %v362_v12  ;;  %v326_v28 = vmin.f32 %v1301_v27, 20.0 }
  0xdb   :  { %v981_v55 = vpop.eup %980  ;;  %v808_v17 = vpack.c.bf16 %v451_v10, %v450_v52  ;;  %v459_v19 = vmul.f32 %v979_v14, %v411_v7  ;;  %v502_v44 = vmin.f32 %v1304_v13, 20.0  ;;  %v1316_v37 = vadd.f32 %v1150_v24, %v198_v43 }
  0xdc   :  { %v983_v22 = vpop.eup %982  ;;  %v848_v23 = vpack.c.bf16 %v627_v15, %v626_v54  ;;  %v556_v26 = vadd.f32 2.0, %v981_v55  ;;  %v538_v39 = vmul.f32 1.442695, %v509_v20  ;;  %v348_v62 = vmul.f32 1.442695, %v326_v28  ;;  %v297_v54 = vpop.f32.mrf.mxu1 }
  0xdd   :  { %v985_v31 = vpop.eup %984  ;;  %880 = vst [vmem:[%s1398_s5 + $0x8] sm:$0xff] %v808_v17   ;;  %v828_v32 = vpack.c.bf16 %v459_v19, %v458_v59  ;;  %v373_v34 = vadd.f32 2.0, %v983_v22  ;;  %v428_v29 = vadd.f32 2.0, %v1294_v40  ;;  %v524_v35 = vmul.f32 1.442695, %v502_v44  ;;  %v200_v58 = vpop.f32.mrf.mxu2 }
  0xde   :  { %887 = vst [vmem:[%s1399_s6 + $0x8] sm:$0xff] %v848_v23   ;;  %v635_v46 = vmul.f32 %v985_v31, %v587_v8  ;;  %990 = vpow2.f32 %v538_v39  ;;  %v1322_v51 = vmul.f32 %v981_v55, %v556_v26  ;;  %v334_v59 = vmin.f32 %v1316_v37, 20.0  ;;  %v317_v14 = vpop.f32.mrf.mxu3 }
  0xdf   :  { %884 = vst [vmem:[%s1398_s5 + $0x28] sm:$0xff] %v828_v32   ;;  %v389_v48 = vmul.f32 %v983_v22, %v373_v34  ;;  %992 = vrcp.f32 %v420_v47  ;;  %v987_v11 = vpop.eup %986  ;;  %v1329_v60 = vadd.f32 %v1155_v25, %v315_v30  ;;  %v1332_v0 = vadd.f32 %v1150_v24, %v180_v2 }
  0xe0   :  { %v868_v49 = vpack.c.bf16 %v635_v46, %v634_v45  ;;  %994 = vrcp.f32 %v596_v16  ;;  %v989_v56 = vpop.eup %988  ;;  %v549_v57 = vadd.f32 2.0, %v987_v11  ;;  %v364_v21 = vmul.f32 1.442695, %v334_v59 }
  0xe1   :  { %v421_v52 = vadd.f32 2.0, %v389_v48  ;;  %996 = vpow2.f32 %v348_v62  ;;  %v381_v63 = vadd.f32 2.0, %v989_v56  ;;  %v510_v36 = vmin.f32 %v1329_v60, 20.0 }
  0xe2   :  { %891 = vst [vmem:[%s1399_s6 + $0x28] sm:$0xff] %v868_v49   ;;  %v565_v1 = vmul.f32 %v987_v11, %v549_v57  ;;  %v1336_v3 = vadd.f32 %v1155_v25, %v297_v54  ;;  %v604_v7 = vadd.f32 2.0, %v1322_v51  ;;  %v327_v47 = vmin.f32 %v1332_v0, 20.0 }
  0xe3   :  { %998 = vrcp.f32 %v421_v52  ;;  %v397_v8 = vmul.f32 %v989_v56, %v381_v63  ;;  %v1341_v43 = vadd.f32 %v1150_v24, %v200_v58  ;;  %v404_v16 = vmul.f32 %v1283_v53, %v1239_v38 }
  0xe4   :  { %v991_v4 = vpop.eup %990  ;;  %1000 = vrcp.f32 %v428_v29  ;;  %v597_v10 = vadd.f32 2.0, %v565_v1  ;;  %v540_v17 = vmul.f32 1.442695, %v510_v36  ;;  %v405_v20 = vmul.f32 %v389_v48, %v1263_v6 }
  0xe5   :  { %v993_v9 = vpop.eup %992  ;;  %v557_v12 = vadd.f32 2.0, %v991_v4  ;;  %1002 = vpow2.f32 %v524_v35  ;;  %v429_v55 = vadd.f32 2.0, %v397_v8  ;;  %v503_v23 = vmin.f32 %v1336_v3, 20.0 }
  0xe6   :  { %v995_v15 = vpop.eup %994  ;;  %1004 = vpow2.f32 %v364_v21  ;;  %v452_v28 = vmul.f32 %v993_v9, %v404_v16  ;;  %v350_v24 = vmul.f32 1.442695, %v327_v47  ;;  %v1348_v30 = vadd.f32 %v1155_v25, %v317_v14 }
  0xe7   :  { %v997_v19 = vpop.eup %996  ;;  %1006 = vrcp.f32 %v597_v10  ;;  %v573_v22 = vmul.f32 %v991_v4, %v557_v12  ;;  %v335_v53 = vmin.f32 %v1341_v43, 20.0  ;;  %v580_v6 = vmul.f32 %v1286_v61, %v1245_v41 }
  0xe8   :  { %1008 = vrcp.f32 %v429_v55  ;;  %v374_v34 = vadd.f32 2.0, %v997_v19  ;;  %v526_v45 = vmul.f32 1.442695, %v503_v23  ;;  %v511_v46 = vmin.f32 %v1348_v30, 20.0 }
  0xe9   :  { %v999_v26 = vpop.eup %998  ;;  %1010 = vrcp.f32 %v604_v7  ;;  %v605_v38 = vadd.f32 2.0, %v573_v22  ;;  %v412_v25 = vmul.f32 %v1294_v40, %v1248_v42  ;;  %v581_v48 = vmul.f32 %v565_v1, %v1270_v18 }
  0xea   :  { %v453_v31 = vmul.f32 %v999_v26, %v405_v20  ;;  %v1001_v32 = vpop.eup %1000  ;;  %1012 = vpow2.f32 %v540_v17  ;;  %v628_v29 = vmul.f32 %v995_v15, %v580_v6  ;;  %v413_v41 = vmul.f32 %v397_v8, %v1278_v33 }
  0xeb   :  { %v1003_v39 = vpop.eup %1002  ;;  %1014 = vrcp.f32 %v605_v38  ;;  %v366_v61 = vmul.f32 1.442695, %v335_v53  ;;  %v460_v11 = vmul.f32 %v1001_v32, %v412_v25  ;;  %v390_v35 = vmul.f32 %v997_v19, %v374_v34 }
  0xec   :  { %v813_v44 = vpack.c.bf16 %v453_v31, %v452_v28  ;;  %v1005_v62 = vpop.eup %1004  ;;  %1016 = vpow2.f32 %v350_v24  ;;  %v550_v54 = vadd.f32 2.0, %v1003_v39  ;;  %v542_v18 = vmul.f32 1.442695, %v511_v46 }
  0xed   :  { %v1007_v49 = vpop.eup %1006  ;;  %v382_v42 = vadd.f32 2.0, %v1005_v62  ;;  %1018 = vpow2.f32 %v526_v45  ;;  %v588_v59 = vmul.f32 %v1322_v51, %v1260_v5  ;;  %v589_v58 = vmul.f32 %v573_v22, %v1297_v50 }
  0xee   :  { %881 = vst [vmem:[%s1398_s5 + $0x10] sm:$0xff] %v813_v44   ;;  %v1009_v2 = vpop.eup %1008  ;;  %v629_v52 = vmul.f32 %v1007_v49, %v581_v48  ;;  %1020 = vpow2.f32 %v366_v61  ;;  %v566_v8 = vmul.f32 %v1003_v39, %v550_v54  ;;  %v422_v5 = vadd.f32 2.0, %v390_v35 }
  0xef   :  { %v1011_v56 = vpop.eup %1010  ;;  %v461_v57 = vmul.f32 %v1009_v2, %v413_v41  ;;  %v398_v51 = vmul.f32 %v1005_v62, %v382_v42  ;;  %1022 = vpow2.f32 %v542_v18  ;;  %v406_v32 = vmul.f32 %v390_v35, %v1301_v27 }
  0xf0   :  { %v1013_v40 = vpop.eup %1012  ;;  %v853_v63 = vpack.c.bf16 %v629_v52, %v628_v29  ;;  %v636_v4 = vmul.f32 %v1011_v56, %v588_v59  ;;  %v598_v14 = vadd.f32 2.0, %v566_v8  ;;  %1024 = vrcp.f32 %v422_v5 }
  0xf1   :  { %v1015_v1 = vpop.eup %1014  ;;  %v833_v33 = vpack.c.bf16 %v461_v57, %v460_v11  ;;  %v558_v21 = vadd.f32 2.0, %v1013_v40  ;;  %v430_v55 = vadd.f32 2.0, %v398_v51  ;;  %v582_v25 = vmul.f32 %v566_v8, %v1304_v13 }
  0xf2   :  { %v1017_v36 = vpop.eup %1016  ;;  %888 = vst [vmem:[%s1399_s6 + $0x10] sm:$0xff] %v853_v63   ;;  %v637_v7 = vmul.f32 %v1015_v1, %v589_v58  ;;  %v414_v27 = vmul.f32 %v398_v51, %v1316_v37 }
  0xf3   :  { %885 = vst [vmem:[%s1398_s5 + $0x30] sm:$0xff] %v833_v33   ;;  %v375_v47 = vadd.f32 2.0, %v1017_v36  ;;  %v1019_v9 = vpop.eup %1018  ;;  %v574_v10 = vmul.f32 %v1013_v40, %v558_v21 }
  0xf4   :  { %v873_v50 = vpack.c.bf16 %v637_v7, %v636_v4  ;;  %v551_v15 = vadd.f32 2.0, %v1019_v9  ;;  %v1021_v16 = vpop.eup %1020 }
  0xf5   :  { %v391_v12 = vmul.f32 %v1017_v36, %v375_v47  ;;  %v383_v20 = vadd.f32 2.0, %v1021_v16  ;;  %v1023_v22 = vpop.eup %1022  ;;  %v606_v23 = vadd.f32 2.0, %v574_v10  ;;  %v590_v52 = vmul.f32 %v574_v10, %v1329_v60 }
  0xf6   :  { %892 = vst [vmem:[%s1399_s6 + $0x30] sm:$0xff] %v873_v50   ;;  %v567_v19 = vmul.f32 %v1019_v9, %v551_v15  ;;  %v559_v24 = vadd.f32 2.0, %v1023_v22  ;;  %v1025_v53 = vpop.eup %1024 }
  0xf7   :  { %v423_v17 = vadd.f32 2.0, %v391_v12  ;;  %v399_v28 = vmul.f32 %v1021_v16, %v383_v20  ;;  %v407_v6 = vmul.f32 %v391_v12, %v1332_v0  ;;  %v454_v45 = vmul.f32 %v1025_v53, %v406_v32 }
  0xf8   :  { %v599_v26 = vadd.f32 2.0, %v567_v19  ;;  %v575_v38 = vmul.f32 %v1023_v22, %v559_v24  ;;  %v583_v48 = vmul.f32 %v567_v19, %v1336_v3 }
  0xf9   :  { %1026 = vrcp.f32 %v423_v17  ;;  %v431_v31 = vadd.f32 2.0, %v399_v28  ;;  %v415_v0 = vmul.f32 %v399_v28, %v1341_v43 }
  0xfa   :  { %1028 = vrcp.f32 %v598_v14  ;;  %v607_v34 = vadd.f32 2.0, %v575_v38  ;;  %v591_v3 = vmul.f32 %v575_v38, %v1348_v30 }
  0xfb   :  { %1030 = vrcp.f32 %v430_v55 }
  0xfc   :  { %1032 = vrcp.f32 %v599_v26 }
  0xfd   :  { %1034 = vrcp.f32 %v606_v23 }
  0xfe   :  { %1036 = vrcp.f32 %v431_v31 }
  0xff   :  { %v1027_v39 = vpop.eup %1026  ;;  %1038 = vrcp.f32 %v607_v34 }
 0x100   :  { %v1029_v44 = vpop.eup %1028  ;;  %v455_v46 = vmul.f32 %v1027_v39, %v407_v6 }
 0x101   :  { %v1031_v62 = vpop.eup %1030  ;;  %v630_v61 = vmul.f32 %v1029_v44, %v582_v25 }
 0x102   :  { %v1033_v49 = vpop.eup %1032  ;;  %v818_v29 = vpack.c.bf16 %v455_v46, %v454_v45  ;;  %v462_v35 = vmul.f32 %v1031_v62, %v414_v27 }
 0x103   :  { %v1035_v41 = vpop.eup %1034  ;;  %v631_v2 = vmul.f32 %v1033_v49, %v583_v48 }
 0x104   :  { %v1037_v11 = vpop.eup %1036  ;;  %882 = vst [vmem:[%s1398_s5 + $0x18] sm:$0xff] %v818_v29   ;;  %v638_v57 = vmul.f32 %v1035_v41, %v590_v52 }
 0x105   :  { %v858_v13 = vpack.c.bf16 %v631_v2, %v630_v61  ;;  %v463_v54 = vmul.f32 %v1037_v11, %v415_v0  ;;  %v1039_v56 = vpop.eup %1038 }
 0x106   :  { %v639_v43 = vmul.f32 %v1039_v56, %v591_v3 }
 0x107   :  { %889 = vst [vmem:[%s1399_s6 + $0x18] sm:$0xff] %v858_v13   ;;  %v838_v37 = vpack.c.bf16 %v463_v54, %v462_v35 }
 0x108   :  { %v878_v60 = vpack.c.bf16 %v639_v43, %v638_v57 }
 0x109   :  { %886 = vst [vmem:[%s1398_s5 + $0x38] sm:$0xff] %v838_v37  }
 0x10a   :  { %893 = vst [vmem:[%s1399_s6 + $0x38] sm:$0xff] %v878_v60  }

// kernel: resblock_body_forward.6
= control target key start
LH: loop header
LB: loop body
LE: loop exit
PB: predicated region body
PF: predicated region fallthrough
CT: control target
= control target key end

     0   :  { %s2138_s12 = smov 0   ;;  %s2692_s0 = inlined_call_operand.vmem [shape: bf16[8,9,9,128], index: 0, kind: input, shape index: {}]   ;;  %s2693_s1 = inlined_call_operand.vmem [shape: bf16[9,128,128], index: 1, kind: input, shape index: {}]   ;;  %s2694_s2 = inlined_call_operand.vmem [shape: f32[1,128], index: 2, kind: input, shape index: {}]   ;;  %s2695_s3 = inlined_call_operand.vmem [shape: bf16[2,8,8,128], index: 3, kind: output, shape index: {}]  }
   0x1 LB: > { %s2144_s13 = sadd.s32 4294967295, %s2116_s12   ;;  %p1480_p0 = scmp.ge.s32.totalorder %s2116_s12, 1  ;;  %s2116_s12 = sphi %s2138_s12, %s13_s12  }
   0x2   : > { %p139_p1 = scmp.lt.s32.totalorder %s2116_s12, 3 }
   0x4   : > { %p140_p2 = pnand %p1480_p0, %p139_p1 }
   0x5   : > { %s1481_s16 = sshll.u32 (!%p140_p2), %s2144_s13, 2  ;;  %p171_p4 = scmp.lt.s32.totalorder (!%p140_p2), %s2144_s13, 1 }
   0x6   : > { %143 = sbr.rel (%p140_p2) target bundleno = 360 (0x168), region = 32  ;;  %p165_p3 = scmp.lt.s32.totalorder (!%p140_p2), %s1481_s16, 7 }
   0xb   : > { %v1968_v0 = vld [vmem:[%s2693_s1 + $0x78] sm:$0xff]  ;;  %v1967_v2 = vld [vmem:[%s2693_s1 + $0x70] sm:$0xff]  ;;  %s2697_s16 = smov (!%p165_p3, %s1481_s16), 7  ;;  %v1966_v6 = vld [vmem:[%s2693_s1 + $0x68] sm:$0xff]  ;;  %vm442_vm0 = vcmask 1046528   ;;  %s2699_s13 = smov (!%p171_p4, %s2144_s13), 1 }
   0xc   : > { %v1976_v1 = vld [vmem:[%s2693_s1 + $0xb8] sm:$0xff]  ;;  %2052 = vmatpush.bf16.msra.mxu1 %v1968_v0  ;;  %320 = vmatpush.bf16.msra.mxu0 %v1968_v0  ;;  %v1975_v3 = vld [vmem:[%s2693_s1 + $0xb0] sm:$0xff]  ;;  %v1974_v7 = vld [vmem:[%s2693_s1 + $0xa8] sm:$0xff]  ;;  %s2068_s6 = smul.u32 72, %s2697_s16  ;;  %s1952_s19 = sshll.u32 %s2699_s13, 5 }
   0xd   : > { %544 = vmatpush.bf16.msra.mxu2 %v1976_v1  ;;  %v1984_v4 = vld [vmem:[%s2693_s1 + $0xf8] sm:$0xff]  ;;  %v1983_v5 = vld [vmem:[%s2693_s1 + $0xf0] sm:$0xff]  ;;  %v1982_v8 = vld [vmem:[%s2693_s1 + $0xe8] sm:$0xff]  ;;  %s2673_s22 = scalar_lea.vmem %s2695_s3, %s1952_s19 }
   0xe   : > { %683 = vmatpush.bf16.msra.mxu3 %v1984_v4  ;;  %v1965_v9 = vld [vmem:[%s2693_s1 + $0x60] sm:$0xff]  ;;  %v1964_v11 = vld [vmem:[%s2693_s1 + $0x58] sm:$0xff]  ;;  %s2188_s16 = scalar_lea.vmem %s2692_s0, %s2068_s6  ;;  %v1963_v21 = vld [vmem:[%s2693_s1 + $0x50] sm:$0xff] }
   0xf   : > { %v1973_v10 = vld [vmem:[%s2693_s1 + $0xa0] sm:$0xff]  ;;  %v178_v13 = vld [vmem:[%s2188_s16 + $0x8] sm:$0xf]  ;;  %v179_v14 = vld [vmem:[%s2188_s16 + $0xc] sm:$0x1] }
  0x10   : > { %2053 = vmatpush.bf16.msra.mxu1 %v1967_v2  ;;  %321 = vmatpush.bf16.msra.mxu0 %v1967_v2  ;;  %v1981_v12 = vld [vmem:[%s2693_s1 + $0xe0] sm:$0xff]  ;;  %v1972_v15 = vld [vmem:[%s2693_s1 + $0x98] sm:$0xff]  ;;  %v2205_v19 = vunpack.c.l.bf16 %v178_v13  ;;  %v197_v20 = vunpack.c.l.bf16 %v179_v14  ;;  %v1971_v22 = vld [vmem:[%s2693_s1 + $0x90] sm:$0xff] }
  0x11   : > { %545 = vmatpush.bf16.msra.mxu2 %v1975_v3  ;;  %v2199_v16 = vld [vmem:[%s2188_s16] sm:$0xf]  ;;  %v177_v17 = vld [vmem:[%s2188_s16 + $0x4] sm:$0x1]  ;;  %v1980_v18 = vld [vmem:[%s2693_s1 + $0xd8] sm:$0xff] }
  0x12   : > { %684 = vmatpush.bf16.msra.mxu3 %v1983_v5  ;;  %v194_v23 = vunpack.c.l.bf16 %v2199_v16  ;;  %v195_v24 = vunpack.c.l.bf16 %v177_v17  ;;  %v2215_v25 = vld [vmem:[%s2188_s16 + $0x68] sm:$0xf]  ;;  %v180_v26 = vld [vmem:[%s2188_s16 + $0x10] sm:$0xf]  ;;  %v181_v27 = vld [vmem:[%s2188_s16 + $0x14] sm:$0x1] }
  0x13   : > { %v2220_v28 = vld [vmem:[%s2188_s16 + $0x70] sm:$0xf]  ;;  %v446_v29 = vrot.slane %v2205_v19, 1  ;;  %v447_v30 = vrot.slane %v197_v20, 1  ;;  %v2226_v32 = vunpack.c.l.bf16 %v180_v26  ;;  %v199_v33 = vunpack.c.l.bf16 %v181_v27  ;;  %v1962_v34 = vld [vmem:[%s2693_s1 + $0x48] sm:$0xff]  ;;  %v1961_v49 = vld [vmem:[%s2693_s1 + $0x40] sm:$0xff] }
  0x14   : > { %2054 = vmatpush.bf16.msra.mxu1 %v1966_v6  ;;  %322 = vmatpush.bf16.msra.mxu0 %v1966_v6  ;;  %v1979_v31 = vld [vmem:[%s2693_s1 + $0xd0] sm:$0xff]  ;;  %v1485_v35 = vld [vmem:[%s2188_s16 + $0x48] sm:$0xf]  ;;  %v443_v38 = vrot.slane %v194_v23, 1  ;;  %v444_v39 = vrot.slane %v195_v24, 1  ;;  %v246_v42 = vunpack.c.l.bf16 %v2215_v25  ;;  %v247_v43 = vunpack.c.l.bf16 %v2220_v28  ;;  %v1960_v53 = vld [vmem:[%s2693_s1 + $0x38] sm:$0xff] }
  0x15   : > { %546 = vmatpush.bf16.msra.mxu2 %v1974_v7  ;;  %v2233_v36 = vld [vmem:[%s2188_s16 + $0x50] sm:$0xf]  ;;  %v1970_v37 = vld [vmem:[%s2693_s1 + $0x88] sm:$0xff]  ;;  %v449_v40 = vrot.slane %v2226_v32, 1  ;;  %v450_v41 = vrot.slane %v199_v33, 1  ;;  %v242_v44 = vunpack.c.l.bf16 %v1485_v35  ;;  %v2245_v46 = vsel %vm442_vm0, %v446_v29, %v447_v30  ;;  %v1969_v54 = vld [vmem:[%s2693_s1 + $0x80] sm:$0xff] }
  0x16   : > { %685 = vmatpush.bf16.msra.mxu3 %v1982_v8  ;;  %v243_v45 = vunpack.c.l.bf16 %v2233_v36  ;;  %v1978_v47 = vld [vmem:[%s2693_s1 + $0xc8] sm:$0xff]  ;;  %v2257_v50 = vld [vmem:[%s2188_s16 + $0x90] sm:$0xf]  ;;  %v2260_v51 = vld [vmem:[%s2188_s16 + $0x98] sm:$0xf]  ;;  %v445_v55 = vsel %vm442_vm0, %v443_v38, %v444_v39  ;;  %v253_v58 = vpack.c.bf16 %v247_v43, %v246_v42 }
  0x17   : > { %v2251_v48 = vsel %vm442_vm0, %v449_v40, %v450_v41  ;;  %v1996_v56 = vld [vmem:[%s2693_s1 + $0x138] sm:$0xff]  ;;  %v598_v60 = vunpack.c.l.bf16 %v2257_v50  ;;  %v600_v61 = vunpack.c.l.bf16 %v2260_v51  ;;  %v475_v62 = vpack.c.bf16 %v2245_v46, %v445_v55  ;;  %v1977_v63 = vld [vmem:[%s2693_s1 + $0xc0] sm:$0xff]  ;;  %v1959_v0 = vld [vmem:[%s2693_s1 + $0x30] sm:$0xff] }
  0x18   : > { %2055 = vmatpush.bf16.msra.mxu1 %v1965_v9  ;;  %323 = vmatpush.bf16.msra.mxu0 %v1965_v9  ;;  %v1215_v52 = vpack.c.bf16 %v2251_v48, %v2245_v46  ;;  %v2012_v57 = vld [vmem:[%s2693_s1 + $0x1b8] sm:$0xff]  ;;  %v251_v59 = vpack.c.bf16 %v243_v45, %v242_v44  ;;  %v1995_v1 = vld [vmem:[%s2693_s1 + $0x130] sm:$0xff]  ;;  %v1958_v7 = vld [vmem:[%s2693_s1 + $0x28] sm:$0xff] }
  0x19   : > { %547 = vmatpush.bf16.msra.mxu2 %v1973_v10  ;;  %v2020_v2 = vld [vmem:[%s2693_s1 + $0x1f8] sm:$0xff]  ;;  %v2011_v5 = vld [vmem:[%s2693_s1 + $0x1b0] sm:$0xff]  ;;  %v614_v6 = vpack.c.bf16 %v600_v61, %v598_v60  ;;  %v2325_v14 = vld [vmem:[%s2188_s16 + $0x80] sm:$0xf] }
  0x1a   : > { %686 = vmatpush.bf16.msra.mxu3 %v1981_v12  ;;  %v182_v3 = vld [vmem:[%s2188_s16 + $0x18] sm:$0xf]  ;;  %v183_v4 = vld [vmem:[%s2188_s16 + $0x1c] sm:$0x1]  ;;  %v2019_v10 = vld [vmem:[%s2693_s1 + $0x1f0] sm:$0xff]  ;;  %v249_v29 = vunpack.c.l.bf16 %v2325_v14 }
  0x1b   : > { %v2310_v8 = vunpack.c.l.bf16 %v182_v3  ;;  %v201_v9 = vunpack.c.l.bf16 %v183_v4  ;;  %v2010_v12 = vld [vmem:[%s2693_s1 + $0x1a8] sm:$0xff]  ;;  %v2322_v13 = vld [vmem:[%s2188_s16 + $0x78] sm:$0xf]  ;;  %v2331_v17 = vld [vmem:[%s2188_s16 + $0x60] sm:$0xf] }
  0x1c   : > { %2056 = vmatpush.bf16.msra.mxu1 %v1964_v11  ;;  %324 = vmatpush.bf16.msra.mxu0 %v1964_v11  ;;  %v1994_v11 = vld [vmem:[%s2693_s1 + $0x128] sm:$0xff]  ;;  %v1993_v24 = vld [vmem:[%s2693_s1 + $0x120] sm:$0xff]  ;;  %v248_v27 = vunpack.c.l.bf16 %v2322_v13  ;;  %v1956_v35 = vld [vmem:[%s2693_s1 + $0x18] sm:$0xff] }
  0x1d   : > { %548 = vmatpush.bf16.msra.mxu2 %v1972_v15  ;;  %v2328_v15 = vld [vmem:[%s2188_s16 + $0x58] sm:$0xf]  ;;  %v452_v20 = vrot.slane %v2310_v8, 1  ;;  %v2009_v26 = vld [vmem:[%s2693_s1 + $0x1a0] sm:$0xff]  ;;  %v1990_v4 = vld [vmem:[%s2693_s1 + $0x108] sm:$0xff] }
  0x1e   : > { %687 = vmatpush.bf16.msra.mxu3 %v1980_v18  ;;  %v1957_v18 = vld [vmem:[%s2693_s1 + $0x20] sm:$0xff]  ;;  %v244_v30 = vunpack.c.l.bf16 %v2328_v15  ;;  %v1992_v38 = vld [vmem:[%s2693_s1 + $0x118] sm:$0xff]  ;;  %v254_v39 = vpack.c.bf16 %v249_v29, %v248_v27  ;;  %v188_v16 = vld [vmem:[%s2188_s16 + $0x30] sm:$0xf] }
  0x1f   : > { %v2351_v33 = vld [vmem:[%s2188_s16 + $0xa0] sm:$0xf]  ;;  %v185_v55 = vld [vmem:[%s2188_s16 + $0x24] sm:$0x1]  ;;  %v1704_v51 = vld [vmem:[%s2188_s16 + $0xf8] sm:$0xf] }
  0x20   : > { %2057 = vmatpush.bf16.msra.mxu1 %v1963_v21  ;;  %325 = vmatpush.bf16.msra.mxu0 %v1963_v21  ;;  %v453_v21 = vrot.slane %v201_v9, 1  ;;  %v602_v41 = vunpack.c.l.bf16 %v2351_v33  ;;  %v2017_v3 = vld [vmem:[%s2693_s1 + $0x1e0] sm:$0xff]  ;;  %v1708_v33 = vld [vmem:[%s2188_s16 + $0x108] sm:$0xf] }
  0x21   : > { %549 = vmatpush.bf16.msra.mxu2 %v1971_v22  ;;  %v2018_v22 = vld [vmem:[%s2693_s1 + $0x1e8] sm:$0xff] }
  0x22   : > { %688 = vmatpush.bf16.msra.mxu3 %v1979_v31  ;;  %v245_v31 = vunpack.c.l.bf16 %v2331_v17  ;;  %v1493_v46 = vld [vmem:[%s2188_s16 + $0x88] sm:$0xf] }
  0x23   : > { %v250_v13 = vunpack.c.l.bf16 %v1493_v46 }
  0x24   : > { %2058 = vmatpush.bf16.msra.mxu1 %v1962_v34  ;;  %326 = vmatpush.bf16.msra.mxu0 %v1962_v34  ;;  %v2354_v34 = vld [vmem:[%s2188_s16 + $0xa8] sm:$0xf]  ;;  %v252_v40 = vpack.c.bf16 %v245_v31, %v244_v30 }
  0x25   : > { %550 = vmatpush.bf16.msra.mxu2 %v1970_v37  ;;  %v2360_v37 = vsel %vm442_vm0, %v452_v20, %v453_v21  ;;  %v604_v44 = vunpack.c.l.bf16 %v2354_v34  ;;  %v1989_v20 = vld [vmem:[%s2693_s1 + $0x100] sm:$0xff]  ;;  %v1696_v21 = vld [vmem:[%s2188_s16 + $0xd8] sm:$0xf] }
  0x26   : > { %689 = vmatpush.bf16.msra.mxu3 %v1978_v47  ;;  %v476_v47 = vpack.c.bf16 %v2360_v37, %v2251_v48 }
  0x28   : > { %2059 = vmatpush.bf16.msra.mxu1 %v1961_v49  ;;  %327 = vmatpush.bf16.msra.mxu0 %v1961_v49  ;;  %v1955_v49 = vld [vmem:[%s2693_s1 + $0x10] sm:$0xff] }
  0x29   : > { %551 = vmatpush.bf16.msra.mxu2 %v1969_v54  ;;  %v184_v54 = vld [vmem:[%s2188_s16 + $0x20] sm:$0xf] }
  0x2a   : > { %690 = vmatpush.bf16.msra.mxu3 %v1977_v63  ;;  %v2397_v63 = vunpack.c.l.bf16 %v184_v54 }
  0x2b   : > { %338 = vmatmul.bf16.vlgmr.msra.gmra.mxu1 %v253_v58  ;;  %328 = vmatmul.bf16.vlgmr.msra.gmra.mxu0 %v251_v59  ;;  %v615_v58 = vpack.c.bf16 %v604_v44, %v602_v41  ;;  %v2008_v59 = vld [vmem:[%s2693_s1 + $0x198] sm:$0xff] }
  0x2c   : > { %397 = vmatpush.bf16.msrb.mxu1 %v1960_v53  ;;  %806 = vmatpush.bf16.msrb.mxu0 %v1996_v56  ;;  %v1991_v53 = vld [vmem:[%s2693_s1 + $0x110] sm:$0xff]  ;;  %v186_v56 = vld [vmem:[%s2188_s16 + $0x28] sm:$0xf]  ;;  %v455_v9 = vrot.slane %v2397_v63, 1 }
  0x2d   : > { %1066 = vmatpush.bf16.msrb.mxu2 %v2012_v57  ;;  %691 = vmatmul.bf16.vlgmr.msra.gmra.mxu3 %v614_v6  ;;  %v187_v57 = vld [vmem:[%s2188_s16 + $0x2c] sm:$0x1]  ;;  %v2016_v6 = vld [vmem:[%s2693_s1 + $0x1d8] sm:$0xff] }
  0x2e   : > { %552 = vmatmul.bf16.vlgmr.msra.gmra.mxu2 %v475_v62  ;;  %1172 = vmatpush.bf16.msrb.mxu3 %v2020_v2  ;;  %v1954_v62 = vld [vmem:[%s2693_s1 + $0x8] sm:$0xff]  ;;  %v205_v2 = vunpack.c.l.bf16 %v187_v57 }
  0x2f   : > { %v2002_v57 = vld [vmem:[%s2693_s1 + $0x168] sm:$0xff] }
  0x30   : > { %398 = vmatpush.bf16.msrb.mxu1 %v1959_v0  ;;  %807 = vmatpush.bf16.msrb.mxu0 %v1995_v1  ;;  %v203_v0 = vunpack.c.l.bf16 %v185_v55  ;;  %v2399_v1 = vunpack.c.l.bf16 %v186_v56  ;;  %v2027_v56 = vld [vmem:[%s2693_s1 + $0x230] sm:$0xff] }
  0x31   : > { %1067 = vmatpush.bf16.msrb.mxu2 %v2011_v5  ;;  %v2007_v5 = vld [vmem:[%s2693_s1 + $0x190] sm:$0xff] }
  0x32   : > { %1173 = vmatpush.bf16.msrb.mxu3 %v2019_v10  ;;  %v456_v10 = vrot.slane %v203_v0, 1 }
  0x34   : > { %399 = vmatpush.bf16.msrb.mxu1 %v1958_v7  ;;  %808 = vmatpush.bf16.msrb.mxu0 %v1994_v11  ;;  %v1953_v7 = vld [vmem:[%s2693_s1] sm:$0xff]  ;;  %v458_v11 = vrot.slane %v2399_v1, 1 }
  0x35   : > { %1068 = vmatpush.bf16.msrb.mxu2 %v2010_v12  ;;  %v459_v12 = vrot.slane %v205_v2, 1  ;;  %v2468_v2 = vunpack.c.l.bf16 %v188_v16 }
  0x36   : > { %1174 = vmatpush.bf16.msrb.mxu3 %v2018_v22  ;;  %v2028_v22 = vld [vmem:[%s2693_s1 + $0x238] sm:$0xff] }
  0x37   : > { %v999_v25 = vpack.c.bf16 %v2468_v2, %v2399_v1 }
  0x38   : > { %400 = vmatpush.bf16.msrb.mxu1 %v1957_v18  ;;  %809 = vmatpush.bf16.msrb.mxu0 %v1993_v24  ;;  %v2004_v18 = vld [vmem:[%s2693_s1 + $0x178] sm:$0xff]  ;;  %v1985_v24 = vld [vmem:[%s2188_s16 + $0xdc] sm:$0xf0] }
  0x39   : > { %1069 = vmatpush.bf16.msrb.mxu2 %v2009_v26  ;;  %v2430_v26 = vld [vmem:[%s2188_s16 + $0xb0] sm:$0xf] }
  0x3a   : > { %1175 = vmatpush.bf16.msrb.mxu3 %v2017_v3 }
  0x3b   : > { %343 = vmatmul.bf16.gmra.mxu1 %v254_v39  ;;  %333 = vmatmul.bf16.gmra.mxu0 %v252_v40  ;;  %v2439_v39 = vsel %vm442_vm0, %v458_v11, %v459_v12  ;;  %v2003_v40 = vld [vmem:[%s2693_s1 + $0x170] sm:$0xff]  ;;  %v2014_v11 = vld [vmem:[%s2693_s1 + $0x1c8] sm:$0xff]  ;;  %v2025_v12 = vld [vmem:[%s2693_s1 + $0x220] sm:$0xff] }
  0x3c   : > { %401 = vmatpush.bf16.msrb.mxu1 %v1956_v35  ;;  %810 = vmatpush.bf16.msrb.mxu0 %v1992_v38  ;;  %v2433_v35 = vld [vmem:[%s2188_s16 + $0xb8] sm:$0xf]  ;;  %v2436_v38 = vsel %vm442_vm0, %v455_v9, %v456_v10  ;;  %v2026_v9 = vld [vmem:[%s2693_s1 + $0x228] sm:$0xff]  ;;  %v2001_v10 = vld [vmem:[%s2693_s1 + $0x160] sm:$0xff] }
  0x3d   : > { %1070 = vmatpush.bf16.msrb.mxu2 %v2008_v59  ;;  %696 = vmatmul.bf16.gmra.mxu3 %v615_v58  ;;  %v608_v54 = vunpack.c.l.bf16 %v2433_v35  ;;  %v477_v55 = vpack.c.bf16 %v2439_v39, %v2436_v38  ;;  %v189_v58 = vld [vmem:[%s2188_s16 + $0x34] sm:$0x1]  ;;  %v191_v59 = vld [vmem:[%s2188_s16 + $0x3c] sm:$0x1]  ;;  %v1105_v35 = vpack.c.bf16 %v248_v27, %v247_v43  ;;  %v1216_v43 = vpack.c.bf16 %v2436_v38, %v2360_v37 }
  0x3e   : > { %557 = vmatmul.bf16.gmra.mxu2 %v476_v47  ;;  %1176 = vmatpush.bf16.msrb.mxu3 %v2016_v6  ;;  %v212_v47 = vpack.c.bf16 %v2205_v19, %v194_v23  ;;  %v190_v23 = vld [vmem:[%s2188_s16 + $0x38] sm:$0xf]  ;;  %v207_v3 = vunpack.c.l.bf16 %v189_v58  ;;  %v2005_v6 = vld [vmem:[%s2693_s1 + $0x180] sm:$0xff] }
  0x40   : > { %402 = vmatpush.bf16.msrb.mxu1 %v1955_v49  ;;  %811 = vmatpush.bf16.msrb.mxu0 %v1991_v53  ;;  %v1697_v49 = vor.u32 %v1985_v24, %v1696_v21  ;;  %v606_v53 = vunpack.c.l.bf16 %v2430_v26 }
  0x41   : > { %1071 = vmatpush.bf16.msrb.mxu2 %v2007_v5  ;;  %v209_v5 = vunpack.c.l.bf16 %v191_v59 }
  0x42   : > { %v616_v0 = vpack.c.bf16 %v608_v54, %v606_v53 }
  0x43   : > { %v465_v24 = vrot.slane %v209_v5, 1  ;;  %v1998_v5 = vld [vmem:[%s2693_s1 + $0x148] sm:$0xff] }
  0x44   : > { %403 = vmatpush.bf16.msrb.mxu1 %v1954_v62  ;;  %812 = vmatpush.bf16.msrb.mxu0 %v1990_v4  ;;  %v2006_v62 = vld [vmem:[%s2693_s1 + $0x188] sm:$0xff]  ;;  %v2470_v4 = vunpack.c.l.bf16 %v190_v23  ;;  %v1999_v23 = vld [vmem:[%s2693_s1 + $0x150] sm:$0xff] }
  0x45   : > { %1072 = vmatpush.bf16.msrb.mxu2 %v2006_v62 }
  0x46   : > { %v464_v21 = vrot.slane %v2470_v4, 1  ;;  %v215_v34 = vpack.c.bf16 %v2470_v4, %v2468_v2 }
  0x48   : > { %404 = vmatpush.bf16.msrb.mxu1 %v1953_v7  ;;  %813 = vmatpush.bf16.msrb.mxu0 %v1989_v20  ;;  %v2015_v7 = vld [vmem:[%s2693_s1 + $0x1d0] sm:$0xff]  ;;  %v462_v20 = vrot.slane %v207_v3, 1  ;;  %v2507_v58 = vsel %vm442_vm0, %v464_v21, %v465_v24  ;;  %v862_v24 = vrot.slane %v600_v61, 1  ;;  %v1987_v61 = vld [vmem:[%s2188_s16 + $0xfc] sm:$0xf0] }
  0x49   : > { %1177 = vmatpush.bf16.msrb.mxu3 %v2015_v7  ;;  %1073 = vmatpush.bf16.msrb.mxu2 %v2005_v6  ;;  %v2013_v6 = vld [vmem:[%s2693_s1 + $0x1c0] sm:$0xff]  ;;  %v2024_v7 = vld [vmem:[%s2693_s1 + $0x218] sm:$0xff] }
  0x4b   : > { %405 = vmatmul.bf16.vlgmr.msrb.gmra.mxu1 %v212_v47  ;;  %814 = vmatmul.bf16.vlgmr.msrb.gmra.mxu0 %v1697_v49  ;;  %v1700_v47 = vld [vmem:[%s2188_s16 + $0xe8] sm:$0xf]  ;;  %v1986_v49 = vld [vmem:[%s2188_s16 + $0xec] sm:$0xf0] }
  0x4c   : > { %960 = vmatpush.bf16.msra.mxu1 %v2004_v18  ;;  %1284 = vmatpush.bf16.msra.mxu0 %v2028_v22  ;;  %v461_v18 = vrot.slane %v2468_v2, 1  ;;  %v1701_v59 = vor.u32 %v1986_v49, %v1700_v47  ;;  %v2022_v47 = vld [vmem:[%s2693_s1 + $0x208] sm:$0xff] }
  0x4d   : > { %701 = vmatmul.bf16.gmra.mxu3 %v616_v0  ;;  %2060 = vmatpush.bf16.msra.mxu2 %v2028_v22  ;;  %v213_v22 = vpack.c.bf16 %v2310_v8, %v2226_v32  ;;  %v1637_v2 = vld [vmem:[%s2188_s16 + $0xcc] sm:$0x1] }
  0x4e   : > { %562 = vmatmul.bf16.gmra.mxu2 %v477_v55  ;;  %v2498_v55 = vld [vmem:[%s2188_s16 + $0xc0] sm:$0xf]  ;;  %1178 = vmatpush.bf16.msrb.mxu3 %v2014_v11  ;;  %v2504_v16 = vsel %vm442_vm0, %v461_v18, %v462_v20  ;;  %v2023_v18 = vld [vmem:[%s2693_s1 + $0x210] sm:$0xff]  ;;  %v1625_v20 = vld [vmem:[%s2188_s16 + $0x9c] sm:$0x1] }
  0x4f   : > { %v610_v62 = vunpack.c.l.bf16 %v2498_v55  ;;  %v478_v3 = vpack.c.bf16 %v2507_v58, %v2504_v16  ;;  %v1997_v11 = vld [vmem:[%s2693_s1 + $0x140] sm:$0xff]  ;;  %v601_v50 = vunpack.c.l.bf16 %v1625_v20  ;;  %v1104_v20 = vpack.c.bf16 %v246_v42, %v245_v31 }
  0x50   : > { %961 = vmatpush.bf16.msra.mxu1 %v2003_v40  ;;  %1285 = vmatpush.bf16.msra.mxu0 %v2027_v56  ;;  %v2000_v40 = vld [vmem:[%s2693_s1 + $0x158] sm:$0xff]  ;;  %v1217_v38 = vpack.c.bf16 %v2504_v16, %v2439_v39 }
  0x51   : > { %2061 = vmatpush.bf16.msra.mxu2 %v2027_v56 }
  0x52   : > { %1179 = vmatpush.bf16.msrb.mxu3 %v2013_v6  ;;  %v1627_v6 = vld [vmem:[%s2188_s16 + $0xa4] sm:$0x1] }
  0x54   : > { %962 = vmatpush.bf16.msra.mxu1 %v2002_v57  ;;  %1286 = vmatpush.bf16.msra.mxu0 %v2026_v9  ;;  %v2501_v57 = vld [vmem:[%s2188_s16 + $0xc8] sm:$0xf] }
  0x55   : > { %v612_v0 = vunpack.c.l.bf16 %v2501_v57  ;;  %2062 = vmatpush.bf16.msra.mxu2 %v2026_v9  ;;  %v1623_v9 = vld [vmem:[%s2188_s16 + $0x94] sm:$0x1]  ;;  %v1106_v57 = vpack.c.bf16 %v250_v13, %v249_v29 }
  0x56   : > { %v599_v21 = vunpack.c.l.bf16 %v1623_v9  ;;  %v865_v9 = vrot.slane %v602_v41, 1  ;;  %v1988_v41 = vld [vmem:[%s2188_s16 + $0x10c] sm:$0xf0] }
  0x57   : > { %v617_v56 = vpack.c.bf16 %v612_v0, %v610_v62 }
  0x58   : > { %963 = vmatpush.bf16.msra.mxu1 %v2001_v10  ;;  %1287 = vmatpush.bf16.msra.mxu0 %v2025_v12  ;;  %v859_v10 = vrot.slane %v598_v60, 1  ;;  %v860_v60 = vrot.slane %v599_v21, 1  ;;  %v1631_v21 = vld [vmem:[%s2188_s16 + $0xb4] sm:$0x1] }
  0x59   : > { %2063 = vmatpush.bf16.msra.mxu2 %v2025_v12  ;;  %v214_v12 = vpack.c.bf16 %v2399_v1, %v2397_v63  ;;  %v1635_v1 = vld [vmem:[%s2188_s16 + $0xc4] sm:$0x1] }
  0x5a   : > { %v861_v49 = vsel %vm442_vm0, %v859_v10, %v860_v60  ;;  %v874_v60 = vrot.slane %v608_v54, 1  ;;  %v611_v48 = vunpack.c.l.bf16 %v1635_v1 }
  0x5b   : > { %410 = vmatmul.bf16.gmra.mxu1 %v213_v22  ;;  %819 = vmatmul.bf16.gmra.mxu0 %v1701_v59  ;;  %v1705_v59 = vor.u32 %v1987_v61, %v1704_v51 }
  0x5c   : > { %964 = vmatpush.bf16.msra.mxu1 %v2000_v40  ;;  %1288 = vmatpush.bf16.msra.mxu0 %v2024_v7  ;;  %v863_v40 = vrot.slane %v601_v50, 1  ;;  %v871_v50 = vrot.slane %v606_v53, 1  ;;  %v192_v53 = vld [vmem:[%s2188_s16 + $0x40] sm:$0xf]  ;;  %v878_v28 = vrot.slane %v611_v48, 1 }
  0x5d   : > { %706 = vmatmul.bf16.gmra.mxu3 %v617_v56  ;;  %2064 = vmatpush.bf16.msra.mxu2 %v2024_v7  ;;  %v1103_v56 = vpack.c.bf16 %v244_v30, %v243_v45  ;;  %v1629_v7 = vld [vmem:[%s2188_s16 + $0xac] sm:$0x1]  ;;  %v210_v54 = vunpack.c.l.bf16 %v192_v53 }
  0x5e   : > { %567 = vmatmul.bf16.gmra.mxu2 %v478_v3  ;;  %v997_v3 = vpack.c.bf16 %v2226_v32, %v2205_v19  ;;  %v868_v19 = vrot.slane %v604_v44, 1  ;;  %v603_v32 = vunpack.c.l.bf16 %v1627_v6  ;;  %v605_v36 = vunpack.c.l.bf16 %v1629_v7 }
  0x5f   : > { %v1709_v44 = vor.u32 %v1988_v41, %v1708_v33  ;;  %v1000_v27 = vpack.c.bf16 %v210_v54, %v2470_v4 }
  0x60   : > { %965 = vmatpush.bf16.msra.mxu1 %v1999_v23  ;;  %1289 = vmatpush.bf16.msra.mxu0 %v2023_v18  ;;  %v864_v23 = vsel %vm442_vm0, %v862_v24, %v863_v40  ;;  %v866_v45 = vrot.slane %v603_v32, 1  ;;  %v869_v15 = vrot.slane %v605_v36, 1  ;;  %v1633_v24 = vld [vmem:[%s2188_s16 + $0xbc] sm:$0x1] }
  0x61   : > { %v891_v22 = vpack.c.bf16 %v864_v23, %v861_v49  ;;  %2065 = vmatpush.bf16.msra.mxu2 %v2023_v18  ;;  %v998_v18 = vpack.c.bf16 %v2397_v63, %v2310_v8  ;;  %v607_v8 = vunpack.c.l.bf16 %v1631_v21  ;;  %v609_v63 = vunpack.c.l.bf16 %v1633_v24 }
  0x62   : > { %v867_v30 = vsel %vm442_vm0, %v865_v9, %v866_v45  ;;  %v870_v10 = vsel %vm442_vm0, %v868_v19, %v869_v15  ;;  %v880_v49 = vrot.slane %v612_v0, 1 }
  0x63   : > { %v872_v40 = vrot.slane %v607_v8, 1  ;;  %v875_v17 = vrot.slane %v609_v63, 1 }
  0x64   : > { %966 = vmatpush.bf16.msra.mxu1 %v1998_v5  ;;  %1290 = vmatpush.bf16.msra.mxu0 %v2022_v47  ;;  %v2021_v5 = vld [vmem:[%s2693_s1 + $0x200] sm:$0xff] }
  0x65   : > { %2066 = vmatpush.bf16.msra.mxu2 %v2022_v47  ;;  %v873_v42 = vsel %vm442_vm0, %v871_v50, %v872_v40  ;;  %v876_v31 = vsel %vm442_vm0, %v874_v60, %v875_v17  ;;  %v877_v47 = vrot.slane %v610_v62, 1  ;;  %v193_v62 = vld [vmem:[%s2188_s16 + $0x44] sm:$0x1] }
  0x66   : > { %v893_v26 = vpack.c.bf16 %v876_v31, %v873_v42  ;;  %v211_v0 = vunpack.c.l.bf16 %v193_v62 }
  0x67   : > { %v879_v51 = vsel %vm442_vm0, %v877_v47, %v878_v28 }
  0x68   : > { %967 = vmatpush.bf16.msra.mxu1 %v1997_v11  ;;  %1291 = vmatpush.bf16.msra.mxu0 %v2021_v5  ;;  %v892_v11 = vpack.c.bf16 %v870_v10, %v867_v30 }
  0x69   : > { %2067 = vmatpush.bf16.msra.mxu2 %v2021_v5 }
  0x6b   : > { %415 = vmatmul.bf16.gmra.mxu1 %v214_v12  ;;  %824 = vmatmul.bf16.gmra.mxu0 %v1705_v59  ;;  %v1212_v12 = vrot.slane %v211_v0, 1 }
  0x6d   : > { %1180 = vmatmul.bf16.vlgmr.msrb.gmra.mxu3 %v1103_v56 }
  0x6e   : > { %1074 = vmatmul.bf16.vlgmr.msrb.gmra.mxu2 %v997_v3 }
  0x7b   : > { %420 = vmatmul.bf16.gmra.mxu1 %v215_v34  ;;  %829 = vmatmul.bf16.gmra.mxu0 %v1709_v44 }
  0x7d   : > { %1185 = vmatmul.bf16.gmra.mxu3 %v1104_v20 }
  0x7e   : > { %1079 = vmatmul.bf16.gmra.mxu2 %v998_v18 }
  0x8b   : > { %968 = vmatmul.bf16.vlgmr.msra.gmra.mxu1 %v891_v22  ;;  %1292 = vmatmul.bf16.vlgmr.msra.gmra.mxu0 %v1215_v52  ;;  %v613_v52 = vunpack.c.l.bf16 %v1637_v2  ;;  %v1211_v22 = vrot.slane %v210_v54, 1 }
  0x8d   : > { %1190 = vmatmul.bf16.gmra.mxu3 %v1105_v35  ;;  %v881_v23 = vrot.slane %v613_v52, 1  ;;  %v1213_v37 = vsel %vm442_vm0, %v1211_v22, %v1212_v12 }
  0x8e   : > { %1084 = vmatmul.bf16.gmra.mxu2 %v999_v25  ;;  %v1218_v4 = vpack.c.bf16 %v1213_v37, %v2507_v58 }
  0x8f   : > { %v882_v61 = vsel %vm442_vm0, %v880_v49, %v881_v23 }
  0x90   : > { %v894_v55 = vpack.c.bf16 %v882_v61, %v879_v51 }
  0x9b   : > { %973 = vmatmul.bf16.gmra.mxu1 %v892_v11  ;;  %1297 = vmatmul.bf16.gmra.mxu0 %v1216_v43 }
  0x9d   : > { %1195 = vmatmul.bf16.gmra.mxu3 %v1106_v57 }
  0x9e   : > { %1089 = vmatmul.bf16.gmra.mxu2 %v1000_v27 }
  0xa8   : > { %v339_v59 = vpop.f32.mrf.mxu1  ;;  %v329_v3 = vpop.f32.mrf.mxu0 }
  0xab   : > { %978 = vmatmul.bf16.gmra.mxu1 %v893_v26  ;;  %1302 = vmatmul.bf16.gmra.mxu0 %v1217_v38 }
  0xae   : > { %1307 = vmatmul.bf16.vlgmr.msra.gmra.mxu2 %v1218_v4 }
  0xb0   : > { %v341_v14 = vpop.f32.mrf.mxu1  ;;  %v331_v29 = vpop.f32.mrf.mxu0 }
  0xb1   : > { %v553_v56 = vpop.f32.mrf.mxu2  ;;  %v692_v5 = vpop.f32.mrf.mxu3 }
  0xb8   : > { %v344_v7 = vpop.f32.mrf.mxu1  ;;  %v334_v9 = vpop.f32.mrf.mxu0 }
  0xb9   : > { %v555_v6 = vpop.f32.mrf.mxu2  ;;  %v2616_v19 = vpop.f32.mrf.mxu3 }
  0xbb   : > { %983 = vmatmul.bf16.gmra.mxu1 %v894_v55 }
  0xc0   : > { %v346_v36 = vpop.f32.mrf.mxu1  ;;  %v336_v39 = vpop.f32.mrf.mxu0 }
  0xc1   : > { %v558_v32 = vpop.f32.mrf.mxu2  ;;  %v697_v16 = vpop.f32.mrf.mxu3 }
  0xc8   : > { %v406_v45 = vpop.f32.mrf.mxu1  ;;  %v815_v15 = vpop.f32.mrf.mxu0 }
  0xc9   : > { %v560_v58 = vpop.f32.mrf.mxu2  ;;  %v407_v30 = vadd.f32 %v406_v45, %v329_v3  ;;  %v2618_v11 = vpop.f32.mrf.mxu3 }
  0xcb   : > { %v573_v10 = vadd.f32 %v553_v56, %v407_v30 }
  0xcd   : > { %v712_v33 = vadd.f32 %v692_v5, %v573_v10 }
  0xcf   : > { %v835_v41 = vadd.f32 %v815_v15, %v712_v33 }
  0xd0   : > { %v408_v44 = vpop.f32.mrf.mxu1  ;;  %v817_v18 = vpop.f32.mrf.mxu0 }
  0xd1   : > { %v563_v34 = vpop.f32.mrf.mxu2  ;;  %v409_v20 = vadd.f32 %v408_v44, %v331_v29  ;;  %v702_v24 = vpop.f32.mrf.mxu3 }
  0xd3   : > { %v574_v21 = vadd.f32 %v555_v6, %v409_v20 }
  0xd8   : > { %v411_v60 = vpop.f32.mrf.mxu1  ;;  %v820_v8 = vpop.f32.mrf.mxu0 }
  0xd9   : > { %v565_v50 = vpop.f32.mrf.mxu2  ;;  %v412_v63 = vadd.f32 %v411_v60, %v334_v9  ;;  %v2620_v31 = vpop.f32.mrf.mxu3 }
  0xdb   : > { %v575_v40 = vadd.f32 %v558_v32, %v412_v63 }
  0xdd   : > { %v714_v17 = vadd.f32 %v697_v16, %v575_v40 }
  0xdf   : > { %v837_v25 = vadd.f32 %v820_v8, %v714_v17 }
  0xe0   : > { %v413_v26 = vpop.f32.mrf.mxu1  ;;  %v2622_v35 = vpop.f32.mrf.mxu0 }
  0xe1   : > { %v568_v42 = vpop.f32.mrf.mxu2  ;;  %v414_v53 = vadd.f32 %v413_v26, %v336_v39  ;;  %v707_v46 = vpop.f32.mrf.mxu3  ;;  %v713_v39 = vadd.f32 %v2616_v19, %v574_v21 }
  0xe3   : > { %v576_v54 = vadd.f32 %v560_v58, %v414_v53  ;;  %v2642_v58 = vld [vmem:[%s2694_s2] ss:$0 sm:$0xff]  ;;  %v836_v45 = vadd.f32 %v817_v18, %v713_v39 }
  0xe5   : > { %v715_v63 = vadd.f32 %v2618_v11, %v576_v54 }
  0xe8   : > { %v416_v2 = vpop.f32.mrf.mxu1  ;;  %v825_v47 = vpop.f32.mrf.mxu0 }
  0xe9   : > { %v570_v1 = vpop.f32.mrf.mxu2  ;;  %v417_v49 = vadd.f32 %v416_v2, %v339_v59  ;;  %v2630_v61 = vpop.f32.mrf.mxu3 }
  0xeb   : > { %v577_v48 = vadd.f32 %v563_v34, %v417_v49  ;;  %v838_v49 = vadd.f32 %v2622_v35, %v715_v63 }
  0xed   : > { %v716_v52 = vadd.f32 %v702_v24, %v577_v48 }
  0xef   : > { %v2624_v28 = vadd.f32 %v825_v47, %v716_v52 }
  0xf0   : > { %v418_v43 = vpop.f32.mrf.mxu1  ;;  %v2626_v13 = vpop.f32.mrf.mxu0 }
  0xf1   : > { %v1075_v23 = vpop.f32.mrf.mxu2  ;;  %v419_v27 = vadd.f32 %v418_v43, %v341_v14  ;;  %v1181_v37 = vpop.f32.mrf.mxu3 }
  0xf3   : > { %v2628_v51 = vadd.f32 %v565_v50, %v419_v27 }
  0xf8   : > { %v421_v62 = vpop.f32.mrf.mxu1  ;;  %v830_v57 = vpop.f32.mrf.mxu0 }
  0xf9   : > { %v1077_v55 = vpop.f32.mrf.mxu2  ;;  %v422_v0 = vadd.f32 %v421_v62, %v344_v7  ;;  %v1183_v14 = vpop.f32.mrf.mxu3 }
  0xfb   : > { %v579_v22 = vadd.f32 %v568_v42, %v422_v0 }
  0xfd   : > { %v718_v12 = vadd.f32 %v707_v46, %v579_v22 }
  0xff   : > { %v2632_v38 = vadd.f32 %v830_v57, %v718_v12 }
 0x100   : > { %v423_v59 = vpop.f32.mrf.mxu1  ;;  %v2634_v3 = vpop.f32.mrf.mxu0 }
 0x101   : > { %v1080_v4 = vpop.f32.mrf.mxu2  ;;  %v424_v56 = vadd.f32 %v423_v59, %v346_v36  ;;  %v1186_v34 = vpop.f32.mrf.mxu3 }
 0x103   : > { %v2636_v29 = vadd.f32 %v570_v1, %v424_v56 }
 0x108   : > { %v969_v5 = vpop.f32.mrf.mxu1  ;;  %v1293_v6 = vpop.f32.mrf.mxu0 }
 0x109   : > { %v989_v9 = vadd.f32 %v969_v5, %v835_v41  ;;  %v1082_v32 = vpop.f32.mrf.mxu2  ;;  %v1188_v42 = vpop.f32.mrf.mxu3 }
 0x10b   : > { %v1095_v7 = vadd.f32 %v1075_v23, %v989_v9 }
 0x10d   : > { %v1201_v16 = vadd.f32 %v1181_v37, %v1095_v7 }
 0x10f   : > { %v1313_v15 = vadd.f32 %v1293_v6, %v1201_v16  ;;  %v717_v6 = vadd.f32 %v2620_v31, %v2628_v51 }
 0x110   : > { %v971_v30 = vpop.f32.mrf.mxu1  ;;  %v1295_v36 = vpop.f32.mrf.mxu0 }
 0x111   : > { %v2645_v10 = vadd.f32 %v2642_v58, %v1313_v15  ;;  %v990_v33 = vadd.f32 %v971_v30, %v836_v45  ;;  %v1085_v19 = vpop.f32.mrf.mxu2  ;;  %v1191_v22 = vpop.f32.mrf.mxu3  ;;  %v840_v15 = vadd.f32 %v2626_v13, %v717_v6 }
 0x113   : > { %v1333_v41 = vmin.f32 %v2645_v10, 20.0  ;;  %v1096_v44 = vadd.f32 %v1077_v55, %v990_v33 }
 0x115   : > { %v1341_v20 = vmul.f32 1.442695, %v1333_v41  ;;  %v1202_v21 = vadd.f32 %v1183_v14, %v1096_v44 }
 0x117   : > { %2078 = vpow2.f32 %v1341_v20  ;;  %v1314_v24 = vadd.f32 %v1295_v36, %v1202_v21 }
 0x118   : > { %v974_v50 = vpop.f32.mrf.mxu1  ;;  %v1298_v60 = vpop.f32.mrf.mxu0 }
 0x119   : > { %v1326_v18 = vadd.f32 %v2642_v58, %v1314_v24  ;;  %v991_v8 = vadd.f32 %v974_v50, %v837_v25  ;;  %v1087_v47 = vpop.f32.mrf.mxu2  ;;  %v1193_v36 = vpop.f32.mrf.mxu3 }
 0x11b   : > { %v1334_v40 = vmin.f32 %v1326_v18, 20.0  ;;  %v1097_v17 = vadd.f32 %v1080_v4, %v991_v8 }
 0x11d   : > { %v2079_v26 = vpop.eup %2078  ;;  %v1343_v53 = vmul.f32 1.442695, %v1334_v40  ;;  %v1203_v1 = vadd.f32 %v1186_v34, %v1097_v17 }
 0x11e   : > { %v1357_v2 = vadd.f32 2.0, %v2079_v26 }
 0x11f   : > { %2080 = vpow2.f32 %v1343_v53  ;;  %v1315_v46 = vadd.f32 %v1298_v60, %v1203_v1 }
 0x120   : > { %v976_v48 = vpop.f32.mrf.mxu1  ;;  %v1300_v52 = vpop.f32.mrf.mxu0  ;;  %v1365_v11 = vmul.f32 %v2079_v26, %v1357_v2 }
 0x121   : > { %v2652_v23 = vadd.f32 %v2642_v58, %v1315_v46  ;;  %v992_v25 = vadd.f32 %v976_v48, %v838_v49  ;;  %v1090_v37 = vpop.f32.mrf.mxu2  ;;  %v1196_v49 = vpop.f32.mrf.mxu3  ;;  %v719_v46 = vadd.f32 %v2630_v61, %v2636_v29 }
 0x122   : > { %v1381_v57 = vadd.f32 2.0, %v1365_v11  ;;  %v1373_v34 = vmul.f32 %v1365_v11, %v2645_v10 }
 0x123   : > { %v1335_v54 = vmin.f32 %v2652_v23, 20.0  ;;  %v1098_v43 = vadd.f32 %v1082_v32, %v992_v25 }
 0x125   : > { %v2081_v27 = vpop.eup %2080  ;;  %v1345_v55 = vmul.f32 1.442695, %v1335_v54  ;;  %v1204_v62 = vadd.f32 %v1188_v42, %v1098_v43 }
 0x126   : > { %v1358_v0 = vadd.f32 2.0, %v2081_v27 }
 0x127   : > { %2082 = vpow2.f32 %v1345_v55  ;;  %v1316_v35 = vadd.f32 %v1300_v52, %v1204_v62  ;;  %v842_v55 = vadd.f32 %v2634_v3, %v719_v46 }
 0x128   : > { %v1366_v12 = vmul.f32 %v2081_v27, %v1358_v0  ;;  %v979_v4 = vpop.f32.mrf.mxu1  ;;  %2084 = vrcp.f32 %v1381_v57  ;;  %v1303_v5 = vpop.f32.mrf.mxu0 }
 0x129   : > { %v2657_v59 = vadd.f32 %v2642_v58, %v1316_v35  ;;  %v993_v56 = vadd.f32 %v979_v4, %v2624_v28  ;;  %v1092_v20 = vpop.f32.mrf.mxu2 }
 0x12a   : > { %v1382_v14 = vadd.f32 2.0, %v1366_v12  ;;  %v1374_v31 = vmul.f32 %v1366_v12, %v1326_v18 }
 0x12b   : > { %v1336_v9 = vmin.f32 %v2657_v59, 20.0  ;;  %v1099_v32 = vadd.f32 %v1085_v19, %v993_v56 }
 0x12c   : > { %2086 = vrcp.f32 %v1382_v14 }
 0x12d   : > { %v2083_v39 = vpop.eup %2082  ;;  %v1347_v7 = vmul.f32 1.442695, %v1336_v9  ;;  %v1205_v16 = vadd.f32 %v1191_v22, %v1099_v32 }
 0x12e   : > { %v1359_v45 = vadd.f32 2.0, %v2083_v39  ;;  %v2085_v28 = vpop.eup %2084 }
 0x12f   : > { %2088 = vpow2.f32 %v1347_v7  ;;  %v1317_v30 = vadd.f32 %v1303_v5, %v1205_v16  ;;  %v1397_v21 = vmul.f32 %v2085_v28, %v1373_v34  ;;  %v1198_v5 = vpop.f32.mrf.mxu3 }
 0x130   : > { %v981_v33 = vpop.f32.mrf.mxu1  ;;  %v1367_v19 = vmul.f32 %v2083_v39, %v1359_v45  ;;  %v1305_v10 = vpop.f32.mrf.mxu0 }
 0x131   : > { %v2667_v51 = vadd.f32 %v2642_v58, %v1317_v30  ;;  %v994_v41 = vadd.f32 %v981_v33, %v840_v15  ;;  %v1308_v25 = vpop.f32.mrf.mxu2 }
 0x132   : > { %v2087_v44 = vpop.eup %2086  ;;  %v1383_v40 = vadd.f32 2.0, %v1367_v19  ;;  %v1375_v0 = vmul.f32 %v1367_v19, %v2652_v23 }
 0x133   : > { %v1398_v24 = vmul.f32 %v2087_v44, %v1374_v31  ;;  %v1337_v13 = vmin.f32 %v2667_v51, 20.0  ;;  %v1100_v50 = vadd.f32 %v1087_v47, %v994_v41 }
 0x135   : > { %v2089_v60 = vpop.eup %2088  ;;  %v2032_v18 = vpack.c.bf16 %v1398_v24, %v1397_v21  ;;  %v1349_v8 = vmul.f32 1.442695, %v1337_v13  ;;  %v1206_v63 = vadd.f32 %v1193_v36, %v1100_v50 }
 0x136   : > { %v1360_v17 = vadd.f32 2.0, %v2089_v60 }
 0x137   : > { %2033 = vst [vmem:[%s2673_s22] sm:$0xff] %v2032_v18   ;;  %2090 = vpow2.f32 %v1349_v8  ;;  %v1318_v42 = vadd.f32 %v1305_v10, %v1206_v63 }
 0x138   : > { %v1368_v26 = vmul.f32 %v2089_v60, %v1360_v17  ;;  %v984_v53 = vpop.f32.mrf.mxu1  ;;  %2092 = vrcp.f32 %v1383_v40 }
 0x139   : > { %v1330_v1 = vadd.f32 %v2642_v58, %v1318_v42  ;;  %v995_v2 = vadd.f32 %v984_v53, %v2632_v38  ;;  %v1310_v23 = vpop.f32.mrf.mxu2 }
 0x13a   : > { %v1384_v47 = vadd.f32 2.0, %v1368_v26  ;;  %v1376_v22 = vmul.f32 %v1368_v26, %v2657_v59 }
 0x13b   : > { %v1338_v48 = vmin.f32 %v1330_v1, 20.0  ;;  %v1101_v52 = vadd.f32 %v1090_v37, %v995_v2 }
 0x13c   : > { %2094 = vrcp.f32 %v1384_v47 }
 0x13d   : > { %v2091_v11 = vpop.eup %2090  ;;  %v1351_v54 = vmul.f32 1.442695, %v1338_v48  ;;  %v1207_v43 = vadd.f32 %v1196_v49, %v1101_v52 }
 0x13e   : > { %v1361_v27 = vadd.f32 2.0, %v2091_v11  ;;  %v2093_v57 = vpop.eup %2092 }
 0x13f   : > { %2096 = vpow2.f32 %v1351_v54  ;;  %v1319_v62 = vadd.f32 %v1308_v25, %v1207_v43  ;;  %v1399_v37 = vmul.f32 %v2093_v57, %v1375_v0 }
 0x140   : > { %v986_v38 = vpop.f32.mrf.mxu1  ;;  %v1369_v12 = vmul.f32 %v2091_v11, %v1361_v27 }
 0x141   : > { %v1331_v61 = vadd.f32 %v2642_v58, %v1319_v62  ;;  %v996_v29 = vadd.f32 %v986_v38, %v842_v55 }
 0x142   : > { %v2095_v35 = vpop.eup %2094  ;;  %v1385_v39 = vadd.f32 2.0, %v1369_v12  ;;  %v1377_v31 = vmul.f32 %v1369_v12, %v2667_v51 }
 0x143   : > { %v1400_v4 = vmul.f32 %v2095_v35, %v1376_v22  ;;  %v1339_v56 = vmin.f32 %v1331_v61, 20.0  ;;  %v1102_v14 = vadd.f32 %v1092_v20, %v996_v29 }
 0x145   : > { %v2097_v3 = vpop.eup %2096  ;;  %v2037_v6 = vpack.c.bf16 %v1400_v4, %v1399_v37  ;;  %v1353_v9 = vmul.f32 1.442695, %v1339_v56  ;;  %v1208_v32 = vadd.f32 %v1198_v5, %v1102_v14 }
 0x146   : > { %v1362_v7 = vadd.f32 2.0, %v2097_v3 }
 0x147   : > { %2049 = vst [vmem:[%s2673_s22 + $0x8] sm:$0xff] %v2037_v6   ;;  %2098 = vpow2.f32 %v1353_v9  ;;  %v1320_v59 = vadd.f32 %v1310_v23, %v1208_v32 }
 0x148   : > { %v1370_v16 = vmul.f32 %v2097_v3, %v1362_v7  ;;  %2100 = vrcp.f32 %v1385_v39 }
 0x149   : > { %v1332_v45 = vadd.f32 %v2642_v58, %v1320_v59 }
 0x14a   : > { %v1386_v15 = vadd.f32 2.0, %v1370_v16  ;;  %v1378_v41 = vmul.f32 %v1370_v16, %v1330_v1 }
 0x14b   : > { %v1340_v30 = vmin.f32 %v1332_v45, 20.0 }
 0x14c   : > { %2102 = vrcp.f32 %v1386_v15 }
 0x14d   : > { %v2099_v28 = vpop.eup %2098  ;;  %v1355_v36 = vmul.f32 1.442695, %v1340_v30 }
 0x14e   : > { %v1363_v33 = vadd.f32 2.0, %v2099_v28  ;;  %v2101_v34 = vpop.eup %2100 }
 0x14f   : > { %2104 = vpow2.f32 %v1355_v36  ;;  %v1401_v20 = vmul.f32 %v2101_v34, %v1377_v31 }
 0x150   : > { %v1371_v19 = vmul.f32 %v2099_v28, %v1363_v33 }
 0x152   : > { %v2103_v44 = vpop.eup %2102  ;;  %v1387_v13 = vadd.f32 2.0, %v1371_v19  ;;  %v1379_v8 = vmul.f32 %v1371_v19, %v1331_v61 }
 0x153   : > { %v1402_v21 = vmul.f32 %v2103_v44, %v1378_v41 }
 0x154   : > { %2106 = vrcp.f32 %v1387_v13 }
 0x155   : > { %v2105_v24 = vpop.eup %2104  ;;  %v2042_v58 = vpack.c.bf16 %v1402_v21, %v1401_v20 }
 0x156   : > { %v1364_v50 = vadd.f32 2.0, %v2105_v24 }
 0x157   : > { %2050 = vst [vmem:[%s2673_s22 + $0x10] sm:$0xff] %v2042_v58  }
 0x158   : > { %v1372_v10 = vmul.f32 %v2105_v24, %v1364_v50 }
 0x15a   : > { %v1388_v60 = vadd.f32 2.0, %v1372_v10  ;;  %v2107_v18 = vpop.eup %2106  ;;  %v1380_v63 = vmul.f32 %v1372_v10, %v1332_v45 }
 0x15b   : > { %v1403_v51 = vmul.f32 %v2107_v18, %v1379_v8 }
 0x15c   : > { %2108 = vrcp.f32 %v1388_v60 }
 0x162   : > { %v2109_v40 = vpop.eup %2108 }
 0x163   : > { %v1404_v17 = vmul.f32 %v2109_v40, %v1380_v63 }
 0x165   : > { %v2047_v42 = vpack.c.bf16 %v1404_v17, %v1403_v51 }
 0x167   : > { %2051 = vst [vmem:[%s2673_s22 + $0x18] sm:$0xff] %v2047_v42  }
 0x168 PF: > { %s13_s12 = sadd.s32 1, %s2116_s12  }
 0x169   : > { %p10_p5 = scmp.ge.s32.totalorder %s13_s12, 4  }
 0x16b   :  { %12 = sbr.rel (!%p10_p5) target bundleno = 1 (0x1), region = 73 }

// kernel: resblock_body_forward.8
= control target key start
LH: loop header
LB: loop body
LE: loop exit
PB: predicated region body
PF: predicated region fallthrough
CT: control target
= control target key end

     0   :  { %s2333_s18 = smov 0   ;;  %s2822_s0 = inlined_call_operand.vmem [shape: bf16[2,8,8,128], index: 0, kind: input, shape index: {}]   ;;  %s2823_s1 = inlined_call_operand.vmem [shape: bf16[128,128], index: 1, kind: input, shape index: {}]   ;;  %s2824_s2 = inlined_call_operand.vmem [shape: f32[1,128], index: 2, kind: input, shape index: {}]   ;;  %s2825_s3 = inlined_call_operand.vmem [shape: bf16[9,128,128], index: 3, kind: input, shape index: {}]   ;;  %s2826_s4 = inlined_call_operand.vmem [shape: f32[1,128], index: 4, kind: input, shape index: {}]   ;;  %s2827_s5 = inlined_call_operand.vmem [shape: bf16[2,8,8,128], index: 5, kind: output, shape index: {}]  }
   0x1 LB: > { %s1616_s19 = sadd.s32 4294967295, %s2300_s18   ;;  %p1620_p0 = scmp.ge.s32.totalorder %s2300_s18, 1  ;;  %s2300_s18 = sphi %s2333_s18, %s15_s18  }
   0x2   : > { %p187_p1 = scmp.lt.s32.totalorder %s2300_s18, 3 }
   0x4   : > { %p188_p2 = pnand %p1620_p0, %p187_p1 }
   0x5   : > { %p215_p3 = scmp.lt.s32.totalorder (!%p188_p2), %s1616_s19, 1 }
   0x6   : > { %191 = sbr.rel (%p188_p2) target bundleno = 546 (0x222), region = 40 }
   0xb   : > { %v2084_v0 = vld [vmem:[%s2823_s1 + $0x38] sm:$0xff]  ;;  %v2083_v1 = vld [vmem:[%s2823_s1 + $0x30] sm:$0xff]  ;;  %v2082_v2 = vld [vmem:[%s2823_s1 + $0x28] sm:$0xff]  ;;  %s2829_s19 = smov (!%p215_p3, %s1616_s19), 1  ;;  %v2302_v24 = vmov 0.0  }
   0xc   : > { %313 = vmatpush.bf16.msra.mxu0 %v2084_v0  ;;  %2199 = vmatpush.bf16.msra.mxu2 %v2084_v0  ;;  %v2081_v3 = vld [vmem:[%s2823_s1 + $0x20] sm:$0xff]  ;;  %v2080_v4 = vld [vmem:[%s2823_s1 + $0x18] sm:$0xff]  ;;  %v2079_v5 = vld [vmem:[%s2823_s1 + $0x10] sm:$0xff]  ;;  %s2075_s9 = sshll.u32 %s2829_s19, 5  ;;  %416 = vst [vmem:[#allocation2 + $0x10] sm:$0xff] %v2302_v24 }
   0xd   : > { %v2078_v6 = vld [vmem:[%s2823_s1 + $0x8] sm:$0xff]  ;;  %v2077_v7 = vld [vmem:[%s2823_s1] sm:$0xff]  ;;  %s2373_s14 = scalar_lea.vmem %s2822_s0, %s2075_s9  ;;  %v2100_v12 = vld [vmem:[%s2825_s3 + $0x78] sm:$0xff]  ;;  %417 = vst [vmem:[#allocation2 + $0x18] sm:$0x3] %v2302_v24  ;;  %s2800_s20 = scalar_lea.vmem %s2827_s5, %s2075_s9 }
   0xe   : > { %v2376_v8 = vld [vmem:[%s2373_s14] sm:$0xff]   ;;  %v2194_v9 = vld [vmem:[%s2373_s14 + $0x10] sm:$0xff]   ;;  %v2193_v10 = vld [vmem:[%s2373_s14 + $0x8] sm:$0xff]   ;;  %548 = vmatpush.bf16.msra.mxu1 %v2100_v12  ;;  %2207 = vmatpush.bf16.msra.mxu3 %v2100_v12  ;;  %414 = vst [vmem:[#allocation2] sm:$0xff] %v2302_v24 }
   0xf   : > { %v2195_v11 = vld [vmem:[%s2373_s14 + $0x18] sm:$0xff]   ;;  %v2099_v13 = vld [vmem:[%s2825_s3 + $0x70] sm:$0xff]  ;;  %v2098_v15 = vld [vmem:[%s2825_s3 + $0x68] sm:$0xff]  ;;  %415 = vst [vmem:[#allocation2 + $0x8] sm:$0x3] %v2302_v24 }
  0x10   : > { %314 = vmatpush.bf16.msra.mxu0 %v2083_v1  ;;  %2200 = vmatpush.bf16.msra.mxu2 %v2083_v1  ;;  %v2092_v14 = vld [vmem:[%s2825_s3 + $0x38] sm:$0xff]  ;;  %v2091_v16 = vld [vmem:[%s2825_s3 + $0x30] sm:$0xff]  ;;  %v2097_v17 = vld [vmem:[%s2825_s3 + $0x60] sm:$0xff]  ;;  %418 = vst [vmem:[#allocation2 + $0x20] sm:$0xff] %v2302_v24 }
  0x11   : > { %v2090_v18 = vld [vmem:[%s2825_s3 + $0x28] sm:$0xff]  ;;  %v2116_v19 = vld [vmem:[%s2825_s3 + $0xf8] sm:$0xff]  ;;  %v2089_v21 = vld [vmem:[%s2825_s3 + $0x20] sm:$0xff]  ;;  %419 = vst [vmem:[#allocation2 + $0x28] sm:$0x3] %v2302_v24 }
  0x12   : > { %549 = vmatpush.bf16.msra.mxu1 %v2099_v13  ;;  %2208 = vmatpush.bf16.msra.mxu3 %v2099_v13  ;;  %v2096_v20 = vld [vmem:[%s2825_s3 + $0x58] sm:$0xff]  ;;  %v2115_v22 = vld [vmem:[%s2825_s3 + $0xf0] sm:$0xff]  ;;  %v2114_v26 = vld [vmem:[%s2825_s3 + $0xe8] sm:$0xff]  ;;  %420 = vst [vmem:[#allocation2 + $0x30] sm:$0xff] %v2302_v24 }
  0x13   : > { %v2095_v23 = vld [vmem:[%s2825_s3 + $0x50] sm:$0xff]  ;;  %v2088_v25 = vld [vmem:[%s2825_s3 + $0x18] sm:$0xff]  ;;  %v2094_v27 = vld [vmem:[%s2825_s3 + $0x48] sm:$0xff]  ;;  %421 = vst [vmem:[#allocation2 + $0x38] sm:$0x3] %v2302_v24 }
  0x14   : > { %315 = vmatpush.bf16.msra.mxu0 %v2082_v2  ;;  %2201 = vmatpush.bf16.msra.mxu2 %v2082_v2  ;;  %v2087_v28 = vld [vmem:[%s2825_s3 + $0x10] sm:$0xff]  ;;  %v2113_v29 = vld [vmem:[%s2825_s3 + $0xe0] sm:$0xff]  ;;  %422 = vst [vmem:[#allocation2 + $0x40] sm:$0xff] %v2302_v24  ;;  %v2086_v32 = vld [vmem:[%s2825_s3 + $0x8] sm:$0xff] }
  0x15   : > { %v2093_v30 = vld [vmem:[%s2825_s3 + $0x40] sm:$0xff]  ;;  %423 = vst [vmem:[#allocation2 + $0x48] sm:$0x3] %v2302_v24  ;;  %v2112_v33 = vld [vmem:[%s2825_s3 + $0xd8] sm:$0xff]  ;;  %v2111_v38 = vld [vmem:[%s2825_s3 + $0xd0] sm:$0xff] }
  0x16   : > { %550 = vmatpush.bf16.msra.mxu1 %v2098_v15  ;;  %2209 = vmatpush.bf16.msra.mxu3 %v2098_v15  ;;  %v2447_v31 = vld [vmem:[%s2824_s2] ss:$0 sm:$0xff]  ;;  %v2124_v34 = vld [vmem:[%s2825_s3 + $0x138] sm:$0xff]  ;;  %424 = vst [vmem:[#allocation2 + $0x50] sm:$0xff] %v2302_v24  ;;  %v2123_v39 = vld [vmem:[%s2825_s3 + $0x130] sm:$0xff] }
  0x17   : > { %425 = vst [vmem:[#allocation2 + $0x58] sm:$0x3] %v2302_v24  ;;  %v2085_v37 = vld [vmem:[%s2825_s3] sm:$0xff]  ;;  %v2110_v43 = vld [vmem:[%s2825_s3 + $0xc8] sm:$0xff]  ;;  %v2120_v57 = vld [vmem:[%s2825_s3 + $0x118] sm:$0xff] }
  0x18   : > { %316 = vmatpush.bf16.msra.mxu0 %v2081_v3  ;;  %2202 = vmatpush.bf16.msra.mxu2 %v2081_v3  ;;  %426 = vst [vmem:[#allocation2 + $0x60] sm:$0xff] %v2302_v24  ;;  %v2122_v44 = vld [vmem:[%s2825_s3 + $0x128] sm:$0xff]  ;;  %v2109_v49 = vld [vmem:[%s2825_s3 + $0xc0] sm:$0xff]  ;;  %v2119_v0 = vld [vmem:[%s2825_s3 + $0x110] sm:$0xff] }
  0x19   : > { %427 = vst [vmem:[#allocation2 + $0x68] sm:$0x3] %v2302_v24  ;;  %v2121_v50 = vld [vmem:[%s2825_s3 + $0x120] sm:$0xff]  ;;  %v2118_v12 = vld [vmem:[%s2825_s3 + $0x108] sm:$0xff] }
  0x1a   : > { %551 = vmatpush.bf16.msra.mxu1 %v2097_v17  ;;  %2210 = vmatpush.bf16.msra.mxu3 %v2097_v17  ;;  %428 = vst [vmem:[#allocation2 + $0x70] sm:$0xff] %v2302_v24 }
  0x1b   : > { %429 = vst [vmem:[#allocation2 + $0x78] sm:$0x3] %v2302_v24 }
  0x1c   : > { %317 = vmatpush.bf16.msra.mxu0 %v2080_v4  ;;  %2203 = vmatpush.bf16.msra.mxu2 %v2080_v4  ;;  %430 = vst [vmem:[#allocation2 + $0x80] sm:$0xff] %v2302_v24 }
  0x1d   : > { %431 = vst [vmem:[#allocation2 + $0x88] sm:$0x3] %v2302_v24 }
  0x1e   : > { %552 = vmatpush.bf16.msra.mxu1 %v2096_v20  ;;  %2211 = vmatpush.bf16.msra.mxu3 %v2096_v20  ;;  %432 = vst [vmem:[#allocation2 + $0x90] sm:$0xff] %v2302_v24 }
  0x1f   : > { %433 = vst [vmem:[#allocation2 + $0x98] sm:$0x3] %v2302_v24 }
  0x20   : > { %318 = vmatpush.bf16.msra.mxu0 %v2079_v5  ;;  %2204 = vmatpush.bf16.msra.mxu2 %v2079_v5 }
  0x22   : > { %553 = vmatpush.bf16.msra.mxu1 %v2095_v23  ;;  %2212 = vmatpush.bf16.msra.mxu3 %v2095_v23  ;;  %v2107_v23 = vld [vmem:[%s2825_s3 + $0xb0] sm:$0xff] }
  0x24   : > { %319 = vmatpush.bf16.msra.mxu0 %v2078_v6  ;;  %2205 = vmatpush.bf16.msra.mxu2 %v2078_v6 }
  0x26   : > { %554 = vmatpush.bf16.msra.mxu1 %v2094_v27  ;;  %2213 = vmatpush.bf16.msra.mxu3 %v2094_v27 }
  0x28   : > { %320 = vmatpush.bf16.msra.mxu0 %v2077_v7  ;;  %2206 = vmatpush.bf16.msra.mxu2 %v2077_v7 }
  0x2a   : > { %555 = vmatpush.bf16.msra.mxu1 %v2093_v30  ;;  %2214 = vmatpush.bf16.msra.mxu3 %v2093_v30 }
  0x2b   : > { %321 = vmatmul.bf16.vlgmr.msra.gmra.mxu0 %v2376_v8  ;;  %331 = vmatmul.bf16.vlgmr.msra.gmra.mxu2 %v2194_v9 }
  0x2c   : > { %625 = vmatpush.bf16.msrb.mxu2 %v2092_v14  ;;  %845 = vmatpush.bf16.msrb.mxu0 %v2116_v19 }
  0x2e   : > { %959 = vmatpush.bf16.msrb.mxu1 %v2124_v34 }
  0x30   : > { %626 = vmatpush.bf16.msrb.mxu2 %v2091_v16  ;;  %846 = vmatpush.bf16.msrb.mxu0 %v2115_v22  ;;  %v471_v22 = vld [vmem:[#allocation2 + $0x1] sm:$0xff] }
  0x32   : > { %960 = vmatpush.bf16.msrb.mxu1 %v2123_v39 }
  0x34   : > { %627 = vmatpush.bf16.msrb.mxu2 %v2090_v18  ;;  %847 = vmatpush.bf16.msrb.mxu0 %v2114_v26 }
  0x36   : > { %961 = vmatpush.bf16.msrb.mxu1 %v2122_v44 }
  0x38   : > { %628 = vmatpush.bf16.msrb.mxu2 %v2089_v21  ;;  %848 = vmatpush.bf16.msrb.mxu0 %v2113_v29 }
  0x3a   : > { %962 = vmatpush.bf16.msrb.mxu1 %v2121_v50 }
  0x3b   : > { %326 = vmatmul.bf16.gmra.mxu0 %v2193_v10  ;;  %336 = vmatmul.bf16.gmra.mxu2 %v2195_v11  ;;  %v2108_v11 = vld [vmem:[%s2825_s3 + $0xb8] sm:$0xff] }
  0x3c   : > { %629 = vmatpush.bf16.msrb.mxu2 %v2088_v25  ;;  %849 = vmatpush.bf16.msrb.mxu0 %v2112_v33  ;;  %v2117_v25 = vld [vmem:[%s2825_s3 + $0x100] sm:$0xff] }
  0x3d   : > { %731 = vmatpush.bf16.msrb.mxu3 %v2108_v11 }
  0x3e   : > { %963 = vmatpush.bf16.msrb.mxu1 %v2120_v57 }
  0x40   : > { %630 = vmatpush.bf16.msrb.mxu2 %v2087_v28  ;;  %850 = vmatpush.bf16.msrb.mxu0 %v2111_v38  ;;  %v2106_v38 = vld [vmem:[%s2825_s3 + $0xa8] sm:$0xff] }
  0x41   : > { %732 = vmatpush.bf16.msrb.mxu3 %v2107_v23 }
  0x42   : > { %964 = vmatpush.bf16.msrb.mxu1 %v2119_v0 }
  0x44   : > { %631 = vmatpush.bf16.msrb.mxu2 %v2086_v32  ;;  %851 = vmatpush.bf16.msrb.mxu0 %v2110_v43 }
  0x45   : > { %733 = vmatpush.bf16.msrb.mxu3 %v2106_v38 }
  0x46   : > { %965 = vmatpush.bf16.msrb.mxu1 %v2118_v12 }
  0x48   : > { %632 = vmatpush.bf16.msrb.mxu2 %v2085_v37  ;;  %852 = vmatpush.bf16.msrb.mxu0 %v2109_v49 }
  0x4a   : > { %966 = vmatpush.bf16.msrb.mxu1 %v2117_v25 }
  0xa8   : > { %v322_v35 = vpop.f32.mrf.mxu0 }
  0xa9   : > { %v2463_v36 = vadd.f32 %v2447_v31, %v322_v35 }
  0xab   : > { %v342_v40 = vmin.f32 %v2463_v36, 20.0 }
  0xad   : > { %v350_v41 = vmul.f32 1.442695, %v342_v40 }
  0xae   : > { %v332_v42 = vpop.f32.mrf.mxu2 }
  0xaf   : > { %2226 = vpow2.f32 %v350_v41  ;;  %v2489_v45 = vadd.f32 %v2447_v31, %v332_v42 }
  0xb0   : > { %v324_v46 = vpop.f32.mrf.mxu0 }
  0xb1   : > { %v346_v47 = vmin.f32 %v2489_v45, 20.0  ;;  %v2494_v48 = vadd.f32 %v2447_v31, %v324_v46 }
  0xb3   : > { %v358_v51 = vmul.f32 1.442695, %v346_v47  ;;  %v343_v52 = vmin.f32 %v2494_v48, 20.0 }
  0xb5   : > { %v2227_v53 = vpop.eup %2226  ;;  %2228 = vpow2.f32 %v358_v51  ;;  %v352_v54 = vmul.f32 1.442695, %v343_v52 }
  0xb6   : > { %v366_v55 = vadd.f32 2.0, %v2227_v53  ;;  %v334_v56 = vpop.f32.mrf.mxu2 }
  0xb7   : > { %2230 = vpow2.f32 %v352_v54  ;;  %v2507_v58 = vadd.f32 %v2447_v31, %v334_v56 }
  0xb8   : > { %v374_v59 = vmul.f32 %v2227_v53, %v366_v55  ;;  %v327_v60 = vpop.f32.mrf.mxu0 }
  0xb9   : > { %v347_v61 = vmin.f32 %v2507_v58, 20.0  ;;  %v2511_v62 = vadd.f32 %v2447_v31, %v327_v60  ;;  %v2104_v60 = vld [vmem:[%s2825_s3 + $0x98] sm:$0xff] }
  0xba   : > { %v390_v63 = vadd.f32 2.0, %v374_v59  ;;  %v382_v17 = vmul.f32 %v374_v59, %v2463_v36  ;;  %v2132_v59 = vld [vmem:[%s2825_s3 + $0x178] sm:$0xff] }
  0xbb   : > { %v2229_v1 = vpop.eup %2228  ;;  %v360_v2 = vmul.f32 1.442695, %v347_v61  ;;  %v344_v3 = vmin.f32 %v2511_v62, 20.0  ;;  %1073 = vmatpush.bf16.msra.mxu2 %v2132_v59 }
  0xbc   : > { %2232 = vrcp.f32 %v390_v63  ;;  %v370_v4 = vadd.f32 2.0, %v2229_v1 }
  0xbd   : > { %v2231_v5 = vpop.eup %2230  ;;  %2234 = vpow2.f32 %v360_v2  ;;  %v354_v6 = vmul.f32 1.442695, %v344_v3 }
  0xbe   : > { %v378_v7 = vmul.f32 %v2229_v1, %v370_v4  ;;  %v367_v9 = vadd.f32 2.0, %v2231_v5  ;;  %v337_v10 = vpop.f32.mrf.mxu2 }
  0xbf   : > { %2236 = vpow2.f32 %v354_v6  ;;  %v2524_v13 = vadd.f32 %v2447_v31, %v337_v10 }
  0xc0   : > { %v394_v14 = vadd.f32 2.0, %v378_v7  ;;  %v375_v15 = vmul.f32 %v2231_v5, %v367_v9  ;;  %v329_v16 = vpop.f32.mrf.mxu0  ;;  %v386_v39 = vmul.f32 %v378_v7, %v2489_v45  ;;  %v2105_v45 = vld [vmem:[%s2825_s3 + $0xa0] sm:$0xff] }
  0xc1   : > { %v348_v18 = vmin.f32 %v2524_v13, 20.0  ;;  %v2529_v19 = vadd.f32 %v2447_v31, %v329_v16  ;;  %734 = vmatpush.bf16.msrb.mxu3 %v2105_v45  ;;  %v2102_v16 = vld [vmem:[%s2825_s3 + $0x88] sm:$0xff] }
  0xc2   : > { %v2233_v20 = vpop.eup %2232  ;;  %2238 = vrcp.f32 %v394_v14  ;;  %v391_v21 = vadd.f32 2.0, %v375_v15  ;;  %v383_v46 = vmul.f32 %v375_v15, %v2494_v48  ;;  %v2130_v14 = vld [vmem:[%s2825_s3 + $0x168] sm:$0xff]  ;;  %v2148_v15 = vld [vmem:[%s2825_s3 + $0x1f8] sm:$0xff] }
  0xc3   : > { %v2235_v26 = vpop.eup %2234  ;;  %v2537_v27 = vmul.f32 %v2233_v20, %v382_v17  ;;  %v362_v28 = vmul.f32 1.442695, %v348_v18  ;;  %v345_v29 = vmin.f32 %v2529_v19, 20.0  ;;  %1302 = vmatpush.bf16.msra.mxu0 %v2148_v15 }
  0xc4   : > { %2240 = vrcp.f32 %v391_v21  ;;  %v371_v30 = vadd.f32 2.0, %v2235_v26  ;;  %v2129_v21 = vld [vmem:[%s2825_s3 + $0x160] sm:$0xff] }
  0xc5   : > { %v2237_v32 = vpop.eup %2236  ;;  %435 = vst [vmem:[#allocation2 + $0x11] sm:$0xff] %v2537_v27  ;;  %2242 = vpow2.f32 %v362_v28  ;;  %v356_v33 = vmul.f32 1.442695, %v345_v29  ;;  %v479_v34 = vpack.c.bf16 %v2537_v27, %v471_v22  ;;  %735 = vmatpush.bf16.msrb.mxu3 %v2104_v60  ;;  %v2147_v22 = vld [vmem:[%s2825_s3 + $0x1f0] sm:$0xff] }
  0xc6   : > { %v379_v35 = vmul.f32 %v2235_v26, %v371_v30  ;;  %v368_v36 = vadd.f32 2.0, %v2237_v32  ;;  %v339_v37 = vpop.f32.mrf.mxu2  ;;  %v2101_v26 = vld [vmem:[%s2825_s3 + $0x80] sm:$0xff] }
  0xc7   : > { %2244 = vpow2.f32 %v356_v33  ;;  %v2547_v40 = vadd.f32 %v2447_v31, %v339_v37  ;;  %556 = vmatmul.bf16.vlgmr.msra.gmra.mxu1 %v479_v34  ;;  %1303 = vmatpush.bf16.msra.mxu0 %v2147_v22  ;;  %v2146_v33 = vld [vmem:[%s2825_s3 + $0x1e8] sm:$0xff]  ;;  %v2145_v37 = vld [vmem:[%s2825_s3 + $0x1e0] sm:$0xff] }
  0xc8   : > { %v2239_v41 = vpop.eup %2238  ;;  %v395_v42 = vadd.f32 2.0, %v379_v35  ;;  %v376_v43 = vmul.f32 %v2237_v32, %v368_v36  ;;  %v387_v61 = vmul.f32 %v379_v35, %v2507_v58  ;;  %v2103_v58 = vld [vmem:[%s2825_s3 + $0x90] sm:$0xff] }
  0xc9   : > { %v2549_v44 = vmul.f32 %v2239_v41, %v386_v39  ;;  %v349_v47 = vmin.f32 %v2547_v40, 20.0  ;;  %736 = vmatpush.bf16.msrb.mxu3 %v2103_v58  ;;  %v2127_v36 = vld [vmem:[%s2825_s3 + $0x150] sm:$0xff]  ;;  %v2150_v58 = vld [vmem:[%s2825_s3 + $0x208] sm:$0xff] }
  0xca   : > { %v2241_v49 = vpop.eup %2240  ;;  %2246 = vrcp.f32 %v395_v42  ;;  %v392_v50 = vadd.f32 2.0, %v376_v43  ;;  %v384_v3 = vmul.f32 %v376_v43, %v2511_v62  ;;  %v2126_v42 = vld [vmem:[%s2825_s3 + $0x148] sm:$0xff]  ;;  %v2144_v43 = vld [vmem:[%s2825_s3 + $0x1d8] sm:$0xff] }
  0xcb   : > { %v2243_v31 = vpop.eup %2242  ;;  %439 = vst [vmem:[#allocation2 + $0x51] sm:$0xff] %v2549_v44  ;;  %v2557_v51 = vmul.f32 %v2241_v49, %v383_v46  ;;  %v364_v52 = vmul.f32 1.442695, %v349_v47  ;;  %1304 = vmatpush.bf16.msra.mxu0 %v2146_v33  ;;  %v2156_v46 = vld [vmem:[%s2825_s3 + $0x238] sm:$0xff]  ;;  %v2143_v49 = vld [vmem:[%s2825_s3 + $0x1d0] sm:$0xff] }
  0xcc   : > { %2248 = vrcp.f32 %v392_v50  ;;  %v372_v53 = vadd.f32 2.0, %v2243_v31  ;;  %v444_v54 = vld [vmem:[#allocation2 + $0x10] sm:$0xff]  ;;  %v2140_v47 = vld [vmem:[%s2825_s3 + $0x1b8] sm:$0xff]  ;;  %1416 = vmatpush.bf16.msra.mxu1 %v2156_v46 }
  0xcd   : > { %v2245_v48 = vpop.eup %2244  ;;  %436 = vst [vmem:[#allocation2 + $0x21] sm:$0xff] %v2557_v51  ;;  %2250 = vpow2.f32 %v364_v52  ;;  %v451_v55 = vpack.c.bf16 %v444_v54, %v2302_v24  ;;  %v2131_v24 = vld [vmem:[%s2825_s3 + $0x170] sm:$0xff]  ;;  %737 = vmatpush.bf16.msrb.mxu3 %v2102_v16  ;;  %v890_v41 = vpack.c.bf16 %v2557_v51, %v2537_v27  ;;  %v2125_v27 = vld [vmem:[%s2825_s3 + $0x140] sm:$0xff]  ;;  %v2142_v52 = vld [vmem:[%s2825_s3 + $0x1c8] sm:$0xff] }
  0xce   : > { %v380_v56 = vmul.f32 %v2243_v31, %v372_v53  ;;  %v369_v57 = vadd.f32 2.0, %v2245_v48  ;;  %1074 = vmatpush.bf16.msra.mxu2 %v2131_v24  ;;  %v2155_v50 = vld [vmem:[%s2825_s3 + $0x230] sm:$0xff] }
  0xcf   : > { %633 = vmatmul.bf16.vlgmr.msrb.gmra.mxu2 %v451_v55  ;;  %1305 = vmatpush.bf16.msra.mxu0 %v2145_v37  ;;  %v2139_v53 = vld [vmem:[%s2825_s3 + $0x1b0] sm:$0xff]  ;;  %v2138_v55 = vld [vmem:[%s2825_s3 + $0x1a8] sm:$0xff] }
  0xd0   : > { %v2247_v63 = vpop.eup %2246  ;;  %v396_v0 = vadd.f32 2.0, %v380_v56  ;;  %v377_v1 = vmul.f32 %v2245_v48, %v369_v57  ;;  %v388_v17 = vmul.f32 %v380_v56, %v2524_v13  ;;  %1417 = vmatpush.bf16.msra.mxu1 %v2155_v50  ;;  %v2154_v48 = vld [vmem:[%s2825_s3 + $0x228] sm:$0xff]  ;;  %v2153_v57 = vld [vmem:[%s2825_s3 + $0x220] sm:$0xff]  ;;  %v2151_v24 = vld [vmem:[%s2825_s3 + $0x210] sm:$0xff] }
  0xd1   : > { %v2571_v2 = vmul.f32 %v2247_v63, %v387_v61  ;;  %738 = vmatpush.bf16.msrb.mxu3 %v2101_v26  ;;  %v2152_v61 = vld [vmem:[%s2825_s3 + $0x218] sm:$0xff] }
  0xd2   : > { %v2249_v4 = vpop.eup %2248  ;;  %2252 = vrcp.f32 %v396_v0  ;;  %v393_v5 = vadd.f32 2.0, %v377_v1  ;;  %1075 = vmatpush.bf16.msra.mxu2 %v2130_v14  ;;  %v385_v25 = vmul.f32 %v377_v1, %v2529_v19  ;;  %v2128_v19 = vld [vmem:[%s2825_s3 + $0x158] sm:$0xff]  ;;  %v448_v45 = vld [vmem:[#allocation2 + $0x50] sm:$0xff]  ;;  %v654_v0 = vld [vmem:[#allocation2 + $0x2] sm:$0xff] }
  0xd3   : > { %v2251_v6 = vpop.eup %2250  ;;  %440 = vst [vmem:[#allocation2 + $0x61] sm:$0xff] %v2571_v2  ;;  %v2578_v7 = vmul.f32 %v2249_v4, %v384_v3  ;;  %1306 = vmatpush.bf16.msra.mxu0 %v2144_v43  ;;  %v655_v1 = vld [vmem:[#allocation2 + $0x12] sm:$0xff] }
  0xd4   : > { %2254 = vrcp.f32 %v393_v5  ;;  %v373_v9 = vadd.f32 2.0, %v2251_v6  ;;  %v769_v10 = vld [vmem:[#allocation2 + $0x20] sm:$0xff]  ;;  %1418 = vmatpush.bf16.msra.mxu1 %v2154_v48  ;;  %v662_v4 = vpack.c.bf16 %v655_v1, %v654_v0 }
  0xd5   : > { %437 = vst [vmem:[#allocation2 + $0x31] sm:$0xff] %v2578_v7  ;;  %v776_v62 = vpack.c.bf16 %v769_v10, %v444_v54  ;;  %v2583_v11 = vpack.c.bf16 %v2578_v7, %v2557_v51  ;;  %v2141_v54 = vld [vmem:[%s2825_s3 + $0x1c0] sm:$0xff] }
  0xd6   : > { %v381_v12 = vmul.f32 %v2251_v6, %v373_v9  ;;  %1076 = vmatpush.bf16.msra.mxu2 %v2129_v21  ;;  %v2137_v5 = vld [vmem:[%s2825_s3 + $0x1a0] sm:$0xff]  ;;  %v2136_v6 = vld [vmem:[%s2825_s3 + $0x198] sm:$0xff] }
  0xd7   : > { %853 = vmatmul.bf16.vlgmr.msrb.gmra.mxu0 %v776_v62  ;;  %561 = vmatmul.bf16.gmra.mxu1 %v2583_v11  ;;  %v2149_v9 = vld [vmem:[%s2825_s3 + $0x200] sm:$0xff]  ;;  %v892_v62 = vpack.c.bf16 %v2571_v2, %v2549_v44  ;;  %v659_v21 = vld [vmem:[#allocation2 + $0x52] sm:$0xff] }
  0xd8   : > { %v2253_v18 = vpop.eup %2252  ;;  %v397_v20 = vadd.f32 2.0, %v381_v12  ;;  %v389_v34 = vmul.f32 %v381_v12, %v2547_v40  ;;  %1307 = vmatpush.bf16.msra.mxu0 %v2143_v49  ;;  %1419 = vmatpush.bf16.msra.mxu1 %v2153_v57  ;;  %v997_v12 = vld [vmem:[#allocation2 + $0x22] sm:$0xff] }
  0xd9   : > { %v2602_v23 = vmul.f32 %v2253_v18, %v388_v17  ;;  %v1004_v15 = vpack.c.bf16 %v997_v12, %v655_v1  ;;  %v2135_v17 = vld [vmem:[%s2825_s3 + $0x190] sm:$0xff]  ;;  %v2134_v18 = vld [vmem:[%s2825_s3 + $0x188] sm:$0xff] }
  0xda   : > { %v2255_v13 = vpop.eup %2254  ;;  %2256 = vrcp.f32 %v397_v20  ;;  %1077 = vmatpush.bf16.msra.mxu2 %v2128_v19  ;;  %v773_v56 = vld [vmem:[#allocation2 + $0x60] sm:$0xff]  ;;  %v1232_v19 = vld [vmem:[#allocation2 + $0x91] sm:$0xff] }
  0xdb   : > { %441 = vst [vmem:[#allocation2 + $0x71] sm:$0xff] %v2602_v23  ;;  %v409_v28 = vmul.f32 %v2255_v13, %v385_v25  ;;  %v2659_v51 = vpack.c.bf16 %v2602_v23, %v2571_v2  ;;  %v778_v59 = vpack.c.bf16 %v773_v56, %v448_v45  ;;  %v2133_v20 = vld [vmem:[%s2825_s3 + $0x180] sm:$0xff] }
  0xdc   : > { %v446_v29 = vld [vmem:[#allocation2 + $0x30] sm:$0xff]  ;;  %1308 = vmatpush.bf16.msra.mxu0 %v2142_v52  ;;  %1420 = vmatpush.bf16.msra.mxu1 %v2152_v61  ;;  %v1001_v13 = vld [vmem:[#allocation2 + $0x62] sm:$0xff] }
  0xdd   : > { %438 = vst [vmem:[#allocation2 + $0x41] sm:$0xff] %v409_v28  ;;  %v2609_v30 = vpack.c.bf16 %v446_v29, %v769_v10  ;;  %v2612_v32 = vpack.c.bf16 %v2549_v44, %v409_v28  ;;  %v891_v60 = vpack.c.bf16 %v409_v28, %v2578_v7  ;;  %v657_v14 = vld [vmem:[#allocation2 + $0x32] sm:$0xff]  ;;  %v1006_v26 = vpack.c.bf16 %v1001_v13, %v659_v21 }
  0xde   : > { %1078 = vmatpush.bf16.msra.mxu2 %v2127_v36  ;;  %v663_v16 = vpack.c.bf16 %v657_v14, %v997_v12  ;;  %v1346_v36 = vld [vmem:[#allocation2 + $0x92] sm:$0xff] }
  0xdf   : > { %638 = vmatmul.bf16.gmra.mxu2 %v2609_v30  ;;  %566 = vmatmul.bf16.vlgmr.msra.gmra.mxu3 %v2612_v32 }
  0xe0   : > { %v2257_v35 = vpop.eup %2256  ;;  %1188 = vmatpush.bf16.msra.mxu3 %v2140_v47  ;;  %1309 = vmatpush.bf16.msra.mxu0 %v2141_v54 }
  0xe1   : > { %v2629_v38 = vmul.f32 %v2257_v35, %v389_v34  ;;  %1421 = vmatpush.bf16.msra.mxu1 %v2151_v24 }
  0xe2   : > { %1079 = vmatpush.bf16.msra.mxu2 %v2126_v42  ;;  %v450_v63 = vld [vmem:[#allocation2 + $0x70] sm:$0xff] }
  0xe3   : > { %442 = vst [vmem:[#allocation2 + $0x81] sm:$0xff] %v2629_v38  ;;  %v2688_v3 = vpack.c.bf16 %v450_v63, %v773_v56  ;;  %v893_v44 = vpack.c.bf16 %v2629_v38, %v2602_v23  ;;  %v661_v23 = vld [vmem:[#allocation2 + $0x72] sm:$0xff]  ;;  %v1236_v34 = vpack.c.bf16 %v1232_v19, %v2629_v38 }
  0xe4   : > { %v771_v39 = vld [vmem:[#allocation2 + $0x40] sm:$0xff]  ;;  %1189 = vmatpush.bf16.msra.mxu3 %v2139_v53  ;;  %v665_v28 = vpack.c.bf16 %v661_v23, %v1001_v13 }
  0xe5   : > { %v777_v40 = vpack.c.bf16 %v771_v39, %v446_v29  ;;  %v2655_v31 = vpack.c.bf16 %v448_v45, %v771_v39  ;;  %1422 = vmatpush.bf16.msra.mxu1 %v2150_v58  ;;  %v999_v2 = vld [vmem:[#allocation2 + $0x42] sm:$0xff] }
  0xe6   : > { %1080 = vmatpush.bf16.msra.mxu2 %v2125_v27  ;;  %v1005_v22 = vpack.c.bf16 %v999_v2, %v657_v14  ;;  %v664_v25 = vpack.c.bf16 %v659_v21, %v999_v2 }
  0xe7   : > { %858 = vmatmul.bf16.gmra.mxu0 %v777_v40  ;;  %967 = vmatmul.bf16.vlgmr.msrb.gmra.mxu1 %v890_v41 }
  0xe8   : > { %1190 = vmatpush.bf16.msra.mxu3 %v2138_v55 }
  0xe9   : > { %1423 = vmatpush.bf16.msra.mxu1 %v2149_v9 }
  0xea   : > { %v2700_v7 = vld [vmem:[#allocation2 + $0x80] sm:$0xff] }
  0xeb   : > { %v779_v10 = vpack.c.bf16 %v2700_v7, %v450_v63  ;;  %v1122_v50 = vpack.c.bf16 0.0, %v2700_v7 }
  0xec   : > { %1191 = vmatpush.bf16.msra.mxu3 %v2137_v5 }
  0xef   : > { %643 = vmatmul.bf16.gmra.mxu2 %v2655_v31  ;;  %571 = vmatmul.bf16.gmra.mxu3 %v2659_v51 }
  0xf0   : > { %1192 = vmatpush.bf16.msra.mxu3 %v2136_v6 }
  0xf4   : > { %1193 = vmatpush.bf16.msra.mxu3 %v2135_v17 }
  0xf7   : > { %863 = vmatmul.bf16.gmra.mxu0 %v778_v59  ;;  %972 = vmatmul.bf16.gmra.mxu1 %v891_v60 }
  0xf8   : > { %1194 = vmatpush.bf16.msra.mxu3 %v2134_v18 }
  0xfc   : > { %1195 = vmatpush.bf16.msra.mxu3 %v2133_v20 }
  0xff   : > { %648 = vmatmul.bf16.gmra.mxu2 %v2688_v3  ;;  %739 = vmatmul.bf16.vlgmr.msrb.gmra.mxu3 %v662_v4 }
 0x107   : > { %868 = vmatmul.bf16.gmra.mxu0 %v779_v10  ;;  %977 = vmatmul.bf16.gmra.mxu1 %v892_v62 }
 0x10f   : > { %1081 = vmatmul.bf16.vlgmr.msra.gmra.mxu2 %v1004_v15  ;;  %744 = vmatmul.bf16.gmra.mxu3 %v663_v16 }
 0x117   : > { %1310 = vmatmul.bf16.vlgmr.msra.gmra.mxu0 %v2583_v11  ;;  %982 = vmatmul.bf16.gmra.mxu1 %v893_v44  ;;  %v1003_v11 = vld [vmem:[#allocation2 + $0x82] sm:$0xff] }
 0x118   : > { %v1007_v29 = vpack.c.bf16 %v1003_v11, %v661_v23  ;;  %v1350_v40 = vpack.c.bf16 %v1346_v36, %v1003_v11 }
 0x11f   : > { %1086 = vmatmul.bf16.gmra.mxu2 %v1005_v22  ;;  %749 = vmatmul.bf16.gmra.mxu3 %v664_v25 }
 0x127   : > { %1315 = vmatmul.bf16.gmra.mxu0 %v2612_v32  ;;  %1424 = vmatmul.bf16.vlgmr.msra.gmra.mxu1 %v663_v16 }
 0x12f   : > { %1091 = vmatmul.bf16.gmra.mxu2 %v1006_v26  ;;  %754 = vmatmul.bf16.gmra.mxu3 %v665_v28 }
 0x137   : > { %1320 = vmatmul.bf16.gmra.mxu0 %v2659_v51  ;;  %1429 = vmatmul.bf16.gmra.mxu1 %v664_v25 }
 0x13f   : > { %1096 = vmatmul.bf16.gmra.mxu2 %v1007_v29  ;;  %1196 = vmatmul.bf16.vlgmr.msra.gmra.mxu3 %v2609_v30 }
 0x144   : > { %v557_v33 = vpop.f32.mrf.mxu1 }
 0x147   : > { %1325 = vmatmul.bf16.gmra.mxu0 %v1236_v34  ;;  %1434 = vmatmul.bf16.gmra.mxu1 %v665_v28 }
 0x14c   : > { %v2724_v32 = vpop.f32.mrf.mxu1 }
 0x14f   : > { %1201 = vmatmul.bf16.gmra.mxu3 %v2655_v31 }
 0x152   : > { %v634_v35 = vpop.f32.mrf.mxu2 }
 0x153   : > { %v635_v37 = vadd.f32 %v634_v35, %v557_v33 }
 0x154   : > { %v562_v39 = vpop.f32.mrf.mxu1  ;;  %v854_v46 = vpop.f32.mrf.mxu0 }
 0x157   : > { %1439 = vmatmul.bf16.gmra.mxu1 %v1350_v40 }
 0x15a   : > { %v636_v41 = vpop.f32.mrf.mxu2 }
 0x15b   : > { %v637_v34 = vadd.f32 %v636_v41, %v2724_v32 }
 0x15c   : > { %v2727_v42 = vpop.f32.mrf.mxu1  ;;  %v856_v45 = vpop.f32.mrf.mxu0 }
 0x15f   : > { %1206 = vmatmul.bf16.gmra.mxu3 %v2688_v3 }
 0x162   : > { %v639_v30 = vpop.f32.mrf.mxu2  ;;  %v567_v43 = vpop.f32.mrf.mxu3 }
 0x163   : > { %v640_v38 = vadd.f32 %v639_v30, %v562_v39 }
 0x164   : > { %v968_v47 = vpop.f32.mrf.mxu1  ;;  %v859_v54 = vpop.f32.mrf.mxu0 }
 0x16a   : > { %v2730_v27 = vpop.f32.mrf.mxu2  ;;  %v2732_v49 = vpop.f32.mrf.mxu3 }
 0x16c   : > { %v970_v31 = vpop.f32.mrf.mxu1  ;;  %v2739_v63 = vpop.f32.mrf.mxu0 }
 0x16f   : > { %1211 = vmatmul.bf16.gmra.mxu3 %v1122_v50 }
 0x172   : > { %v644_v51 = vpop.f32.mrf.mxu2  ;;  %v572_v52 = vpop.f32.mrf.mxu3 }
 0x173   : > { %v645_v53 = vadd.f32 %v644_v51, %v567_v43 }
 0x174   : > { %v973_v56 = vpop.f32.mrf.mxu1  ;;  %v864_v4 = vpop.f32.mrf.mxu0 }
 0x17a   : > { %v2735_v48 = vpop.f32.mrf.mxu2  ;;  %v2737_v55 = vpop.f32.mrf.mxu3 }
 0x17c   : > { %v2741_v1 = vpop.f32.mrf.mxu1  ;;  %v2743_v10 = vpop.f32.mrf.mxu0 }
 0x182   : > { %v649_v57 = vpop.f32.mrf.mxu2  ;;  %v740_v59 = vpop.f32.mrf.mxu3 }
 0x183   : > { %v650_v60 = vadd.f32 %v649_v57, %v572_v52  ;;  %v760_v61 = vadd.f32 %v740_v59, %v635_v37 }
 0x184   : > { %v978_v5 = vpop.f32.mrf.mxu1  ;;  %v869_v14 = vpop.f32.mrf.mxu0 }
 0x185   : > { %v874_v0 = vadd.f32 %v854_v46, %v760_v61 }
 0x187   : > { %v988_v24 = vadd.f32 %v968_v47, %v874_v0  ;;  %v2765_v47 = vld [vmem:[%s2826_s4] ss:$0 sm:$0xff] }
 0x18a   : > { %v742_v3 = vpop.f32.mrf.mxu3  ;;  %v2747_v44 = vpop.f32.mrf.mxu2 }
 0x18b   : > { %v761_v35 = vadd.f32 %v742_v3, %v637_v34 }
 0x18c   : > { %v2745_v62 = vpop.f32.mrf.mxu1  ;;  %v2753_v21 = vpop.f32.mrf.mxu0 }
 0x18d   : > { %v875_v30 = vadd.f32 %v856_v45, %v761_v35  ;;  %v642_v45 = vadd.f32 %v2730_v27, %v2727_v42 }
 0x18f   : > { %v989_v50 = vadd.f32 %v970_v31, %v875_v30 }
 0x192   : > { %v745_v58 = vpop.f32.mrf.mxu3  ;;  %v1082_v25 = vpop.f32.mrf.mxu2 }
 0x193   : > { %v762_v6 = vadd.f32 %v745_v58, %v640_v38  ;;  %v1102_v37 = vadd.f32 %v1082_v25, %v988_v24 }
 0x194   : > { %v983_v17 = vpop.f32.mrf.mxu1  ;;  %v1311_v28 = vpop.f32.mrf.mxu0 }
 0x195   : > { %v876_v7 = vadd.f32 %v859_v54, %v762_v6 }
 0x197   : > { %v990_v9 = vadd.f32 %v973_v56, %v876_v7 }
 0x19a   : > { %v747_v12 = vpop.f32.mrf.mxu3  ;;  %v1084_v19 = vpop.f32.mrf.mxu2 }
 0x19b   : > { %v1103_v52 = vadd.f32 %v1084_v19, %v989_v50  ;;  %v763_v0 = vadd.f32 %v747_v12, %v642_v45  ;;  %v647_v19 = vadd.f32 %v2735_v48, %v2732_v49 }
 0x19c   : > { %v2755_v22 = vpop.f32.mrf.mxu1  ;;  %v1313_v36 = vpop.f32.mrf.mxu0 }
 0x1a2   : > { %v750_v15 = vpop.f32.mrf.mxu3  ;;  %v1087_v38 = vpop.f32.mrf.mxu2 }
 0x1a3   : > { %v764_v16 = vadd.f32 %v750_v15, %v645_v53  ;;  %v1104_v3 = vadd.f32 %v1087_v38, %v990_v9 }
 0x1a4   : > { %v1425_v29 = vpop.f32.mrf.mxu1  ;;  %v1316_v32 = vpop.f32.mrf.mxu0 }
 0x1a5   : > { %v878_v18 = vadd.f32 %v864_v4, %v764_v16 }
 0x1a7   : > { %v2749_v2 = vadd.f32 %v978_v5, %v878_v18  ;;  %v877_v5 = vadd.f32 %v2739_v63, %v763_v0  ;;  %v2290_v0 = vld [vmem:[%s2373_s14] sm:$0xff]  }
 0x1a9   : > { %v991_v27 = vadd.f32 %v2741_v1, %v877_v5 }
 0x1aa   : > { %v2751_v20 = vpop.f32.mrf.mxu3  ;;  %v1089_v61 = vpop.f32.mrf.mxu2 }
 0x1ab   : > { %v1105_v9 = vadd.f32 %v1089_v61, %v991_v27 }
 0x1ac   : > { %v1427_v39 = vpop.f32.mrf.mxu1  ;;  %v1318_v7 = vpop.f32.mrf.mxu0 }
 0x1b2   : > { %v755_v13 = vpop.f32.mrf.mxu3  ;;  %v1092_v18 = vpop.f32.mrf.mxu2 }
 0x1b3   : > { %v766_v23 = vadd.f32 %v755_v13, %v650_v60  ;;  %v1106_v38 = vadd.f32 %v1092_v18, %v2749_v2 }
 0x1b4   : > { %v1430_v57 = vpop.f32.mrf.mxu1  ;;  %v1321_v35 = vpop.f32.mrf.mxu0 }
 0x1b5   : > { %v880_v26 = vadd.f32 %v869_v14, %v766_v23 }
 0x1b7   : > { %v2757_v11 = vadd.f32 %v983_v17, %v880_v26 }
 0x1ba   : > { %v2759_v33 = vpop.f32.mrf.mxu3  ;;  %v1094_v49 = vpop.f32.mrf.mxu2 }
 0x1bc   : > { %v1432_v17 = vpop.f32.mrf.mxu1 }
 0x1c2   : > { %v1197_v40 = vpop.f32.mrf.mxu3 }
 0x1c3   : > { %v1217_v43 = vadd.f32 %v1197_v40, %v1102_v37  ;;  %v765_v37 = vadd.f32 %v2751_v20, %v647_v19 }
 0x1c4   : > { %v1435_v40 = vpop.f32.mrf.mxu1 }
 0x1c5   : > { %v1331_v46 = vadd.f32 %v1311_v28, %v1217_v43  ;;  %v2159_v43 = vunpack.c.l.bf16 %v2376_v8 }
 0x1c7   : > { %v1445_v51 = vadd.f32 %v1425_v29, %v1331_v46 }
 0x1c9   : > { %v1457_v53 = vadd.f32 %v2765_v47, %v1445_v51 }
 0x1ca   : > { %v1199_v41 = vpop.f32.mrf.mxu3 }
 0x1cb   : > { %v1465_v54 = vmin.f32 %v1457_v53, 20.0  ;;  %v1218_v56 = vadd.f32 %v1199_v41, %v1103_v52 }
 0x1cd   : > { %v1473_v59 = vmul.f32 1.442695, %v1465_v54  ;;  %v1332_v60 = vadd.f32 %v1313_v36, %v1218_v56 }
 0x1cf   : > { %2258 = vpow2.f32 %v1473_v59  ;;  %v1446_v24 = vadd.f32 %v1427_v39, %v1332_v60  ;;  %v1323_v60 = vpop.f32.mrf.mxu0 }
 0x1d1   : > { %v1458_v31 = vadd.f32 %v2765_v47, %v1446_v24  ;;  %v2160_v24 = vunpack.c.h.bf16 %v2290_v0 }
 0x1d2   : > { %v1202_v4 = vpop.f32.mrf.mxu3 }
 0x1d3   : > { %v1466_v58 = vmin.f32 %v1458_v31, 20.0  ;;  %v1219_v6 = vadd.f32 %v1202_v4, %v1104_v3 }
 0x1d5   : > { %v2259_v14 = vpop.eup %2258  ;;  %v1475_v15 = vmul.f32 1.442695, %v1466_v58  ;;  %v1333_v16 = vadd.f32 %v1316_v32, %v1219_v6  ;;  %v879_v32 = vadd.f32 %v2743_v10, %v765_v37  ;;  %v1437_v58 = vpop.f32.mrf.mxu1 }
 0x1d6   : > { %v1489_v42 = vadd.f32 2.0, %v2259_v14 }
 0x1d7   : > { %2260 = vpow2.f32 %v1475_v15  ;;  %v1447_v12 = vadd.f32 %v1430_v57, %v1333_v16  ;;  %v993_v45 = vadd.f32 %v2745_v62, %v879_v32  ;;  %v1097_v16 = vpop.f32.mrf.mxu2 }
 0x1d8   : > { %v1497_v25 = vmul.f32 %v2259_v14, %v1489_v42  ;;  %v652_v42 = vadd.f32 %v2747_v44, %v2737_v55  ;;  %v1108_v55 = vadd.f32 %v1097_v16, %v2757_v11 }
 0x1d9   : > { %v2774_v13 = vadd.f32 %v2765_v47, %v1447_v12  ;;  %v1107_v3 = vadd.f32 %v1094_v49, %v993_v45 }
 0x1da   : > { %v1513_v23 = vadd.f32 2.0, %v1497_v25  ;;  %v1204_v63 = vpop.f32.mrf.mxu3  ;;  %v1505_v46 = vmul.f32 %v1497_v25, %v1457_v53  ;;  %v767_v25 = vadd.f32 %v2759_v33, %v652_v42 }
 0x1db   : > { %v1467_v26 = vmin.f32 %v2774_v13, 20.0  ;;  %v1220_v28 = vadd.f32 %v1204_v63, %v1105_v9 }
 0x1dc   : > { %2262 = vrcp.f32 %v1513_v23 }
 0x1dd   : > { %v2261_v29 = vpop.eup %2260  ;;  %v1477_v34 = vmul.f32 1.442695, %v1467_v26  ;;  %v1334_v1 = vadd.f32 %v1318_v7, %v1220_v28  ;;  %v2291_v26 = vld [vmem:[%s2373_s14 + $0x8] sm:$0xff]  }
 0x1de   : > { %v1490_v36 = vadd.f32 2.0, %v2261_v29  ;;  %v2163_v28 = vunpack.c.l.bf16 %v2291_v26 }
 0x1df   : > { %2264 = vpow2.f32 %v1477_v34  ;;  %v1448_v39 = vadd.f32 %v1432_v17, %v1334_v1  ;;  %v1326_v34 = vpop.f32.mrf.mxu0 }
 0x1e0   : > { %v1498_v30 = vmul.f32 %v2261_v29, %v1490_v36  ;;  %v881_v36 = vadd.f32 %v2753_v21, %v767_v25 }
 0x1e1   : > { %v2783_v50 = vadd.f32 %v2765_v47, %v1448_v39 }
 0x1e2   : > { %v2263_v51 = vpop.eup %2262  ;;  %v1514_v48 = vadd.f32 2.0, %v1498_v30  ;;  %v1207_v52 = vpop.f32.mrf.mxu3  ;;  %v1506_v10 = vmul.f32 %v1498_v30, %v1458_v31 }
 0x1e3   : > { %v1529_v20 = vmul.f32 %v2263_v51, %v1505_v46  ;;  %v1468_v41 = vmin.f32 %v2783_v50, 20.0  ;;  %v1221_v54 = vadd.f32 %v1207_v52, %v1106_v38  ;;  %v1099_v46 = vpop.f32.mrf.mxu2  ;;  %v2164_v52 = vunpack.c.h.bf16 %v2291_v26 }
 0x1e4   : > { %2266 = vrcp.f32 %v1514_v48 }
 0x1e5   : > { %v2265_v56 = vpop.eup %2264  ;;  %v1537_v8 = vadd.f32 %v2159_v43, %v1529_v20  ;;  %v1479_v57 = vmul.f32 1.442695, %v1468_v41  ;;  %v1335_v2 = vadd.f32 %v1321_v35, %v1221_v54 }
 0x1e6   : > { %v1491_v53 = vadd.f32 2.0, %v2265_v56 }
 0x1e7   : > { %2268 = vpow2.f32 %v1479_v57  ;;  %v1449_v59 = vadd.f32 %v1435_v40, %v1335_v2  ;;  %v1440_v40 = vpop.f32.mrf.mxu1 }
 0x1e8   : > { %v1499_v61 = vmul.f32 %v2265_v56, %v1491_v53  ;;  %v1328_v53 = vpop.f32.mrf.mxu0 }
 0x1e9   : > { %v2790_v4 = vadd.f32 %v2765_v47, %v1449_v59 }
 0x1ea   : > { %v2267_v5 = vpop.eup %2266  ;;  %v1515_v6 = vadd.f32 2.0, %v1499_v61  ;;  %v1209_v7 = vpop.f32.mrf.mxu3  ;;  %v1507_v44 = vmul.f32 %v1499_v61, %v2774_v13  ;;  %v995_v13 = vadd.f32 %v2755_v22, %v881_v36 }
 0x1eb   : > { %v1530_v14 = vmul.f32 %v2267_v5, %v1506_v10  ;;  %v1469_v15 = vmin.f32 %v2790_v4, 20.0  ;;  %v1222_v62 = vadd.f32 %v1209_v7, %v1107_v3  ;;  %v2292_v10 = vld [vmem:[%s2373_s14 + $0x10] sm:$0xff]  }
 0x1ec   : > { %2270 = vrcp.f32 %v1515_v6  ;;  %v1109_v32 = vadd.f32 %v1099_v46, %v995_v13  ;;  %v2167_v5 = vunpack.c.l.bf16 %v2292_v10 }
 0x1ed   : > { %v2269_v17 = vpop.eup %2268  ;;  %v1538_v31 = vadd.f32 %v2160_v24, %v1530_v14  ;;  %v1481_v27 = vmul.f32 1.442695, %v1469_v15  ;;  %v1336_v12 = vadd.f32 %v1323_v60, %v1222_v62 }
 0x1ee   : > { %v1492_v18 = vadd.f32 2.0, %v2269_v17 }
 0x1ef   : > { %v2176_v9 = vpack.c.bf16 %v1538_v31, %v1537_v8  ;;  %2272 = vpow2.f32 %v1481_v27  ;;  %v1450_v23 = vadd.f32 %v1437_v58, %v1336_v12  ;;  %v1442_v61 = vpop.f32.mrf.mxu1  ;;  %v2168_v12 = vunpack.c.h.bf16 %v2292_v10 }
 0x1f0   : > { %v1500_v63 = vmul.f32 %v2269_v17, %v1492_v18 }
 0x1f1   : > { %2177 = vst [vmem:[%s2800_s20] sm:$0xff] %v2176_v9   ;;  %v1462_v29 = vadd.f32 %v2765_v47, %v1450_v23 }
 0x1f2   : > { %v2271_v19 = vpop.eup %2270  ;;  %v1516_v1 = vadd.f32 2.0, %v1500_v63  ;;  %v1212_v35 = vpop.f32.mrf.mxu3  ;;  %v1508_v21 = vmul.f32 %v1500_v63, %v2783_v50 }
 0x1f3   : > { %v1531_v33 = vmul.f32 %v2271_v19, %v1507_v44  ;;  %v1470_v37 = vmin.f32 %v1462_v29, 20.0  ;;  %v1223_v39 = vadd.f32 %v1212_v35, %v1108_v55  ;;  %v2293_v55 = vld [vmem:[%s2373_s14 + $0x18] sm:$0xff]  }
 0x1f4   : > { %2274 = vrcp.f32 %v1516_v1  ;;  %v2171_v44 = vunpack.c.l.bf16 %v2293_v55 }
 0x1f5   : > { %v2273_v30 = vpop.eup %2272  ;;  %v1539_v43 = vadd.f32 %v2163_v28, %v1531_v33  ;;  %v1483_v38 = vmul.f32 1.442695, %v1470_v37  ;;  %v1337_v11 = vadd.f32 %v1326_v34, %v1223_v39 }
 0x1f6   : > { %v1493_v51 = vadd.f32 2.0, %v2273_v30 }
 0x1f7   : > { %2276 = vpow2.f32 %v1483_v38  ;;  %v1451_v49 = vadd.f32 %v1440_v40, %v1337_v11 }
 0x1f8   : > { %v1501_v48 = vmul.f32 %v2273_v30, %v1493_v51 }
 0x1f9   : > { %v1463_v20 = vadd.f32 %v2765_v47, %v1451_v49 }
 0x1fa   : > { %v2275_v41 = vpop.eup %2274  ;;  %v1517_v54 = vadd.f32 2.0, %v1501_v48  ;;  %v1214_v56 = vpop.f32.mrf.mxu3  ;;  %v1509_v58 = vmul.f32 %v1501_v48, %v2790_v4 }
 0x1fb   : > { %v1532_v8 = vmul.f32 %v2275_v41, %v1508_v21  ;;  %v1471_v57 = vmin.f32 %v1463_v20, 20.0  ;;  %v1224_v2 = vadd.f32 %v1214_v56, %v1109_v32 }
 0x1fc   : > { %2278 = vrcp.f32 %v1517_v54 }
 0x1fd   : > { %v2277_v22 = vpop.eup %2276  ;;  %v1540_v45 = vadd.f32 %v2164_v52, %v1532_v8  ;;  %v1485_v59 = vmul.f32 1.442695, %v1471_v57  ;;  %v1338_v60 = vadd.f32 %v1328_v53, %v1224_v2 }
 0x1fe   : > { %v1494_v0 = vadd.f32 2.0, %v2277_v22 }
 0x1ff   : > { %v2181_v24 = vpack.c.bf16 %v1540_v45, %v1539_v43  ;;  %2280 = vpow2.f32 %v1485_v59  ;;  %v1452_v50 = vadd.f32 %v1442_v61, %v1338_v60 }
 0x200   : > { %v1502_v3 = vmul.f32 %v2277_v22, %v1494_v0 }
 0x201   : > { %2196 = vst [vmem:[%s2800_s20 + $0x8] sm:$0xff] %v2181_v24   ;;  %v1464_v6 = vadd.f32 %v2765_v47, %v1452_v50 }
 0x202   : > { %v2279_v7 = vpop.eup %2278  ;;  %v1518_v14 = vadd.f32 2.0, %v1502_v3  ;;  %v1510_v18 = vmul.f32 %v1502_v3, %v1462_v29  ;;  %v2172_v29 = vunpack.c.h.bf16 %v2293_v55 }
 0x203   : > { %v1533_v15 = vmul.f32 %v2279_v7, %v1509_v58  ;;  %v1472_v62 = vmin.f32 %v1464_v6, 20.0 }
 0x204   : > { %2282 = vrcp.f32 %v1518_v14 }
 0x205   : > { %v2281_v16 = vpop.eup %2280  ;;  %v1541_v17 = vadd.f32 %v2167_v5, %v1533_v15  ;;  %v1487_v42 = vmul.f32 1.442695, %v1472_v62 }
 0x206   : > { %v1495_v31 = vadd.f32 2.0, %v2281_v16 }
 0x207   : > { %2284 = vpow2.f32 %v1487_v42 }
 0x208   : > { %v1503_v27 = vmul.f32 %v2281_v16, %v1495_v31 }
 0x20a   : > { %v2283_v25 = vpop.eup %2282  ;;  %v1519_v9 = vadd.f32 2.0, %v1503_v27  ;;  %v1511_v19 = vmul.f32 %v1503_v27, %v1463_v20 }
 0x20b   : > { %v1534_v4 = vmul.f32 %v2283_v25, %v1510_v18 }
 0x20c   : > { %2286 = vrcp.f32 %v1519_v9 }
 0x20d   : > { %v2285_v47 = vpop.eup %2284  ;;  %v1542_v23 = vadd.f32 %v2168_v12, %v1534_v4 }
 0x20e   : > { %v1496_v63 = vadd.f32 2.0, %v2285_v47 }
 0x20f   : > { %v2186_v26 = vpack.c.bf16 %v1542_v23, %v1541_v17 }
 0x210   : > { %v1504_v28 = vmul.f32 %v2285_v47, %v1496_v63 }
 0x211   : > { %2197 = vst [vmem:[%s2800_s20 + $0x10] sm:$0xff] %v2186_v26  }
 0x212   : > { %v2287_v34 = vpop.eup %2286  ;;  %v1520_v1 = vadd.f32 2.0, %v1504_v28  ;;  %v1512_v33 = vmul.f32 %v1504_v28, %v1464_v6 }
 0x213   : > { %v1535_v35 = vmul.f32 %v2287_v34, %v1511_v19 }
 0x214   : > { %2288 = vrcp.f32 %v1520_v1 }
 0x215   : > { %v1543_v36 = vadd.f32 %v2171_v44, %v1535_v35 }
 0x21a   : > { %v2289_v37 = vpop.eup %2288 }
 0x21b   : > { %v1536_v39 = vmul.f32 %v2289_v37, %v1512_v33 }
 0x21d   : > { %v1544_v40 = vadd.f32 %v2172_v29, %v1536_v39 }
 0x21f   : > { %v2191_v30 = vpack.c.bf16 %v1544_v40, %v1543_v36 }
 0x221   : > { %2198 = vst [vmem:[%s2800_s20 + $0x18] sm:$0xff] %v2191_v30  }
 0x222 PF: > { %s15_s18 = sadd.s32 1, %s2300_s18  }
 0x223   : > { %p12_p4 = scmp.ge.s32.totalorder %s15_s18, 4  }
 0x225   :  { %14 = sbr.rel (!%p12_p4) target bundleno = 1 (0x1), region = 80 }

// kernel: resblock_body_forward.10
= control target key start
LH: loop header
LB: loop body
LE: loop exit
PB: predicated region body
PF: predicated region fallthrough
CT: control target
= control target key end

     0   :  { %s776_s1 = inlined_call_operand.vmem [shape: bf16[128,128], index: 1, kind: input, shape index: {}]   ;;  %s777_s2 = inlined_call_operand.vmem [shape: f32[1,128], index: 2, kind: input, shape index: {}]   ;;  %s778_s0 = inlined_call_operand.vmem [shape: bf16[128,128], index: 0, kind: input, shape index: {}]   ;;  %s779_s3 = inlined_call_operand.vmem [shape: bf16[128,128], index: 3, kind: output, shape index: {}]  }
   0x1   :  { %v454_v0 = vld [vmem:[%s776_s1 + $0x38] sm:$0xff]  ;;  %v453_v1 = vld [vmem:[%s776_s1 + $0x30] sm:$0xff]  ;;  %v452_v2 = vld [vmem:[%s776_s1 + $0x28] sm:$0xff] }
   0x2   :  { %146 = vmatpush.bf16.msra.mxu0 %v454_v0  ;;  %502 = vmatpush.bf16.msra.mxu1 %v454_v0  ;;  %v451_v3 = vld [vmem:[%s776_s1 + $0x20] sm:$0xff]  ;;  %v450_v4 = vld [vmem:[%s776_s1 + $0x18] sm:$0xff]  ;;  %v449_v5 = vld [vmem:[%s776_s1 + $0x10] sm:$0xff] }
   0x3   :  { %503 = vmatpush.bf16.msra.mxu2 %v454_v0  ;;  %504 = vmatpush.bf16.msra.mxu3 %v454_v0  ;;  %v448_v6 = vld [vmem:[%s776_s1 + $0x8] sm:$0xff]  ;;  %v447_v7 = vld [vmem:[%s776_s1] sm:$0xff]  ;;  %v441_v9 = vld [vmem:[%s778_s0 + $0x10] sm:$0xff] }
   0x4   :  { %v439_v8 = vld [vmem:[%s778_s0] sm:$0xff]  ;;  %v445_v11 = vld [vmem:[%s778_s0 + $0x30] sm:$0xff]  ;;  %v440_v12 = vld [vmem:[%s778_s0 + $0x8] sm:$0xff] }
   0x5   :  { %v443_v10 = vld [vmem:[%s778_s0 + $0x20] sm:$0xff]  ;;  %v442_v13 = vld [vmem:[%s778_s0 + $0x18] sm:$0xff]  ;;  %v444_v14 = vld [vmem:[%s778_s0 + $0x28] sm:$0xff] }
   0x6   :  { %147 = vmatpush.bf16.msra.mxu0 %v453_v1  ;;  %505 = vmatpush.bf16.msra.mxu1 %v453_v1  ;;  %v446_v15 = vld [vmem:[%s778_s0 + $0x38] sm:$0xff]  ;;  %v662_v16 = vld [vmem:[%s777_s2] ss:$0 sm:$0xff] }
   0x7   :  { %506 = vmatpush.bf16.msra.mxu2 %v453_v1  ;;  %507 = vmatpush.bf16.msra.mxu3 %v453_v1 }
   0xa   :  { %148 = vmatpush.bf16.msra.mxu0 %v452_v2  ;;  %508 = vmatpush.bf16.msra.mxu1 %v452_v2 }
   0xb   :  { %509 = vmatpush.bf16.msra.mxu2 %v452_v2  ;;  %510 = vmatpush.bf16.msra.mxu3 %v452_v2 }
   0xe   :  { %149 = vmatpush.bf16.msra.mxu0 %v451_v3  ;;  %511 = vmatpush.bf16.msra.mxu1 %v451_v3 }
   0xf   :  { %512 = vmatpush.bf16.msra.mxu2 %v451_v3  ;;  %513 = vmatpush.bf16.msra.mxu3 %v451_v3 }
  0x12   :  { %150 = vmatpush.bf16.msra.mxu0 %v450_v4  ;;  %514 = vmatpush.bf16.msra.mxu1 %v450_v4 }
  0x13   :  { %515 = vmatpush.bf16.msra.mxu2 %v450_v4  ;;  %516 = vmatpush.bf16.msra.mxu3 %v450_v4 }
  0x16   :  { %151 = vmatpush.bf16.msra.mxu0 %v449_v5  ;;  %517 = vmatpush.bf16.msra.mxu1 %v449_v5 }
  0x17   :  { %518 = vmatpush.bf16.msra.mxu2 %v449_v5  ;;  %519 = vmatpush.bf16.msra.mxu3 %v449_v5 }
  0x1a   :  { %152 = vmatpush.bf16.msra.mxu0 %v448_v6  ;;  %520 = vmatpush.bf16.msra.mxu1 %v448_v6 }
  0x1b   :  { %521 = vmatpush.bf16.msra.mxu2 %v448_v6  ;;  %522 = vmatpush.bf16.msra.mxu3 %v448_v6 }
  0x1e   :  { %153 = vmatpush.bf16.msra.mxu0 %v447_v7  ;;  %523 = vmatpush.bf16.msra.mxu1 %v447_v7 }
  0x1f   :  { %524 = vmatpush.bf16.msra.mxu2 %v447_v7  ;;  %525 = vmatpush.bf16.msra.mxu3 %v447_v7 }
  0x21   :  { %154 = vmatmul.bf16.vlgmr.msra.gmra.mxu0 %v439_v8  ;;  %164 = vmatmul.bf16.vlgmr.msra.gmra.mxu1 %v441_v9 }
  0x22   :  { %174 = vmatmul.bf16.vlgmr.msra.gmra.mxu2 %v443_v10  ;;  %184 = vmatmul.bf16.vlgmr.msra.gmra.mxu3 %v445_v11 }
  0x31   :  { %159 = vmatmul.bf16.gmra.mxu0 %v440_v12  ;;  %169 = vmatmul.bf16.gmra.mxu1 %v442_v13 }
  0x32   :  { %179 = vmatmul.bf16.gmra.mxu2 %v444_v14  ;;  %189 = vmatmul.bf16.gmra.mxu3 %v446_v15 }
  0x9e   :  { %v155_v17 = vpop.f32.mrf.mxu0  ;;  %v165_v18 = vpop.f32.mrf.mxu1 }
  0x9f   :  { %v665_v19 = vadd.f32 %v662_v16, %v155_v17  ;;  %v668_v20 = vadd.f32 %v662_v16, %v165_v18 }
  0xa1   :  { %v195_v21 = vmin.f32 %v665_v19, 20.0  ;;  %v199_v22 = vmin.f32 %v668_v20, 20.0 }
  0xa3   :  { %v211_v23 = vmul.f32 1.442695, %v195_v21  ;;  %v219_v24 = vmul.f32 1.442695, %v199_v22 }
  0xa5   :  { %527 = vpow2.f32 %v211_v23  ;;  %v175_v25 = vpop.f32.mrf.mxu2  ;;  %v185_v26 = vpop.f32.mrf.mxu3 }
  0xa6   :  { %529 = vpow2.f32 %v219_v24  ;;  %v673_v27 = vadd.f32 %v662_v16, %v175_v25  ;;  %v676_v28 = vadd.f32 %v662_v16, %v185_v26  ;;  %v157_v29 = vpop.f32.mrf.mxu0  ;;  %v167_v30 = vpop.f32.mrf.mxu1 }
  0xa7   :  { %v679_v31 = vadd.f32 %v662_v16, %v157_v29  ;;  %v682_v32 = vadd.f32 %v662_v16, %v167_v30 }
  0xa8   :  { %v203_v33 = vmin.f32 %v673_v27, 20.0  ;;  %v207_v34 = vmin.f32 %v676_v28, 20.0 }
  0xa9   :  { %v196_v35 = vmin.f32 %v679_v31, 20.0  ;;  %v200_v36 = vmin.f32 %v682_v32, 20.0 }
  0xaa   :  { %v227_v37 = vmul.f32 1.442695, %v203_v33  ;;  %v235_v38 = vmul.f32 1.442695, %v207_v34 }
  0xab   :  { %v528_v39 = vpop.eup %527  ;;  %v213_v40 = vmul.f32 1.442695, %v196_v35  ;;  %v221_v41 = vmul.f32 1.442695, %v200_v36 }
  0xac   :  { %v530_v42 = vpop.eup %529  ;;  %v243_v43 = vadd.f32 2.0, %v528_v39  ;;  %531 = vpow2.f32 %v227_v37 }
  0xad   :  { %v247_v44 = vadd.f32 2.0, %v530_v42  ;;  %533 = vpow2.f32 %v235_v38  ;;  %v177_v45 = vpop.f32.mrf.mxu2  ;;  %v187_v46 = vpop.f32.mrf.mxu3 }
  0xae   :  { %535 = vpow2.f32 %v213_v40  ;;  %v689_v47 = vadd.f32 %v662_v16, %v177_v45  ;;  %v692_v48 = vadd.f32 %v662_v16, %v187_v46  ;;  %v160_v49 = vpop.f32.mrf.mxu0  ;;  %v170_v50 = vpop.f32.mrf.mxu1  ;;  %v259_v52 = vmul.f32 %v528_v39, %v243_v43 }
  0xaf   :  { %537 = vpow2.f32 %v221_v41  ;;  %v695_v51 = vadd.f32 %v662_v16, %v160_v49  ;;  %v697_v53 = vmul.f32 %v530_v42, %v247_v44  ;;  %v703_v57 = vadd.f32 %v662_v16, %v170_v50 }
  0xb0   :  { %v204_v54 = vmin.f32 %v689_v47, 20.0  ;;  %v208_v55 = vmin.f32 %v692_v48, 20.0  ;;  %v291_v0 = vadd.f32 2.0, %v259_v52  ;;  %v275_v49 = vmul.f32 %v259_v52, %v665_v19 }
  0xb1   :  { %v197_v56 = vmin.f32 %v695_v51, 20.0  ;;  %v295_v1 = vadd.f32 2.0, %v697_v53  ;;  %v201_v6 = vmin.f32 %v703_v57, 20.0 }
  0xb2   :  { %v532_v58 = vpop.eup %531  ;;  %v229_v59 = vmul.f32 1.442695, %v204_v54  ;;  %v237_v60 = vmul.f32 1.442695, %v208_v55 }
  0xb3   :  { %v534_v61 = vpop.eup %533  ;;  %v251_v62 = vadd.f32 2.0, %v532_v58  ;;  %v215_v5 = vmul.f32 1.442695, %v197_v56  ;;  %v223_v18 = vmul.f32 1.442695, %v201_v6  ;;  %v279_v56 = vmul.f32 %v697_v53, %v668_v20 }
  0xb4   :  { %v536_v63 = vpop.eup %535  ;;  %v255_v2 = vadd.f32 2.0, %v534_v61  ;;  %539 = vpow2.f32 %v229_v59 }
  0xb5   :  { %v538_v3 = vpop.eup %537  ;;  %v244_v4 = vadd.f32 2.0, %v536_v63  ;;  %541 = vpow2.f32 %v237_v60  ;;  %v180_v7 = vpop.f32.mrf.mxu2  ;;  %v267_v8 = vmul.f32 %v532_v58, %v251_v62 }
  0xb6   :  { %v707_v9 = vmul.f32 %v534_v61, %v255_v2  ;;  %v248_v10 = vadd.f32 2.0, %v538_v3  ;;  %v710_v11 = vadd.f32 %v662_v16, %v180_v7  ;;  %543 = vrcp.f32 %v291_v0  ;;  %v190_v15 = vpop.f32.mrf.mxu3  ;;  %v162_v21 = vpop.f32.mrf.mxu0 }
  0xb7   :  { %v260_v12 = vmul.f32 %v536_v63, %v244_v4  ;;  %545 = vrcp.f32 %v295_v1  ;;  %v172_v22 = vpop.f32.mrf.mxu1  ;;  %v299_v24 = vadd.f32 2.0, %v267_v8  ;;  %v715_v34 = vadd.f32 %v662_v16, %v190_v15 }
  0xb8   :  { %v264_v13 = vmul.f32 %v538_v3, %v248_v10  ;;  %v205_v14 = vmin.f32 %v710_v11, 20.0  ;;  %v303_v25 = vadd.f32 2.0, %v707_v9  ;;  %547 = vpow2.f32 %v215_v5 }
  0xb9   :  { %v292_v17 = vadd.f32 2.0, %v260_v12  ;;  %v718_v36 = vadd.f32 %v662_v16, %v162_v21  ;;  %v721_v37 = vadd.f32 %v662_v16, %v172_v22  ;;  %v209_v39 = vmin.f32 %v715_v34, 20.0 }
  0xba   :  { %v540_v23 = vpop.eup %539  ;;  %v296_v26 = vadd.f32 2.0, %v264_v13  ;;  %v231_v33 = vmul.f32 1.442695, %v205_v14  ;;  %v276_v50 = vmul.f32 %v260_v12, %v679_v31  ;;  %v280_v58 = vmul.f32 %v264_v13, %v682_v32 }
  0xbb   :  { %v542_v29 = vpop.eup %541  ;;  %549 = vrcp.f32 %v292_v17  ;;  %v252_v30 = vadd.f32 2.0, %v540_v23  ;;  %v198_v44 = vmin.f32 %v718_v36, 20.0  ;;  %v202_v45 = vmin.f32 %v721_v37, 20.0 }
  0xbc   :  { %551 = vrcp.f32 %v296_v26  ;;  %v256_v35 = vadd.f32 2.0, %v542_v29  ;;  %v544_v40 = vpop.eup %543  ;;  %v239_v59 = vmul.f32 1.442695, %v209_v39  ;;  %v283_v4 = vmul.f32 %v267_v8, %v673_v27 }
  0xbd   :  { %v268_v38 = vmul.f32 %v540_v23, %v252_v30  ;;  %553 = vpow2.f32 %v223_v18  ;;  %v546_v42 = vpop.eup %545  ;;  %v182_v60 = vpop.f32.mrf.mxu2  ;;  %v323_v62 = vmul.f32 %v544_v40, %v275_v49  ;;  %v217_v31 = vmul.f32 1.442695, %v198_v44 }
  0xbe   :  { %555 = vrcp.f32 %v299_v24  ;;  %v272_v41 = vmul.f32 %v542_v29, %v256_v35  ;;  %v548_v46 = vpop.eup %547  ;;  %v192_v0 = vpop.f32.mrf.mxu3  ;;  %v327_v19 = vmul.f32 %v546_v42, %v279_v56  ;;  %v225_v2 = vmul.f32 1.442695, %v202_v45 }
  0xbf   :  { %557 = vrcp.f32 %v303_v25  ;;  %v300_v43 = vadd.f32 2.0, %v268_v38  ;;  %v733_v20 = vadd.f32 %v662_v16, %v182_v60  ;;  %v245_v6 = vadd.f32 2.0, %v548_v46 }
  0xc0   :  { %v304_v54 = vadd.f32 2.0, %v272_v41  ;;  %559 = vpow2.f32 %v231_v33  ;;  %v736_v7 = vadd.f32 %v662_v16, %v192_v0  ;;  %v284_v12 = vmul.f32 %v268_v38, %v689_v47 }
  0xc1   :  { %v550_v55 = vpop.eup %549  ;;  %561 = vrcp.f32 %v300_v43  ;;  %v206_v27 = vmin.f32 %v733_v20, 20.0  ;;  %v287_v14 = vmul.f32 %v707_v9, %v676_v28  ;;  %v288_v16 = vmul.f32 %v272_v41, %v692_v48 }
  0xc2   :  { %v552_v61 = vpop.eup %551  ;;  %v324_v63 = vmul.f32 %v550_v55, %v276_v50  ;;  %563 = vrcp.f32 %v304_v54  ;;  %v210_v15 = vmin.f32 %v736_v7, 20.0  ;;  %v261_v24 = vmul.f32 %v548_v46, %v245_v6 }
  0xc3   :  { %v554_v1 = vpop.eup %553  ;;  %v328_v52 = vmul.f32 %v552_v61, %v280_v58  ;;  %565 = vpow2.f32 %v239_v59  ;;  %v233_v21 = vmul.f32 1.442695, %v206_v27 }
  0xc4   :  { %v556_v3 = vpop.eup %555  ;;  %v458_v5 = vpack.c.bf16 %v324_v63, %v323_v62  ;;  %v249_v13 = vadd.f32 2.0, %v554_v1  ;;  %567 = vpow2.f32 %v217_v31  ;;  %v241_v25 = vmul.f32 1.442695, %v210_v15 }
  0xc5   :  { %v558_v32 = vpop.eup %557  ;;  %v468_v53 = vpack.c.bf16 %v328_v52, %v327_v19  ;;  %569 = vpow2.f32 %v225_v2  ;;  %v331_v18 = vmul.f32 %v556_v3, %v283_v4  ;;  %v293_v38 = vadd.f32 2.0, %v261_v24 }
  0xc6   :  { %v560_v10 = vpop.eup %559  ;;  %459 = vst [vmem:[%s779_s3] sm:$0xff] %v458_v5   ;;  %v335_v22 = vmul.f32 %v558_v32, %v287_v14  ;;  %v265_v29 = vmul.f32 %v554_v1, %v249_v13  ;;  %571 = vpow2.f32 %v233_v21  ;;  %v277_v19 = vmul.f32 %v261_v24, %v695_v51 }
  0xc7   :  { %v562_v8 = vpop.eup %561  ;;  %496 = vst [vmem:[%s779_s3 + $0x10] sm:$0xff] %v468_v53   ;;  %v253_v28 = vadd.f32 2.0, %v560_v10  ;;  %573 = vpow2.f32 %v241_v25 }
  0xc8   :  { %v564_v17 = vpop.eup %563  ;;  %v332_v47 = vmul.f32 %v562_v8, %v284_v12  ;;  %v297_v40 = vadd.f32 2.0, %v265_v29  ;;  %575 = vrcp.f32 %v293_v38  ;;  %v281_v2 = vmul.f32 %v265_v29, %v703_v57 }
  0xc9   :  { %v336_v23 = vmul.f32 %v564_v17, %v288_v16  ;;  %v566_v9 = vpop.eup %565  ;;  %v269_v41 = vmul.f32 %v560_v10, %v253_v28 }
  0xca   :  { %v478_v26 = vpack.c.bf16 %v332_v47, %v331_v18  ;;  %v568_v33 = vpop.eup %567  ;;  %v257_v48 = vadd.f32 2.0, %v566_v9  ;;  %577 = vrcp.f32 %v297_v40 }
  0xcb   :  { %v488_v30 = vpack.c.bf16 %v336_v23, %v335_v22  ;;  %v570_v35 = vpop.eup %569  ;;  %v246_v39 = vadd.f32 2.0, %v568_v33  ;;  %v301_v54 = vadd.f32 2.0, %v269_v41  ;;  %v285_v27 = vmul.f32 %v269_v41, %v710_v11 }
  0xcc   :  { %498 = vst [vmem:[%s779_s3 + $0x20] sm:$0xff] %v478_v26   ;;  %v250_v42 = vadd.f32 2.0, %v570_v35  ;;  %v273_v43 = vmul.f32 %v566_v9, %v257_v48  ;;  %v572_v46 = vpop.eup %571 }
  0xcd   :  { %500 = vst [vmem:[%s779_s3 + $0x30] sm:$0xff] %v488_v30   ;;  %v262_v44 = vmul.f32 %v568_v33, %v246_v39  ;;  %v574_v50 = vpop.eup %573  ;;  %v254_v56 = vadd.f32 2.0, %v572_v46 }
  0xce   :  { %v266_v45 = vmul.f32 %v570_v35, %v250_v42  ;;  %v305_v58 = vadd.f32 2.0, %v273_v43  ;;  %v258_v59 = vadd.f32 2.0, %v574_v50  ;;  %v576_v63 = vpop.eup %575  ;;  %v289_v14 = vmul.f32 %v273_v43, %v715_v34 }
  0xcf   :  { %v294_v49 = vadd.f32 2.0, %v262_v44  ;;  %v270_v60 = vmul.f32 %v572_v46, %v254_v56  ;;  %v278_v52 = vmul.f32 %v262_v44, %v718_v36  ;;  %v325_v5 = vmul.f32 %v576_v63, %v277_v19 }
  0xd0   :  { %v298_v55 = vadd.f32 2.0, %v266_v45  ;;  %v274_v61 = vmul.f32 %v574_v50, %v258_v59  ;;  %v578_v1 = vpop.eup %577  ;;  %v282_v3 = vmul.f32 %v266_v45, %v721_v37 }
  0xd1   :  { %579 = vrcp.f32 %v294_v49  ;;  %v302_v62 = vadd.f32 2.0, %v270_v60  ;;  %v329_v53 = vmul.f32 %v578_v1, %v281_v2  ;;  %v286_v36 = vmul.f32 %v270_v60, %v733_v20 }
  0xd2   :  { %581 = vrcp.f32 %v298_v55  ;;  %v306_v0 = vadd.f32 2.0, %v274_v61  ;;  %v290_v57 = vmul.f32 %v274_v61, %v736_v7 }
  0xd3   :  { %583 = vrcp.f32 %v301_v54 }
  0xd4   :  { %585 = vrcp.f32 %v305_v58 }
  0xd5   :  { %587 = vrcp.f32 %v302_v62 }
  0xd6   :  { %589 = vrcp.f32 %v306_v0 }
  0xd7   :  { %v580_v31 = vpop.eup %579 }
  0xd8   :  { %v582_v4 = vpop.eup %581  ;;  %v326_v32 = vmul.f32 %v580_v31, %v278_v52 }
  0xd9   :  { %v330_v6 = vmul.f32 %v582_v4, %v282_v3  ;;  %v584_v10 = vpop.eup %583 }
  0xda   :  { %v463_v12 = vpack.c.bf16 %v326_v32, %v325_v5  ;;  %v586_v13 = vpop.eup %585  ;;  %v333_v16 = vmul.f32 %v584_v10, %v285_v27 }
  0xdb   :  { %v473_v51 = vpack.c.bf16 %v330_v6, %v329_v53  ;;  %v588_v8 = vpop.eup %587  ;;  %v337_v11 = vmul.f32 %v586_v13, %v289_v14 }
  0xdc   :  { %495 = vst [vmem:[%s779_s3 + $0x8] sm:$0xff] %v463_v12   ;;  %v590_v37 = vpop.eup %589  ;;  %v334_v15 = vmul.f32 %v588_v8, %v286_v36 }
  0xdd   :  { %497 = vst [vmem:[%s779_s3 + $0x18] sm:$0xff] %v473_v51   ;;  %v338_v17 = vmul.f32 %v590_v37, %v290_v57 }
  0xde   :  { %v483_v18 = vpack.c.bf16 %v334_v15, %v333_v16 }
  0xdf   :  { %v493_v20 = vpack.c.bf16 %v338_v17, %v337_v11 }
  0xe0   :  { %499 = vst [vmem:[%s779_s3 + $0x28] sm:$0xff] %v483_v18  }
  0xe1   :  { %501 = vst [vmem:[%s779_s3 + $0x38] sm:$0xff] %v493_v20  }

// kernel: resblock_body_forward.11
= control target key start
LH: loop header
LB: loop body
LE: loop exit
PB: predicated region body
PF: predicated region fallthrough
CT: control target
= control target key end

     0   :  { %s1089_s3 = inlined_call_operand.vmem [shape: bf16[128,128], index: 3, kind: input, shape index: {}]   ;;  %s1090_s2 = inlined_call_operand.vmem [shape: bf16[128,128], index: 2, kind: input, shape index: {}]   ;;  %s1091_s1 = inlined_call_operand.vmem [shape: bf16[128,128], index: 1, kind: input, shape index: {}]   ;;  %s1092_s0 = inlined_call_operand.vmem [shape: bf16[128,128], index: 0, kind: input, shape index: {}]   ;;  %s1093_s4 = inlined_call_operand.vmem [shape: f32[1,128], index: 4, kind: input, shape index: {}]   ;;  %s1094_s5 = inlined_call_operand.vmem [shape: bf16[128,128], index: 5, kind: output, shape index: {}]  }
   0x1   :  { %v733_v0 = vld [vmem:[%s1089_s3 + $0x38] sm:$0xff]  ;;  %v732_v2 = vld [vmem:[%s1089_s3 + $0x30] sm:$0xff]  ;;  %v731_v4 = vld [vmem:[%s1089_s3 + $0x28] sm:$0xff] }
   0x2   :  { %v717_v1 = vld [vmem:[%s1090_s2 + $0x38] sm:$0xff]  ;;  %180 = vmatpush.bf16.msra.mxu0 %v733_v0  ;;  %781 = vmatpush.bf16.msra.mxu2 %v733_v0  ;;  %v716_v3 = vld [vmem:[%s1090_s2 + $0x30] sm:$0xff]  ;;  %v715_v5 = vld [vmem:[%s1090_s2 + $0x28] sm:$0xff] }
   0x3   :  { %325 = vmatpush.bf16.msra.mxu1 %v717_v1  ;;  %789 = vmatpush.bf16.msra.mxu3 %v717_v1  ;;  %v730_v6 = vld [vmem:[%s1089_s3 + $0x20] sm:$0xff]  ;;  %v729_v8 = vld [vmem:[%s1089_s3 + $0x18] sm:$0xff]  ;;  %v728_v10 = vld [vmem:[%s1089_s3 + $0x10] sm:$0xff] }
   0x4   :  { %v714_v7 = vld [vmem:[%s1090_s2 + $0x20] sm:$0xff]  ;;  %v713_v9 = vld [vmem:[%s1090_s2 + $0x18] sm:$0xff]  ;;  %v712_v11 = vld [vmem:[%s1090_s2 + $0x10] sm:$0xff] }
   0x5   :  { %v727_v12 = vld [vmem:[%s1089_s3 + $0x8] sm:$0xff]  ;;  %v726_v14 = vld [vmem:[%s1089_s3] sm:$0xff]  ;;  %v720_v24 = vld [vmem:[%s1091_s1 + $0x10] sm:$0xff] }
   0x6   :  { %181 = vmatpush.bf16.msra.mxu0 %v732_v2  ;;  %782 = vmatpush.bf16.msra.mxu2 %v732_v2  ;;  %v711_v13 = vld [vmem:[%s1090_s2 + $0x8] sm:$0xff]  ;;  %v710_v15 = vld [vmem:[%s1090_s2] sm:$0xff]  ;;  %v724_v25 = vld [vmem:[%s1091_s1 + $0x30] sm:$0xff] }
   0x7   :  { %326 = vmatpush.bf16.msra.mxu1 %v716_v3  ;;  %790 = vmatpush.bf16.msra.mxu3 %v716_v3  ;;  %v718_v16 = vld [vmem:[%s1091_s1] sm:$0xff]  ;;  %v719_v20 = vld [vmem:[%s1091_s1 + $0x8] sm:$0xff]  ;;  %v704_v26 = vld [vmem:[%s1092_s0 + $0x10] sm:$0xff] }
   0x8   :  { %v722_v17 = vld [vmem:[%s1091_s1 + $0x20] sm:$0xff]  ;;  %v723_v21 = vld [vmem:[%s1091_s1 + $0x28] sm:$0xff]  ;;  %v708_v27 = vld [vmem:[%s1092_s0 + $0x30] sm:$0xff] }
   0x9   :  { %v702_v18 = vld [vmem:[%s1092_s0] sm:$0xff]  ;;  %v703_v22 = vld [vmem:[%s1092_s0 + $0x8] sm:$0xff]  ;;  %v721_v28 = vld [vmem:[%s1091_s1 + $0x18] sm:$0xff] }
   0xa   :  { %182 = vmatpush.bf16.msra.mxu0 %v731_v4  ;;  %783 = vmatpush.bf16.msra.mxu2 %v731_v4  ;;  %v706_v19 = vld [vmem:[%s1092_s0 + $0x20] sm:$0xff]  ;;  %v707_v23 = vld [vmem:[%s1092_s0 + $0x28] sm:$0xff]  ;;  %v725_v29 = vld [vmem:[%s1091_s1 + $0x38] sm:$0xff] }
   0xb   :  { %327 = vmatpush.bf16.msra.mxu1 %v715_v5  ;;  %791 = vmatpush.bf16.msra.mxu3 %v715_v5  ;;  %v705_v30 = vld [vmem:[%s1092_s0 + $0x18] sm:$0xff]  ;;  %v991_v33 = vld [vmem:[%s1093_s4] ss:$0 sm:$0xff] }
   0xc   :  { %v709_v31 = vld [vmem:[%s1092_s0 + $0x38] sm:$0xff] }
   0xe   :  { %183 = vmatpush.bf16.msra.mxu0 %v730_v6  ;;  %784 = vmatpush.bf16.msra.mxu2 %v730_v6 }
   0xf   :  { %328 = vmatpush.bf16.msra.mxu1 %v714_v7  ;;  %792 = vmatpush.bf16.msra.mxu3 %v714_v7 }
  0x12   :  { %184 = vmatpush.bf16.msra.mxu0 %v729_v8  ;;  %785 = vmatpush.bf16.msra.mxu2 %v729_v8 }
  0x13   :  { %329 = vmatpush.bf16.msra.mxu1 %v713_v9  ;;  %793 = vmatpush.bf16.msra.mxu3 %v713_v9 }
  0x16   :  { %185 = vmatpush.bf16.msra.mxu0 %v728_v10  ;;  %786 = vmatpush.bf16.msra.mxu2 %v728_v10 }
  0x17   :  { %330 = vmatpush.bf16.msra.mxu1 %v712_v11  ;;  %794 = vmatpush.bf16.msra.mxu3 %v712_v11 }
  0x1a   :  { %186 = vmatpush.bf16.msra.mxu0 %v727_v12  ;;  %787 = vmatpush.bf16.msra.mxu2 %v727_v12 }
  0x1b   :  { %331 = vmatpush.bf16.msra.mxu1 %v711_v13  ;;  %795 = vmatpush.bf16.msra.mxu3 %v711_v13 }
  0x1e   :  { %187 = vmatpush.bf16.msra.mxu0 %v726_v14  ;;  %788 = vmatpush.bf16.msra.mxu2 %v726_v14 }
  0x1f   :  { %332 = vmatpush.bf16.msra.mxu1 %v710_v15  ;;  %796 = vmatpush.bf16.msra.mxu3 %v710_v15 }
  0x21   :  { %188 = vmatmul.bf16.vlgmr.msra.gmra.mxu0 %v718_v16  ;;  %208 = vmatmul.bf16.vlgmr.msra.gmra.mxu2 %v722_v17 }
  0x22   :  { %333 = vmatmul.bf16.vlgmr.msra.gmra.mxu1 %v702_v18  ;;  %353 = vmatmul.bf16.vlgmr.msra.gmra.mxu3 %v706_v19 }
  0x31   :  { %193 = vmatmul.bf16.gmra.mxu0 %v719_v20  ;;  %213 = vmatmul.bf16.gmra.mxu2 %v723_v21 }
  0x32   :  { %338 = vmatmul.bf16.gmra.mxu1 %v703_v22  ;;  %358 = vmatmul.bf16.gmra.mxu3 %v707_v23 }
  0x41   :  { %198 = vmatmul.bf16.gmra.mxu0 %v720_v24  ;;  %218 = vmatmul.bf16.gmra.mxu2 %v724_v25 }
  0x42   :  { %343 = vmatmul.bf16.gmra.mxu1 %v704_v26  ;;  %363 = vmatmul.bf16.gmra.mxu3 %v708_v27 }
  0x51   :  { %203 = vmatmul.bf16.gmra.mxu0 %v721_v28  ;;  %223 = vmatmul.bf16.gmra.mxu2 %v725_v29 }
  0x52   :  { %348 = vmatmul.bf16.gmra.mxu1 %v705_v30  ;;  %368 = vmatmul.bf16.gmra.mxu3 %v709_v31 }
  0x9e   :  { %v189_v32 = vpop.f32.mrf.mxu0 }
  0x9f   :  { %v334_v34 = vpop.f32.mrf.mxu1 }
  0xa0   :  { %v335_v35 = vadd.f32 %v334_v34, %v189_v32 }
  0xa2   :  { %v994_v36 = vadd.f32 %v991_v33, %v335_v35 }
  0xa4   :  { %v394_v37 = vmin.f32 %v994_v36, 20.0  ;;  %v209_v38 = vpop.f32.mrf.mxu2 }
  0xa5   :  { %v354_v39 = vpop.f32.mrf.mxu3 }
  0xa6   :  { %v410_v40 = vmul.f32 1.442695, %v394_v37  ;;  %v355_v41 = vadd.f32 %v354_v39, %v209_v38  ;;  %v191_v42 = vpop.f32.mrf.mxu0 }
  0xa7   :  { %v336_v43 = vpop.f32.mrf.mxu1 }
  0xa8   :  { %798 = vpow2.f32 %v410_v40  ;;  %v998_v44 = vadd.f32 %v991_v33, %v355_v41  ;;  %v337_v45 = vadd.f32 %v336_v43, %v191_v42 }
  0xaa   :  { %v402_v46 = vmin.f32 %v998_v44, 20.0  ;;  %v1002_v47 = vadd.f32 %v991_v33, %v337_v45 }
  0xac   :  { %v426_v48 = vmul.f32 1.442695, %v402_v46  ;;  %v395_v49 = vmin.f32 %v1002_v47, 20.0  ;;  %v211_v50 = vpop.f32.mrf.mxu2 }
  0xad   :  { %v356_v51 = vpop.f32.mrf.mxu3 }
  0xae   :  { %v799_v52 = vpop.eup %798  ;;  %800 = vpow2.f32 %v426_v48  ;;  %v412_v53 = vmul.f32 1.442695, %v395_v49  ;;  %v357_v54 = vadd.f32 %v356_v51, %v211_v50  ;;  %v194_v55 = vpop.f32.mrf.mxu0 }
  0xaf   :  { %v442_v56 = vadd.f32 2.0, %v799_v52  ;;  %v339_v57 = vpop.f32.mrf.mxu1 }
  0xb0   :  { %802 = vpow2.f32 %v412_v53  ;;  %v1006_v58 = vadd.f32 %v991_v33, %v357_v54  ;;  %v340_v59 = vadd.f32 %v339_v57, %v194_v55 }
  0xb1   :  { %v458_v62 = vmul.f32 %v799_v52, %v442_v56 }
  0xb2   :  { %v403_v60 = vmin.f32 %v1006_v58, 20.0  ;;  %v1010_v61 = vadd.f32 %v991_v33, %v340_v59 }
  0xb3   :  { %v490_v9 = vadd.f32 2.0, %v458_v62  ;;  %v474_v39 = vmul.f32 %v458_v62, %v994_v36 }
  0xb4   :  { %v801_v63 = vpop.eup %800  ;;  %v428_v0 = vmul.f32 1.442695, %v403_v60  ;;  %v396_v1 = vmin.f32 %v1010_v61, 20.0  ;;  %v214_v2 = vpop.f32.mrf.mxu2 }
  0xb5   :  { %v450_v3 = vadd.f32 2.0, %v801_v63  ;;  %v359_v4 = vpop.f32.mrf.mxu3 }
  0xb6   :  { %v803_v5 = vpop.eup %802  ;;  %804 = vpow2.f32 %v428_v0  ;;  %v414_v6 = vmul.f32 1.442695, %v396_v1  ;;  %v360_v7 = vadd.f32 %v359_v4, %v214_v2  ;;  %v196_v8 = vpop.f32.mrf.mxu0 }
  0xb7   :  { %v443_v10 = vadd.f32 2.0, %v803_v5  ;;  %v341_v11 = vpop.f32.mrf.mxu1  ;;  %v466_v14 = vmul.f32 %v801_v63, %v450_v3 }
  0xb8   :  { %806 = vpow2.f32 %v414_v6  ;;  %v1014_v12 = vadd.f32 %v991_v33, %v360_v7  ;;  %v342_v13 = vadd.f32 %v341_v11, %v196_v8 }
  0xb9   :  { %v459_v15 = vmul.f32 %v803_v5, %v443_v10  ;;  %808 = vrcp.f32 %v490_v9  ;;  %v498_v23 = vadd.f32 2.0, %v466_v14  ;;  %v482_v60 = vmul.f32 %v466_v14, %v998_v44 }
  0xba   :  { %v404_v16 = vmin.f32 %v1014_v12, 20.0  ;;  %v1018_v17 = vadd.f32 %v991_v33, %v342_v13 }
  0xbb   :  { %v491_v18 = vadd.f32 2.0, %v459_v15  ;;  %v475_v40 = vmul.f32 %v459_v15, %v1002_v47 }
  0xbc   :  { %v805_v19 = vpop.eup %804  ;;  %v430_v20 = vmul.f32 1.442695, %v404_v16  ;;  %v397_v21 = vmin.f32 %v1018_v17, 20.0  ;;  %v216_v22 = vpop.f32.mrf.mxu2 }
  0xbd   :  { %810 = vrcp.f32 %v491_v18  ;;  %v451_v24 = vadd.f32 2.0, %v805_v19  ;;  %v361_v25 = vpop.f32.mrf.mxu3 }
  0xbe   :  { %v807_v26 = vpop.eup %806  ;;  %812 = vpow2.f32 %v430_v20  ;;  %v416_v27 = vmul.f32 1.442695, %v397_v21  ;;  %v362_v28 = vadd.f32 %v361_v25, %v216_v22  ;;  %v199_v29 = vpop.f32.mrf.mxu0 }
  0xbf   :  { %v467_v30 = vmul.f32 %v805_v19, %v451_v24  ;;  %v444_v31 = vadd.f32 2.0, %v807_v26  ;;  %v344_v32 = vpop.f32.mrf.mxu1  ;;  %v809_v37 = vpop.eup %808 }
  0xc0   :  { %814 = vpow2.f32 %v416_v27  ;;  %v1022_v34 = vadd.f32 %v991_v33, %v362_v28  ;;  %v345_v35 = vadd.f32 %v344_v32, %v199_v29  ;;  %v522_v48 = vmul.f32 %v809_v37, %v474_v39 }
  0xc1   :  { %816 = vrcp.f32 %v498_v23  ;;  %v499_v38 = vadd.f32 2.0, %v467_v30  ;;  %v460_v45 = vmul.f32 %v807_v26, %v444_v31  ;;  %v483_v1 = vmul.f32 %v467_v30, %v1006_v58 }
  0xc2   :  { %v405_v41 = vmin.f32 %v1022_v34, 20.0  ;;  %v1028_v42 = vadd.f32 %v991_v33, %v345_v35 }
  0xc3   :  { %v811_v43 = vpop.eup %810  ;;  %818 = vrcp.f32 %v499_v38  ;;  %v492_v62 = vadd.f32 2.0, %v460_v45  ;;  %v476_v31 = vmul.f32 %v460_v45, %v1010_v61 }
  0xc4   :  { %v813_v46 = vpop.eup %812  ;;  %v523_v49 = vmul.f32 %v811_v43, %v475_v40  ;;  %v432_v50 = vmul.f32 1.442695, %v405_v41  ;;  %v398_v51 = vmin.f32 %v1028_v42, 20.0  ;;  %v219_v52 = vpop.f32.mrf.mxu2 }
  0xc5   :  { %v452_v53 = vadd.f32 2.0, %v813_v46  ;;  %v364_v54 = vpop.f32.mrf.mxu3 }
  0xc6   :  { %v815_v36 = vpop.eup %814  ;;  %v737_v55 = vpack.c.bf16 %v523_v49, %v522_v48  ;;  %820 = vpow2.f32 %v432_v50  ;;  %v418_v47 = vmul.f32 1.442695, %v398_v51  ;;  %v365_v56 = vadd.f32 %v364_v54, %v219_v52  ;;  %v201_v57 = vpop.f32.mrf.mxu0 }
  0xc7   :  { %v817_v59 = vpop.eup %816  ;;  %v445_v63 = vadd.f32 2.0, %v815_v36  ;;  %v346_v0 = vpop.f32.mrf.mxu1  ;;  %v468_v5 = vmul.f32 %v813_v46, %v452_v53 }
  0xc8   :  { %738 = vst [vmem:[%s1094_s5] sm:$0xff] %v737_v55   ;;  %822 = vpow2.f32 %v418_v47  ;;  %v1037_v2 = vadd.f32 %v991_v33, %v365_v56  ;;  %v347_v3 = vadd.f32 %v346_v0, %v201_v57  ;;  %v530_v7 = vmul.f32 %v817_v59, %v482_v60 }
  0xc9   :  { %v819_v4 = vpop.eup %818  ;;  %v461_v6 = vmul.f32 %v815_v36, %v445_v63  ;;  %824 = vrcp.f32 %v492_v62  ;;  %v500_v16 = vadd.f32 2.0, %v468_v5  ;;  %v484_v36 = vmul.f32 %v468_v5, %v1014_v12 }
  0xca   :  { %v531_v8 = vmul.f32 %v819_v4, %v483_v1  ;;  %v406_v44 = vmin.f32 %v1037_v2, 20.0  ;;  %v1041_v9 = vadd.f32 %v991_v33, %v347_v3 }
  0xcb   :  { %v493_v10 = vadd.f32 2.0, %v461_v6  ;;  %v477_v32 = vmul.f32 %v461_v6, %v1018_v17 }
  0xcc   :  { %v821_v11 = vpop.eup %820  ;;  %v757_v13 = vpack.c.bf16 %v531_v8, %v530_v7  ;;  %v434_v58 = vmul.f32 1.442695, %v406_v44  ;;  %v399_v14 = vmin.f32 %v1041_v9, 20.0  ;;  %v221_v15 = vpop.f32.mrf.mxu2 }
  0xcd   :  { %826 = vrcp.f32 %v493_v10  ;;  %v453_v18 = vadd.f32 2.0, %v821_v11  ;;  %v366_v19 = vpop.f32.mrf.mxu3 }
  0xce   :  { %v823_v20 = vpop.eup %822  ;;  %777 = vst [vmem:[%s1094_s5 + $0x20] sm:$0xff] %v757_v13   ;;  %828 = vpow2.f32 %v434_v58  ;;  %v420_v21 = vmul.f32 1.442695, %v399_v14  ;;  %v367_v22 = vadd.f32 %v366_v19, %v221_v15  ;;  %v204_v23 = vpop.f32.mrf.mxu0 }
  0xcf   :  { %v469_v24 = vmul.f32 %v821_v11, %v453_v18  ;;  %v446_v25 = vadd.f32 2.0, %v823_v20  ;;  %v349_v26 = vpop.f32.mrf.mxu1  ;;  %v825_v29 = vpop.eup %824 }
  0xd0   :  { %830 = vpow2.f32 %v420_v21  ;;  %v1048_v27 = vadd.f32 %v991_v33, %v367_v22  ;;  %v350_v28 = vadd.f32 %v349_v26, %v204_v23  ;;  %v524_v41 = vmul.f32 %v825_v29, %v476_v31 }
  0xd1   :  { %832 = vrcp.f32 %v500_v16  ;;  %v501_v30 = vadd.f32 2.0, %v469_v24  ;;  %v462_v39 = vmul.f32 %v823_v20, %v446_v25  ;;  %v485_v57 = vmul.f32 %v469_v24, %v1022_v34 }
  0xd2   :  { %v407_v35 = vmin.f32 %v1048_v27, 20.0  ;;  %v1054_v37 = vadd.f32 %v991_v33, %v350_v28 }
  0xd3   :  { %v827_v38 = vpop.eup %826  ;;  %834 = vrcp.f32 %v501_v30  ;;  %v494_v55 = vadd.f32 2.0, %v462_v39  ;;  %v478_v22 = vmul.f32 %v462_v39, %v1028_v42 }
  0xd4   :  { %v829_v40 = vpop.eup %828  ;;  %v525_v43 = vmul.f32 %v827_v38, %v477_v32  ;;  %v436_v46 = vmul.f32 1.442695, %v407_v35  ;;  %v400_v48 = vmin.f32 %v1054_v37, 20.0  ;;  %v224_v49 = vpop.f32.mrf.mxu2 }
  0xd5   :  { %v454_v50 = vadd.f32 2.0, %v829_v40  ;;  %v369_v51 = vpop.f32.mrf.mxu3 }
  0xd6   :  { %v831_v61 = vpop.eup %830  ;;  %v742_v45 = vpack.c.bf16 %v525_v43, %v524_v41  ;;  %836 = vpow2.f32 %v436_v46  ;;  %v422_v17 = vmul.f32 1.442695, %v400_v48  ;;  %v370_v52 = vadd.f32 %v369_v51, %v224_v49  ;;  %v206_v53 = vpop.f32.mrf.mxu0 }
  0xd7   :  { %v833_v54 = vpop.eup %832  ;;  %v447_v47 = vadd.f32 2.0, %v831_v61  ;;  %v351_v56 = vpop.f32.mrf.mxu1  ;;  %v470_v63 = vmul.f32 %v829_v40, %v454_v50 }
  0xd8   :  { %774 = vst [vmem:[%s1094_s5 + $0x8] sm:$0xff] %v742_v45   ;;  %838 = vpow2.f32 %v422_v17  ;;  %v1063_v59 = vadd.f32 %v991_v33, %v370_v52  ;;  %v352_v60 = vadd.f32 %v351_v56, %v206_v53  ;;  %v532_v1 = vmul.f32 %v833_v54, %v484_v36 }
  0xd9   :  { %v835_v62 = vpop.eup %834  ;;  %v463_v0 = vmul.f32 %v831_v61, %v447_v47  ;;  %840 = vrcp.f32 %v494_v55  ;;  %v502_v10 = vadd.f32 2.0, %v470_v63  ;;  %v486_v43 = vmul.f32 %v470_v63, %v1037_v2 }
  0xda   :  { %v533_v3 = vmul.f32 %v835_v62, %v485_v57  ;;  %v408_v12 = vmin.f32 %v1063_v59, 20.0  ;;  %v385_v4 = vadd.f32 %v991_v33, %v352_v60 }
  0xdb   :  { %v495_v5 = vadd.f32 2.0, %v463_v0  ;;  %v479_v23 = vmul.f32 %v463_v0, %v1041_v9 }
  0xdc   :  { %v837_v6 = vpop.eup %836  ;;  %v762_v7 = vpack.c.bf16 %v533_v3, %v532_v1  ;;  %v438_v8 = vmul.f32 1.442695, %v408_v12  ;;  %v401_v34 = vmin.f32 %v385_v4, 20.0  ;;  %v226_v44 = vpop.f32.mrf.mxu2 }
  0xdd   :  { %842 = vrcp.f32 %v495_v5  ;;  %v455_v11 = vadd.f32 2.0, %v837_v6  ;;  %v371_v13 = vpop.f32.mrf.mxu3 }
  0xde   :  { %v839_v58 = vpop.eup %838  ;;  %778 = vst [vmem:[%s1094_s5 + $0x28] sm:$0xff] %v762_v7   ;;  %844 = vpow2.f32 %v438_v8  ;;  %v424_v14 = vmul.f32 1.442695, %v401_v34  ;;  %v372_v15 = vadd.f32 %v371_v13, %v226_v44 }
  0xdf   :  { %v471_v16 = vmul.f32 %v837_v6, %v455_v11  ;;  %v448_v18 = vadd.f32 2.0, %v839_v58  ;;  %v841_v20 = vpop.eup %840 }
  0xe0   :  { %846 = vpow2.f32 %v424_v14  ;;  %v393_v19 = vadd.f32 %v991_v33, %v372_v15  ;;  %v526_v29 = vmul.f32 %v841_v20, %v478_v22 }
  0xe1   :  { %848 = vrcp.f32 %v502_v10  ;;  %v503_v21 = vadd.f32 2.0, %v471_v16  ;;  %v464_v26 = vmul.f32 %v839_v58, %v448_v18  ;;  %v487_v42 = vmul.f32 %v471_v16, %v1048_v27 }
  0xe2   :  { %v409_v24 = vmin.f32 %v393_v19, 20.0 }
  0xe3   :  { %v843_v25 = vpop.eup %842  ;;  %850 = vrcp.f32 %v503_v21  ;;  %v496_v40 = vadd.f32 2.0, %v464_v26  ;;  %v480_v53 = vmul.f32 %v464_v26, %v1054_v37 }
  0xe4   :  { %v845_v28 = vpop.eup %844  ;;  %v527_v30 = vmul.f32 %v843_v25, %v479_v23  ;;  %v440_v31 = vmul.f32 1.442695, %v409_v24 }
  0xe5   :  { %v456_v32 = vadd.f32 2.0, %v845_v28 }
  0xe6   :  { %v847_v35 = vpop.eup %846  ;;  %v747_v38 = vpack.c.bf16 %v527_v30, %v526_v29  ;;  %852 = vpow2.f32 %v440_v31 }
  0xe7   :  { %v849_v33 = vpop.eup %848  ;;  %v449_v41 = vadd.f32 2.0, %v847_v35  ;;  %v472_v39 = vmul.f32 %v845_v28, %v456_v32  ;;  %854 = vrcp.f32 %v496_v40 }
  0xe8   :  { %775 = vst [vmem:[%s1094_s5 + $0x10] sm:$0xff] %v747_v38   ;;  %v534_v48 = vmul.f32 %v849_v33, %v486_v43 }
  0xe9   :  { %v851_v9 = vpop.eup %850  ;;  %v465_v46 = vmul.f32 %v847_v35, %v449_v41  ;;  %v504_v45 = vadd.f32 2.0, %v472_v39  ;;  %v488_v60 = vmul.f32 %v472_v39, %v1063_v59 }
  0xea   :  { %v535_v49 = vmul.f32 %v851_v9, %v487_v42 }
  0xeb   :  { %v497_v50 = vadd.f32 2.0, %v465_v46  ;;  %v481_v54 = vmul.f32 %v465_v46, %v385_v4 }
  0xec   :  { %v853_v51 = vpop.eup %852  ;;  %v767_v61 = vpack.c.bf16 %v535_v49, %v534_v48 }
  0xed   :  { %856 = vrcp.f32 %v497_v50  ;;  %v457_v17 = vadd.f32 2.0, %v853_v51  ;;  %v855_v52 = vpop.eup %854 }
  0xee   :  { %779 = vst [vmem:[%s1094_s5 + $0x30] sm:$0xff] %v767_v61   ;;  %858 = vrcp.f32 %v504_v45  ;;  %v528_v55 = vmul.f32 %v855_v52, %v480_v53 }
  0xef   :  { %v473_v2 = vmul.f32 %v853_v51, %v457_v17 }
  0xf1   :  { %v505_v27 = vadd.f32 2.0, %v473_v2  ;;  %v489_v62 = vmul.f32 %v473_v2, %v393_v19 }
  0xf3   :  { %v857_v36 = vpop.eup %856  ;;  %860 = vrcp.f32 %v505_v27 }
  0xf4   :  { %v529_v47 = vmul.f32 %v857_v36, %v481_v54  ;;  %v859_v57 = vpop.eup %858 }
  0xf5   :  { %v536_v0 = vmul.f32 %v859_v57, %v488_v60 }
  0xf6   :  { %v752_v56 = vpack.c.bf16 %v529_v47, %v528_v55 }
  0xf8   :  { %776 = vst [vmem:[%s1094_s5 + $0x18] sm:$0xff] %v752_v56  }
  0xf9   :  { %v861_v63 = vpop.eup %860 }
  0xfa   :  { %v537_v1 = vmul.f32 %v861_v63, %v489_v62 }
  0xfc   :  { %v772_v3 = vpack.c.bf16 %v537_v1, %v536_v0 }
  0xfe   :  { %780 = vst [vmem:[%s1094_s5 + $0x38] sm:$0xff] %v772_v3  }

</bundles_post_ra>
